<compile_context>
chip_gen: v7x
topology: tpu7x:2x2x1
jax: 0.10.0
libtpu: 0.0.40
codegen_flags: <defaults>
</compile_context>

<pallas_src>
import jax
import jax.numpy as jnp
from jax import lax
from jax.experimental import pallas as pl
from jax.experimental.pallas import tpu as pltpu

_EPS = 1e-5
_LANE = 128


def _round_up(x, m):
    return ((x + m - 1) // m) * m


def _vmem_limit_bytes():
    # Raise the scoped VMEM limit, but stay well under the physical capacity of
    # whatever generation we are running on (64 MiB on v7x, 128 MiB on v5e/v6e).
    try:
        cap = int(pltpu.get_tpu_info().vmem_capacity_bytes)
        return min(cap * 3 // 4, 96 * 1024 * 1024)
    except Exception:
        return 32 * 1024 * 1024


_VMEM_LIMIT = _vmem_limit_bytes()


# -----------------------------------------------------------------------------
# Pass 1: conv1 (k x k, stride folded into phases) as kh*kw shifted MXU matmuls
#         per image, + per-channel sum / sum-of-squares accumulation (BN1
#         batch stats).  The 1x1 stride-s projection shortcut (+ its stats) is
#         fused and reuses the already-loaded halo tile (center-tap slice).
# -----------------------------------------------------------------------------
def _make_conv1_kernel(kh, kw, s, H1, W1, cin, ct, with_shortcut):
    M = H1 * W1
    # 1x1 stride-s conv (no padding) input == the center-tap (i=j=1) slice of
    # the phase-decomposed halo tile.
    pc = (1 % s) * s + (1 % s)
    dc = 1 // s

    def body(ph_ref, w_ref, *rest):
        if with_shortcut:
            (ws_ref, y_ref, sum_ref, ssq_ref,
             sc_ref, ssum_ref, sssq_ref) = rest
        else:
            y_ref, sum_ref, ssq_ref = rest

        # Init the per-channel stat accumulators at the first image of this
        # cout stripe (output blocks stay resident across the batch axis).
        @pl.when(pl.program_id(1) == 0)
        def _init():
            sum_ref[...] = jnp.zeros_like(sum_ref)
            ssq_ref[...] = jnp.zeros_like(ssq_ref)
            if with_shortcut:
                ssum_ref[...] = jnp.zeros_like(ssum_ref)
                sssq_ref[...] = jnp.zeros_like(sssq_ref)

        # k x k conv = kh*kw shifted unit-stride slices of the halo tile, each
        # a bf16 MXU matmul accumulated in f32.
        acc = jnp.zeros((M, ct), jnp.float32)
        for i in range(kh):
            for j in range(kw):
                p = (i % s) * s + (j % s)          # phase index (stride folded)
                di, dj = i // s, j // s
                xt = ph_ref[0, di:di + H1, dj:dj + W1,
                            p * cin:(p + 1) * cin].reshape(M, cin)
                acc = acc + jnp.dot(xt, w_ref[i, j],
                                    preferred_element_type=jnp.float32)

        y_ref[...] = acc.reshape(1, H1, W1, ct)
        sum_ref[...] += jnp.sum(acc, axis=0, keepdims=True)
        ssq_ref[...] += jnp.sum(acc * acc, axis=0, keepdims=True)

        if with_shortcut:
            xsf = ph_ref[0, dc:dc + H1, dc:dc + W1,
                         pc * cin:(pc + 1) * cin].reshape(M, cin)
            sc = jnp.dot(xsf, ws_ref[...], preferred_element_type=jnp.float32)
            sc_ref[...] = sc.reshape(1, H1, W1, ct)
            ssum_ref[...] += jnp.sum(sc, axis=0, keepdims=True)
            sssq_ref[...] += jnp.sum(sc * sc, axis=0, keepdims=True)

    return body


def conv1_bn_stats(phases, w, ws=None, *, stride):
    """phases: [N, Hph, Wph, s*s*Cin] bf16 halo tiles; w: [kh,kw,Cin,Cout] bf16.
    Returns raw conv output [N,H1,W1,Cout] f32 + per-channel (sum, sumsq);
    optionally also the fused 1x1-shortcut raw output + its stats."""
    N, Hph, Wph, c_all = phases.shape
    kh, kw, cin, cout = w.shape
    assert c_all == stride * stride * cin
    H1 = Hph - (kh - 1) // stride
    W1 = Wph - (kw - 1) // stride
    ct = _LANE
    n_ct = cout // ct
    with_sc = ws is not None

    kern = _make_conv1_kernel(kh, kw, stride, H1, W1, cin, ct, with_sc)
    tile_out = pl.BlockSpec((1, H1, W1, ct), lambda c, n: (n, 0, 0, c))
    vec_out = pl.BlockSpec((1, ct), lambda c, n: (0, c))

    in_specs = [
        pl.BlockSpec((1, Hph, Wph, c_all), lambda c, n: (n, 0, 0, 0)),
        pl.BlockSpec((kh, kw, cin, ct), lambda c, n: (0, 0, 0, c)),
    ]
    args = [phases, w]
    out_shape = [
        jax.ShapeDtypeStruct((N, H1, W1, cout), jnp.float32),
        jax.ShapeDtypeStruct((1, cout), jnp.float32),
        jax.ShapeDtypeStruct((1, cout), jnp.float32),
    ]
    out_specs = [tile_out, vec_out, vec_out]

    if with_sc:
        in_specs.append(pl.BlockSpec((cin, ct), lambda c, n: (0, c)))
        args.append(ws)
        out_shape += [
            jax.ShapeDtypeStruct((N, H1, W1, cout), jnp.float32),
            jax.ShapeDtypeStruct((1, cout), jnp.float32),
            jax.ShapeDtypeStruct((1, cout), jnp.float32),
        ]
        out_specs += [tile_out, vec_out, vec_out]

    flops = 2 * N * H1 * W1 * cout * cin * (kh * kw + (1 if with_sc else 0))
    bytes_acc = (phases.size * phases.dtype.itemsize + w.size * 2
                 + N * H1 * W1 * cout * 4 * (2 if with_sc else 1))

    return pl.pallas_call(
        kern,
        grid=(n_ct, N),
        in_specs=in_specs,
        out_specs=tuple(out_specs),
        out_shape=tuple(out_shape),
        compiler_params=pltpu.CompilerParams(
            dimension_semantics=("parallel", "arbitrary"),
            vmem_limit_bytes=_VMEM_LIMIT),
        cost_estimate=pl.CostEstimate(flops=int(flops), transcendentals=0,
                                      bytes_accessed=int(bytes_acc)),
    )(*args)


# -----------------------------------------------------------------------------
# Pass 2: conv2 (3x3, stride 1) with BN1 + ReLU fused on the fly (from pass-1
#         batch stats) into a zero-haloed VMEM scratch tile, + BN2 batch stats.
# -----------------------------------------------------------------------------
def _make_conv2_fused_kernel(H1, W1, cin, ct, m_inv):
    M = H1 * W1

    def body(y1_ref, s1_ref, q1_ref, g1_ref, b1_ref, w_ref,
             y_ref, sum_ref, ssq_ref, buf_ref):
        @pl.when(pl.program_id(1) == 0)
        def _init():
            sum_ref[...] = jnp.zeros_like(sum_ref)
            ssq_ref[...] = jnp.zeros_like(ssq_ref)

        # BN1 (batch stats) + ReLU applied in-kernel; the normalized activation
        # lands directly in a zero-bordered VMEM tile (no HBM round trip, no
        # separate pad pass).
        mean = s1_ref[...] * m_inv
        var = q1_ref[...] * m_inv - mean * mean
        scale = g1_ref[...] * lax.rsqrt(var + _EPS)
        shift = b1_ref[...] - mean * scale
        yn = y1_ref[0] * scale.reshape(1, 1, cin) + shift.reshape(1, 1, cin)
        yn = jnp.maximum(yn, 0.0).astype(jnp.bfloat16)

        buf_ref[...] = jnp.zeros_like(buf_ref)
        buf_ref[1:1 + H1, 1:1 + W1, :] = yn

        acc = jnp.zeros((M, ct), jnp.float32)
        for i in range(3):
            for j in range(3):
                xt = buf_ref[i:i + H1, j:j + W1, :].reshape(M, cin)
                acc = acc + jnp.dot(xt, w_ref[i, j],
                                    preferred_element_type=jnp.float32)

        y_ref[...] = acc.reshape(1, H1, W1, ct)
        sum_ref[...] += jnp.sum(acc, axis=0, keepdims=True)
        ssq_ref[...] += jnp.sum(acc * acc, axis=0, keepdims=True)

    return body


def conv2_bn1_fused(y1, s1, q1, g1, b1, w, m_count):
    N, H1, W1, cin = y1.shape
    kh, kw, cin_w, cout = w.shape
    assert (kh, kw) == (3, 3) and cin_w == cin
    ct = _LANE
    n_ct = cout // ct

    kern = _make_conv2_fused_kernel(H1, W1, cin, ct, 1.0 / m_count)
    tile_out = pl.BlockSpec((1, H1, W1, ct), lambda c, n: (n, 0, 0, c))
    vec_out = pl.BlockSpec((1, ct), lambda c, n: (0, c))
    vec_in = pl.BlockSpec((1, cin), lambda c, n: (0, 0))     # full stat vectors

    flops = 2 * N * H1 * W1 * cout * cin * 9
    bytes_acc = y1.size * 4 + w.size * 2 + N * H1 * W1 * cout * 4

    return pl.pallas_call(
        kern,
        grid=(n_ct, N),
        in_specs=[
            pl.BlockSpec((1, H1, W1, cin), lambda c, n: (n, 0, 0, 0)),
            vec_in, vec_in, vec_in, vec_in,
            pl.BlockSpec((3, 3, cin, ct), lambda c, n: (0, 0, 0, c)),
        ],
        out_specs=(tile_out, vec_out, vec_out),
        out_shape=(
            jax.ShapeDtypeStruct((N, H1, W1, cout), jnp.float32),
            jax.ShapeDtypeStruct((1, cout), jnp.float32),
            jax.ShapeDtypeStruct((1, cout), jnp.float32),
        ),
        scratch_shapes=[pltpu.VMEM((H1 + 2, W1 + 2, cin), jnp.bfloat16)],
        compiler_params=pltpu.CompilerParams(
            dimension_semantics=("parallel", "arbitrary"),
            vmem_limit_bytes=_VMEM_LIMIT),
        cost_estimate=pl.CostEstimate(flops=int(flops), transcendentals=0,
                                      bytes_accessed=int(bytes_acc)),
    )(y1, s1, q1, g1, b1, w)


# -----------------------------------------------------------------------------
# Pass 3: final epilogue -- BN2 (+ BN of the projection shortcut OR identity
#         residual) + add + ReLU, fused in one lane-dense pass.
# -----------------------------------------------------------------------------
def _make_final_kernel(m_inv, identity_residual):
    def norm(vals, sum_ref, ssq_ref, g_ref, b_ref):
        mean = sum_ref[...] * m_inv
        var = ssq_ref[...] * m_inv - mean * mean
        scale = g_ref[...] * lax.rsqrt(var + _EPS)
        shift = b_ref[...] - mean * scale
        c = scale.shape[-1]
        return vals * scale.reshape(1, 1, 1, c) + shift.reshape(1, 1, 1, c)

    if identity_residual:
        def body(y_ref, s_ref, q_ref, g_ref, b_ref, r_ref, o_ref):
            y = norm(y_ref[...], s_ref, q_ref, g_ref, b_ref)
            o_ref[...] = jnp.maximum(y + r_ref[...].astype(jnp.float32), 0.0)
    else:
        def body(y_ref, s_ref, q_ref, g_ref, b_ref,
                 sc_ref, ss_ref, sq_ref, gs_ref, bs_ref, o_ref):
            y = norm(y_ref[...], s_ref, q_ref, g_ref, b_ref)
            r = norm(sc_ref[...], ss_ref, sq_ref, gs_ref, bs_ref)
            o_ref[...] = jnp.maximum(y + r, 0.0)
    return body


def bn_add_relu(y2, s2, q2, g2, b2, m_count, *, residual=None,
                sc_raw=None, sc_sum=None, sc_ssq=None, gs=None, bs=None):
    N, H1, W1, cout = y2.shape
    ct = _LANE
    n_ct = cout // ct
    identity = residual is not None
    tile = pl.BlockSpec((1, H1, W1, ct), lambda c, n: (n, 0, 0, c))
    vec = pl.BlockSpec((1, ct), lambda c, n: (0, c))
    if identity:
        in_specs = [tile, vec, vec, vec, vec, tile]
        args = [y2, s2, q2, g2, b2, residual]
    else:
        in_specs = [tile, vec, vec, vec, vec, tile, vec, vec, vec, vec]
        args = [y2, s2, q2, g2, b2, sc_raw, sc_sum, sc_ssq, gs, bs]
    return pl.pallas_call(
        _make_final_kernel(1.0 / m_count, identity),
        grid=(n_ct, N),
        in_specs=in_specs,
        out_specs=tile,
        out_shape=jax.ShapeDtypeStruct((N, H1, W1, cout), jnp.float32),
        compiler_params=pltpu.CompilerParams(
            dimension_semantics=("parallel", "parallel"),
            vmem_limit_bytes=_VMEM_LIMIT),
    )(*args)


# -----------------------------------------------------------------------------
# Plain-JAX glue: layout, channel padding, weight repacking, phase decomposition
# -----------------------------------------------------------------------------
def _pad_last(x, c_to):
    c = x.shape[-1]
    if c == c_to:
        return x
    return jnp.pad(x, [(0, 0)] * (x.ndim - 1) + [(0, c_to - c)])


def _prep_w3x3(w_oihw, cp_in, cp_out):
    w = jnp.transpose(w_oihw, (2, 3, 1, 0))              # [kh, kw, Cin, Cout]
    kh, kw, cin, cout = w.shape
    w = jnp.pad(w, ((0, 0), (0, 0), (0, cp_in - cin), (0, cp_out - cout)))
    return w.astype(jnp.bfloat16)


def _prep_w1x1(w_oihw, cp_in, cp_out):
    w = jnp.transpose(w_oihw[:, :, 0, 0], (1, 0))        # [Cin, Cout]
    cin, cout = w.shape
    w = jnp.pad(w, ((0, cp_in - cin), (0, cp_out - cout)))
    return w.astype(jnp.bfloat16)


def _phase_decompose(xp, s, kh, kw, H1, W1):
    """xp: spatially padded NHWC (bf16). For stride s, returns
    [N, Hph, Wph, s*s*C] so the kernel only ever does unit-stride shifted
    slices (phase p = (i%s)*s + (j%s) lives in channel block p)."""
    if s == 1:
        return xp
    Hph = (kh - 1) // s + H1
    Wph = (kw - 1) // s + W1
    cols = []
    for pi in range(s):
        for pj in range(s):
            ph = xp[:, pi::s, pj::s, :][:, :Hph, :Wph, :]
            dh, dw = Hph - ph.shape[1], Wph - ph.shape[2]
            if dh or dw:
                ph = jnp.pad(ph, ((0, 0), (0, dh), (0, dw), (0, 0)))
            cols.append(ph)
    return jnp.concatenate(cols, axis=-1)


def init_params(key, in_planes, planes, stride):
    ks = jax.random.split(key, 3)
    params = {
        "w1": 0.1 * jax.random.normal(ks[0], (planes, in_planes, 3, 3), jnp.float32),
        "g1": jnp.ones((1, planes), jnp.float32),
        "b1": jnp.zeros((1, planes), jnp.float32),
        "w2": 0.1 * jax.random.normal(ks[1], (planes, planes, 3, 3), jnp.float32),
        "g2": jnp.ones((1, planes), jnp.float32),
        "b2": jnp.zeros((1, planes), jnp.float32),
    }
    if stride != 1 or in_planes != planes:
        params["ws"] = 0.1 * jax.random.normal(ks[2], (planes, in_planes, 1, 1), jnp.float32)
        params["gs"] = jnp.ones((1, planes), jnp.float32)
        params["bs"] = jnp.zeros((1, planes), jnp.float32)
    return params


def basic_block_forward(x_nchw, params, in_planes, planes, stride):
    N, cin, H, W = x_nchw.shape
    assert cin == in_planes
    cp_in = _round_up(in_planes, _LANE)
    cp_out = _round_up(planes, _LANE)

    # NCHW -> NHWC, pad channels to a lane-dense multiple of 128.
    x = jnp.transpose(x_nchw, (0, 2, 3, 1)).astype(jnp.float32)
    x_f32 = _pad_last(x, cp_in)
    x_bf = x_f32.astype(jnp.bfloat16)          # bf16 MXU operands, f32 accumulate

    # ---- pass 1: conv1 (3x3, stride) + BN1 stats [+ fused 1x1 shortcut] -----
    H1 = (H + 2 - 3) // stride + 1
    W1 = (W + 2 - 3) // stride + 1
    m = N * H1 * W1
    xp = jnp.pad(x_bf, ((0, 0), (1, 1), (1, 1), (0, 0)))
    phases1 = _phase_decompose(xp, stride, 3, 3, H1, W1)
    w1 = _prep_w3x3(params["w1"], cp_in, cp_out)

    has_proj = (stride != 1) or (in_planes != planes)
    if has_proj:
        ws = _prep_w1x1(params["ws"], cp_in, cp_out)
        y1, s1, q1, sc, ssum, sssq = conv1_bn_stats(phases1, w1, ws, stride=stride)
    else:
        y1, s1, q1 = conv1_bn_stats(phases1, w1, stride=stride)

    # ---- pass 2: conv2 (3x3, stride 1) with BN1+ReLU fused, + BN2 stats -----
    g1 = _pad_last(params["g1"], cp_out)
    b1 = _pad_last(params["b1"], cp_out)
    w2 = _prep_w3x3(params["w2"], cp_out, cp_out)
    y2, s2, q2 = conv2_bn1_fused(y1, s1, q1, g1, b1, w2, m)

    # ---- pass 3: BN2 + (shortcut BN or identity residual) + add + ReLU ------
    g2 = _pad_last(params["g2"], cp_out)
    b2 = _pad_last(params["b2"], cp_out)
    if has_proj:
        gs = _pad_last(params["gs"], cp_out)
        bs = _pad_last(params["bs"], cp_out)
        out = bn_add_relu(y2, s2, q2, g2, b2, m,
                          sc_raw=sc, sc_sum=ssum, sc_ssq=sssq, gs=gs, bs=bs)
    else:
        # identity shortcut: only valid when stride == 1 and in_planes == planes
        assert stride == 1 and cp_in == cp_out
        out = bn_add_relu(y2, s2, q2, g2, b2, m, residual=x_f32)

    out = out[:, :, :, :planes]
    return jnp.transpose(out, (0, 3, 1, 2))          # back to NCHW


# -----------------------------------------------------------------------------
# Pure-JAX f32 reference (train-mode BN with batch statistics)
# -----------------------------------------------------------------------------
def _ref_block(x, params, in_planes, planes, stride):
    def conv(y, w, s, p):
        return jax.lax.conv_general_dilated(
            y, w, (s, s), [(p, p), (p, p)],
            dimension_numbers=("NCHW", "OIHW", "NCHW"))

    def bn(y, g, b):
        mean = jnp.mean(y, axis=(0, 2, 3), keepdims=True)
        var = jnp.mean(jnp.square(y - mean), axis=(0, 2, 3), keepdims=True)
        return ((y - mean) * jax.lax.rsqrt(var + _EPS)
                * g.reshape(1, -1, 1, 1) + b.reshape(1, -1, 1, 1))

    out = jax.nn.relu(bn(conv(x, params["w1"], stride, 1), params["g1"], params["b1"]))
    out = bn(conv(out, params["w2"], 1, 1), params["g2"], params["b2"])
    if stride != 1 or in_planes != planes:
        sc = bn(conv(x, params["ws"], stride, 0), params["gs"], params["bs"])
    else:
        sc = x
    return jax.nn.relu(out + sc)


if __name__ == "__main__":
    key = jax.random.PRNGKey(0)
    kx, kp1, kp2 = jax.random.split(key, 3)

    fwd = jax.jit(basic_block_forward, static_argnums=(2, 3, 4))

    # Case 1: downsampling block with projection shortcut (4 -> 8, stride 2)
    x = jax.random.normal(kx, (2, 4, 16, 16), jnp.float32)
    params = init_params(kp1, 4, 8, 2)
    out = jax.block_until_ready(fwd(x, params, 4, 8, 2))
    ref = _ref_block(x, params, 4, 8, 2)
    assert out.shape == (2, 8, 8, 8) and out.dtype == jnp.float32
    # bf16 MXU operands -> slightly looser tolerance than pure-f32
    assert jnp.allclose(out, ref, atol=2e-2, rtol=2e-2), \
        float(jnp.max(jnp.abs(out - ref)))

    # Case 2: identity-shortcut block (4 -> 4, stride 1)
    params_id = init_params(kp2, 4, 4, 1)
    out_id = jax.block_until_ready(fwd(x, params_id, 4, 4, 1))
    ref_id = _ref_block(x, params_id, 4, 4, 1)
    assert out_id.shape == (2, 4, 16, 16)
    assert jnp.allclose(out_id, ref_id, atol=2e-2, rtol=2e-2), \
        float(jnp.max(jnp.abs(out_id - ref_id)))

    print("KERNEL_OK")
</pallas_src>

<mosaic_0001>
module attributes {stable_mosaic.version = 11 : i64} {
  func.func @body(%arg0: i32, %arg1: i32, %arg2: memref<1x8x8x128xf32, #tpu.memory_space<vmem>>, %arg3: memref<1x128xf32, #tpu.memory_space<vmem>>, %arg4: memref<1x128xf32, #tpu.memory_space<vmem>>, %arg5: memref<1x128xf32, #tpu.memory_space<vmem>>, %arg6: memref<1x128xf32, #tpu.memory_space<vmem>>, %arg7: memref<3x3x128x128xbf16, #tpu.memory_space<vmem>>, %arg8: memref<1x8x8x128xf32, #tpu.memory_space<vmem>>, %arg9: memref<1x128xf32, #tpu.memory_space<vmem>>, %arg10: memref<1x128xf32, #tpu.memory_space<vmem>>, %arg11: memref<10x10x128xbf16, #tpu.memory_space<vmem>>) attributes {dimension_semantics = [#tpu.dimension_semantics<parallel>, #tpu.dimension_semantics<arbitrary>], iteration_bounds = array<i64: 1, 2>, scalar_prefetch = 0 : i64, scratch_operands = 1 : i64, tpu.core_type = #tpu.core_type<tc>, window_params = [{transform_indices = @transform_0, window_bounds = array<i64: 1, 8, 8, 128>}, {pipeline_mode = #tpu.pipeline_mode<synchronous>, transform_indices = @transform_1, window_bounds = array<i64: 1, 128>}, {pipeline_mode = #tpu.pipeline_mode<synchronous>, transform_indices = @transform_2, window_bounds = array<i64: 1, 128>}, {pipeline_mode = #tpu.pipeline_mode<synchronous>, transform_indices = @transform_3, window_bounds = array<i64: 1, 128>}, {pipeline_mode = #tpu.pipeline_mode<synchronous>, transform_indices = @transform_4, window_bounds = array<i64: 1, 128>}, {transform_indices = @transform_5, window_bounds = array<i64: 3, 3, 128, 128>}, {transform_indices = @transform_6, window_bounds = array<i64: 1, 8, 8, 128>}, {transform_indices = @transform_7, window_bounds = array<i64: 1, 128>}, {transform_indices = @transform_8, window_bounds = array<i64: 1, 128>}]} {
    %c0_i32 = arith.constant 0 : i32
    %0 = arith.cmpi eq, %arg1, %c0_i32 : i32
    %1 = arith.extui %0 : i1 to i32
    %c0_i32_0 = arith.constant 0 : i32
    %2 = arith.cmpi ne, %1, %c0_i32_0 : i32
    scf.if %2 {
      %cst_107 = arith.constant 0.000000e+00 : f32
      %101 = vector.broadcast %cst_107 : f32 to vector<1x128xf32>
      %c0_108 = arith.constant 0 : index
      %c0_109 = arith.constant 0 : index
      %102 = vector.load %arg9[%c0_108, %c0_109] : memref<1x128xf32, #tpu.memory_space<vmem>>, vector<1x128xf32>
      tpu.vector_store %arg9[%c0_108, %c0_109], %101 {strides = array<i32>} : memref<1x128xf32, #tpu.memory_space<vmem>>, vector<1x128xf32>,
      %cst_110 = arith.constant 0.000000e+00 : f32
      %103 = vector.broadcast %cst_110 : f32 to vector<1x128xf32>
      %c0_111 = arith.constant 0 : index
      %c0_112 = arith.constant 0 : index
      %104 = vector.load %arg10[%c0_111, %c0_112] : memref<1x128xf32, #tpu.memory_space<vmem>>, vector<1x128xf32>
      tpu.vector_store %arg10[%c0_111, %c0_112], %103 {strides = array<i32>} : memref<1x128xf32, #tpu.memory_space<vmem>>, vector<1x128xf32>,
    } else {
    }
    %c0 = arith.constant 0 : index
    %c0_1 = arith.constant 0 : index
    %3 = vector.load %arg3[%c0, %c0_1] : memref<1x128xf32, #tpu.memory_space<vmem>>, vector<1x128xf32>
    %cst = arith.constant 7.812500e-03 : f32
    %4 = vector.broadcast %cst : f32 to vector<1x128xf32>
    %5 = arith.mulf %3, %4 : vector<1x128xf32>
    %c0_2 = arith.constant 0 : index
    %c0_3 = arith.constant 0 : index
    %6 = vector.load %arg4[%c0_2, %c0_3] : memref<1x128xf32, #tpu.memory_space<vmem>>, vector<1x128xf32>
    %cst_4 = arith.constant 7.812500e-03 : f32
    %7 = vector.broadcast %cst_4 : f32 to vector<1x128xf32>
    %8 = arith.mulf %6, %7 : vector<1x128xf32>
    %9 = arith.mulf %5, %5 : vector<1x128xf32>
    %10 = arith.subf %8, %9 : vector<1x128xf32>
    %c0_5 = arith.constant 0 : index
    %c0_6 = arith.constant 0 : index
    %11 = vector.load %arg5[%c0_5, %c0_6] : memref<1x128xf32, #tpu.memory_space<vmem>>, vector<1x128xf32>
    %cst_7 = arith.constant 9.99999974E-6 : f32
    %12 = vector.broadcast %cst_7 : f32 to vector<1x128xf32>
    %13 = arith.addf %10, %12 : vector<1x128xf32>
    %14 = math.rsqrt %13 : vector<1x128xf32>
    %15 = arith.mulf %11, %14 : vector<1x128xf32>
    %c0_8 = arith.constant 0 : index
    %c0_9 = arith.constant 0 : index
    %16 = vector.load %arg6[%c0_8, %c0_9] : memref<1x128xf32, #tpu.memory_space<vmem>>, vector<1x128xf32>
    %17 = arith.mulf %5, %15 : vector<1x128xf32>
    %18 = arith.subf %16, %17 : vector<1x128xf32>
    %c0_10 = arith.constant 0 : index
    %c0_11 = arith.constant 0 : index
    %c0_12 = arith.constant 0 : index
    %c0_13 = arith.constant 0 : index
    %19 = vector.load %arg2[%c0_10, %c0_11, %c0_12, %c0_13] : memref<1x8x8x128xf32, #tpu.memory_space<vmem>>, vector<1x8x8x128xf32>
    %20 = vector.shape_cast %19 : vector<1x8x8x128xf32> to vector<8x8x128xf32>
    %21 = vector.shape_cast %15 : vector<1x128xf32> to vector<1x1x128xf32>
    %22 = vector.broadcast %21 : vector<1x1x128xf32> to vector<8x8x128xf32>
    %23 = arith.mulf %20, %22 : vector<8x8x128xf32>
    %24 = vector.shape_cast %18 : vector<1x128xf32> to vector<1x1x128xf32>
    %25 = vector.broadcast %24 : vector<1x1x128xf32> to vector<8x8x128xf32>
    %26 = arith.addf %23, %25 : vector<8x8x128xf32>
    %cst_14 = arith.constant 0.000000e+00 : f32
    %27 = vector.broadcast %cst_14 : f32 to vector<8x8x128xf32>
    %28 = arith.maximumf %26, %27 : vector<8x8x128xf32>
    %29 = arith.truncf %28 : vector<8x8x128xf32> to vector<8x8x128xbf16>
    %cst_15 = arith.constant 0.000000e+00 : bf16
    %30 = vector.broadcast %cst_15 : bf16 to vector<10x10x128xbf16>
    %c0_16 = arith.constant 0 : index
    %c0_17 = arith.constant 0 : index
    %c0_18 = arith.constant 0 : index
    %31 = vector.load %arg11[%c0_16, %c0_17, %c0_18] : memref<10x10x128xbf16, #tpu.memory_space<vmem>>, vector<10x10x128xbf16>
    tpu.vector_store %arg11[%c0_16, %c0_17, %c0_18], %30 {strides = array<i32>} : memref<10x10x128xbf16, #tpu.memory_space<vmem>>, vector<10x10x128xbf16>,
    %c1 = arith.constant 1 : index
    %c1_19 = arith.constant 1 : index
    %c0_20 = arith.constant 0 : index
    %32 = vector.load %arg11[%c1, %c1_19, %c0_20] : memref<10x10x128xbf16, #tpu.memory_space<vmem>>, vector<8x8x128xbf16>
    tpu.vector_store %arg11[%c1, %c1_19, %c0_20], %29 {strides = array<i32>} : memref<10x10x128xbf16, #tpu.memory_space<vmem>>, vector<8x8x128xbf16>,
    %cst_21 = arith.constant 0.000000e+00 : f32
    %33 = vector.broadcast %cst_21 : f32 to vector<64x128xf32>
    %c0_22 = arith.constant 0 : index
    %c0_23 = arith.constant 0 : index
    %c0_24 = arith.constant 0 : index
    %34 = vector.load %arg11[%c0_22, %c0_23, %c0_24] : memref<10x10x128xbf16, #tpu.memory_space<vmem>>, vector<8x8x128xbf16>
    %35 = vector.shape_cast %34 : vector<8x8x128xbf16> to vector<64x128xbf16>
    %c0_25 = arith.constant 0 : index
    %c0_26 = arith.constant 0 : index
    %c0_27 = arith.constant 0 : index
    %c0_28 = arith.constant 0 : index
    %36 = vector.load %arg7[%c0_25, %c0_26, %c0_27, %c0_28] : memref<3x3x128x128xbf16, #tpu.memory_space<vmem>>, vector<1x1x128x128xbf16>
    %37 = vector.shape_cast %36 : vector<1x1x128x128xbf16> to vector<128x128xbf16>
    %cst_29 = arith.constant dense<0.000000e+00> : vector<64x128xf32>
    %38 = tpu.matmul %35, %37, %cst_29 {dimension_numbers = #tpu.dot_dimension_numbers<[1], [0], [0], [1], [0, 0, 1, 1], [], []>} : vector<64x128xbf16>, vector<128x128xbf16>, vector<64x128xf32> -> vector<64x128xf32>
    %39 = arith.addf %33, %38 : vector<64x128xf32>
    %c0_30 = arith.constant 0 : index
    %c1_31 = arith.constant 1 : index
    %c0_32 = arith.constant 0 : index
    %40 = vector.load %arg11[%c0_30, %c1_31, %c0_32] : memref<10x10x128xbf16, #tpu.memory_space<vmem>>, vector<8x8x128xbf16>
    %41 = vector.shape_cast %40 : vector<8x8x128xbf16> to vector<64x128xbf16>
    %c0_33 = arith.constant 0 : index
    %c1_34 = arith.constant 1 : index
    %c0_35 = arith.constant 0 : index
    %c0_36 = arith.constant 0 : index
    %42 = vector.load %arg7[%c0_33, %c1_34, %c0_35, %c0_36] : memref<3x3x128x128xbf16, #tpu.memory_space<vmem>>, vector<1x1x128x128xbf16>
    %43 = vector.shape_cast %42 : vector<1x1x128x128xbf16> to vector<128x128xbf16>
    %cst_37 = arith.constant dense<0.000000e+00> : vector<64x128xf32>
    %44 = tpu.matmul %41, %43, %cst_37 {dimension_numbers = #tpu.dot_dimension_numbers<[1], [0], [0], [1], [0, 0, 1, 1], [], []>} : vector<64x128xbf16>, vector<128x128xbf16>, vector<64x128xf32> -> vector<64x128xf32>
    %45 = arith.addf %39, %44 : vector<64x128xf32>
    %c0_38 = arith.constant 0 : index
    %c2 = arith.constant 2 : index
    %c0_39 = arith.constant 0 : index
    %46 = vector.load %arg11[%c0_38, %c2, %c0_39] : memref<10x10x128xbf16, #tpu.memory_space<vmem>>, vector<8x8x128xbf16>
    %47 = vector.shape_cast %46 : vector<8x8x128xbf16> to vector<64x128xbf16>
    %c0_40 = arith.constant 0 : index
    %c2_41 = arith.constant 2 : index
    %c0_42 = arith.constant 0 : index
    %c0_43 = arith.constant 0 : index
    %48 = vector.load %arg7[%c0_40, %c2_41, %c0_42, %c0_43] : memref<3x3x128x128xbf16, #tpu.memory_space<vmem>>, vector<1x1x128x128xbf16>
    %49 = vector.shape_cast %48 : vector<1x1x128x128xbf16> to vector<128x128xbf16>
    %cst_44 = arith.constant dense<0.000000e+00> : vector<64x128xf32>
    %50 = tpu.matmul %47, %49, %cst_44 {dimension_numbers = #tpu.dot_dimension_numbers<[1], [0], [0], [1], [0, 0, 1, 1], [], []>} : vector<64x128xbf16>, vector<128x128xbf16>, vector<64x128xf32> -> vector<64x128xf32>
    %51 = arith.addf %45, %50 : vector<64x128xf32>
    %c1_45 = arith.constant 1 : index
    %c0_46 = arith.constant 0 : index
    %c0_47 = arith.constant 0 : index
    %52 = vector.load %arg11[%c1_45, %c0_46, %c0_47] : memref<10x10x128xbf16, #tpu.memory_space<vmem>>, vector<8x8x128xbf16>
    %53 = vector.shape_cast %52 : vector<8x8x128xbf16> to vector<64x128xbf16>
    %c1_48 = arith.constant 1 : index
    %c0_49 = arith.constant 0 : index
    %c0_50 = arith.constant 0 : index
    %c0_51 = arith.constant 0 : index
    %54 = vector.load %arg7[%c1_48, %c0_49, %c0_50, %c0_51] : memref<3x3x128x128xbf16, #tpu.memory_space<vmem>>, vector<1x1x128x128xbf16>
    %55 = vector.shape_cast %54 : vector<1x1x128x128xbf16> to vector<128x128xbf16>
    %cst_52 = arith.constant dense<0.000000e+00> : vector<64x128xf32>
    %56 = tpu.matmul %53, %55, %cst_52 {dimension_numbers = #tpu.dot_dimension_numbers<[1], [0], [0], [1], [0, 0, 1, 1], [], []>} : vector<64x128xbf16>, vector<128x128xbf16>, vector<64x128xf32> -> vector<64x128xf32>
    %57 = arith.addf %51, %56 : vector<64x128xf32>
    %c1_53 = arith.constant 1 : index
    %c1_54 = arith.constant 1 : index
    %c0_55 = arith.constant 0 : index
    %58 = vector.load %arg11[%c1_53, %c1_54, %c0_55] : memref<10x10x128xbf16, #tpu.memory_space<vmem>>, vector<8x8x128xbf16>
    %59 = vector.shape_cast %58 : vector<8x8x128xbf16> to vector<64x128xbf16>
    %c1_56 = arith.constant 1 : index
    %c1_57 = arith.constant 1 : index
    %c0_58 = arith.constant 0 : index
    %c0_59 = arith.constant 0 : index
    %60 = vector.load %arg7[%c1_56, %c1_57, %c0_58, %c0_59] : memref<3x3x128x128xbf16, #tpu.memory_space<vmem>>, vector<1x1x128x128xbf16>
    %61 = vector.shape_cast %60 : vector<1x1x128x128xbf16> to vector<128x128xbf16>
    %cst_60 = arith.constant dense<0.000000e+00> : vector<64x128xf32>
    %62 = tpu.matmul %59, %61, %cst_60 {dimension_numbers = #tpu.dot_dimension_numbers<[1], [0], [0], [1], [0, 0, 1, 1], [], []>} : vector<64x128xbf16>, vector<128x128xbf16>, vector<64x128xf32> -> vector<64x128xf32>
    %63 = arith.addf %57, %62 : vector<64x128xf32>
    %c1_61 = arith.constant 1 : index
    %c2_62 = arith.constant 2 : index
    %c0_63 = arith.constant 0 : index
    %64 = vector.load %arg11[%c1_61, %c2_62, %c0_63] : memref<10x10x128xbf16, #tpu.memory_space<vmem>>, vector<8x8x128xbf16>
    %65 = vector.shape_cast %64 : vector<8x8x128xbf16> to vector<64x128xbf16>
    %c1_64 = arith.constant 1 : index
    %c2_65 = arith.constant 2 : index
    %c0_66 = arith.constant 0 : index
    %c0_67 = arith.constant 0 : index
    %66 = vector.load %arg7[%c1_64, %c2_65, %c0_66, %c0_67] : memref<3x3x128x128xbf16, #tpu.memory_space<vmem>>, vector<1x1x128x128xbf16>
    %67 = vector.shape_cast %66 : vector<1x1x128x128xbf16> to vector<128x128xbf16>
    %cst_68 = arith.constant dense<0.000000e+00> : vector<64x128xf32>
    %68 = tpu.matmul %65, %67, %cst_68 {dimension_numbers = #tpu.dot_dimension_numbers<[1], [0], [0], [1], [0, 0, 1, 1], [], []>} : vector<64x128xbf16>, vector<128x128xbf16>, vector<64x128xf32> -> vector<64x128xf32>
    %69 = arith.addf %63, %68 : vector<64x128xf32>
    %c2_69 = arith.constant 2 : index
    %c0_70 = arith.constant 0 : index
    %c0_71 = arith.constant 0 : index
    %70 = vector.load %arg11[%c2_69, %c0_70, %c0_71] : memref<10x10x128xbf16, #tpu.memory_space<vmem>>, vector<8x8x128xbf16>
    %71 = vector.shape_cast %70 : vector<8x8x128xbf16> to vector<64x128xbf16>
    %c2_72 = arith.constant 2 : index
    %c0_73 = arith.constant 0 : index
    %c0_74 = arith.constant 0 : index
    %c0_75 = arith.constant 0 : index
    %72 = vector.load %arg7[%c2_72, %c0_73, %c0_74, %c0_75] : memref<3x3x128x128xbf16, #tpu.memory_space<vmem>>, vector<1x1x128x128xbf16>
    %73 = vector.shape_cast %72 : vector<1x1x128x128xbf16> to vector<128x128xbf16>
    %cst_76 = arith.constant dense<0.000000e+00> : vector<64x128xf32>
    %74 = tpu.matmul %71, %73, %cst_76 {dimension_numbers = #tpu.dot_dimension_numbers<[1], [0], [0], [1], [0, 0, 1, 1], [], []>} : vector<64x128xbf16>, vector<128x128xbf16>, vector<64x128xf32> -> vector<64x128xf32>
    %75 = arith.addf %69, %74 : vector<64x128xf32>
    %c2_77 = arith.constant 2 : index
    %c1_78 = arith.constant 1 : index
    %c0_79 = arith.constant 0 : index
    %76 = vector.load %arg11[%c2_77, %c1_78, %c0_79] : memref<10x10x128xbf16, #tpu.memory_space<vmem>>, vector<8x8x128xbf16>
    %77 = vector.shape_cast %76 : vector<8x8x128xbf16> to vector<64x128xbf16>
    %c2_80 = arith.constant 2 : index
    %c1_81 = arith.constant 1 : index
    %c0_82 = arith.constant 0 : index
    %c0_83 = arith.constant 0 : index
    %78 = vector.load %arg7[%c2_80, %c1_81, %c0_82, %c0_83] : memref<3x3x128x128xbf16, #tpu.memory_space<vmem>>, vector<1x1x128x128xbf16>
    %79 = vector.shape_cast %78 : vector<1x1x128x128xbf16> to vector<128x128xbf16>
    %cst_84 = arith.constant dense<0.000000e+00> : vector<64x128xf32>
    %80 = tpu.matmul %77, %79, %cst_84 {dimension_numbers = #tpu.dot_dimension_numbers<[1], [0], [0], [1], [0, 0, 1, 1], [], []>} : vector<64x128xbf16>, vector<128x128xbf16>, vector<64x128xf32> -> vector<64x128xf32>
    %81 = arith.addf %75, %80 : vector<64x128xf32>
    %c2_85 = arith.constant 2 : index
    %c2_86 = arith.constant 2 : index
    %c0_87 = arith.constant 0 : index
    %82 = vector.load %arg11[%c2_85, %c2_86, %c0_87] : memref<10x10x128xbf16, #tpu.memory_space<vmem>>, vector<8x8x128xbf16>
    %83 = vector.shape_cast %82 : vector<8x8x128xbf16> to vector<64x128xbf16>
    %c2_88 = arith.constant 2 : index
    %c2_89 = arith.constant 2 : index
    %c0_90 = arith.constant 0 : index
    %c0_91 = arith.constant 0 : index
    %84 = vector.load %arg7[%c2_88, %c2_89, %c0_90, %c0_91] : memref<3x3x128x128xbf16, #tpu.memory_space<vmem>>, vector<1x1x128x128xbf16>
    %85 = vector.shape_cast %84 : vector<1x1x128x128xbf16> to vector<128x128xbf16>
    %cst_92 = arith.constant dense<0.000000e+00> : vector<64x128xf32>
    %86 = tpu.matmul %83, %85, %cst_92 {dimension_numbers = #tpu.dot_dimension_numbers<[1], [0], [0], [1], [0, 0, 1, 1], [], []>} : vector<64x128xbf16>, vector<128x128xbf16>, vector<64x128xf32> -> vector<64x128xf32>
    %87 = arith.addf %81, %86 : vector<64x128xf32>
    %88 = vector.shape_cast %87 : vector<64x128xf32> to vector<1x8x8x128xf32>
    %c0_93 = arith.constant 0 : index
    %c0_94 = arith.constant 0 : index
    %c0_95 = arith.constant 0 : index
    %c0_96 = arith.constant 0 : index
    %89 = vector.load %arg8[%c0_93, %c0_94, %c0_95, %c0_96] : memref<1x8x8x128xf32, #tpu.memory_space<vmem>>, vector<1x8x8x128xf32>
    tpu.vector_store %arg8[%c0_93, %c0_94, %c0_95, %c0_96], %88 {strides = array<i32>} : memref<1x8x8x128xf32, #tpu.memory_space<vmem>>, vector<1x8x8x128xf32>,
    %c0_97 = arith.constant 0 : index
    %c0_98 = arith.constant 0 : index
    %90 = vector.load %arg9[%c0_97, %c0_98] : memref<1x128xf32, #tpu.memory_space<vmem>>, vector<1x128xf32>
    %cst_99 = arith.constant dense<0.000000e+00> : vector<128xf32>
    %91 = vector.multi_reduction <add>, %87, %cst_99 [0] : vector<64x128xf32> to vector<128xf32>
    %92 = vector.shape_cast %91 : vector<128xf32> to vector<1x128xf32>
    %93 = arith.addf %90, %92 : vector<1x128xf32>
    %c0_100 = arith.constant 0 : index
    %c0_101 = arith.constant 0 : index
    %94 = vector.load %arg9[%c0_100, %c0_101] : memref<1x128xf32, #tpu.memory_space<vmem>>, vector<1x128xf32>
    tpu.vector_store %arg9[%c0_100, %c0_101], %93 {strides = array<i32>} : memref<1x128xf32, #tpu.memory_space<vmem>>, vector<1x128xf32>,
    %c0_102 = arith.constant 0 : index
    %c0_103 = arith.constant 0 : index
    %95 = vector.load %arg10[%c0_102, %c0_103] : memref<1x128xf32, #tpu.memory_space<vmem>>, vector<1x128xf32>
    %96 = arith.mulf %87, %87 : vector<64x128xf32>
    %cst_104 = arith.constant dense<0.000000e+00> : vector<128xf32>
    %97 = vector.multi_reduction <add>, %96, %cst_104 [0] : vector<64x128xf32> to vector<128xf32>
    %98 = vector.shape_cast %97 : vector<128xf32> to vector<1x128xf32>
    %99 = arith.addf %95, %98 : vector<1x128xf32>
    %c0_105 = arith.constant 0 : index
    %c0_106 = arith.constant 0 : index
    %100 = vector.load %arg10[%c0_105, %c0_106] : memref<1x128xf32, #tpu.memory_space<vmem>>, vector<1x128xf32>
    tpu.vector_store %arg10[%c0_105, %c0_106], %99 {strides = array<i32>} : memref<1x128xf32, #tpu.memory_space<vmem>>, vector<1x128xf32>,
    return
  }
  func.func @transform_0(%arg0: i32, %arg1: i32) -> (i32, i32, i32, i32) {
    %c0_i32 = arith.constant 0 : i32
    %c0_i32_0 = arith.constant 0 : i32
    %c0_i32_1 = arith.constant 0 : i32
    %c0_i32_2 = arith.constant 0 : i32
    return %arg1, %c0_i32, %c0_i32_0, %c0_i32_1 : i32, i32, i32, i32
  }
  func.func @transform_1(%arg0: i32, %arg1: i32) -> (i32, i32) {
    %c0_i32 = arith.constant 0 : i32
    %c0_i32_0 = arith.constant 0 : i32
    %c0_i32_1 = arith.constant 0 : i32
    return %c0_i32, %c0_i32_0 : i32, i32
  }
  func.func @transform_2(%arg0: i32, %arg1: i32) -> (i32, i32) {
    %c0_i32 = arith.constant 0 : i32
    %c0_i32_0 = arith.constant 0 : i32
    %c0_i32_1 = arith.constant 0 : i32
    return %c0_i32, %c0_i32_0 : i32, i32
  }
  func.func @transform_3(%arg0: i32, %arg1: i32) -> (i32, i32) {
    %c0_i32 = arith.constant 0 : i32
    %c0_i32_0 = arith.constant 0 : i32
    %c0_i32_1 = arith.constant 0 : i32
    return %c0_i32, %c0_i32_0 : i32, i32
  }
  func.func @transform_4(%arg0: i32, %arg1: i32) -> (i32, i32) {
    %c0_i32 = arith.constant 0 : i32
    %c0_i32_0 = arith.constant 0 : i32
    %c0_i32_1 = arith.constant 0 : i32
    return %c0_i32, %c0_i32_0 : i32, i32
  }
  func.func @transform_5(%arg0: i32, %arg1: i32) -> (i32, i32, i32, i32) {
    %c0_i32 = arith.constant 0 : i32
    %c0_i32_0 = arith.constant 0 : i32
    %c0_i32_1 = arith.constant 0 : i32
    %c0_i32_2 = arith.constant 0 : i32
    return %c0_i32, %c0_i32_0, %c0_i32_1, %arg0 : i32, i32, i32, i32
  }
  func.func @transform_6(%arg0: i32, %arg1: i32) -> (i32, i32, i32, i32) {
    %c0_i32 = arith.constant 0 : i32
    %c0_i32_0 = arith.constant 0 : i32
    %c0_i32_1 = arith.constant 0 : i32
    return %arg1, %c0_i32, %c0_i32_0, %arg0 : i32, i32, i32, i32
  }
  func.func @transform_7(%arg0: i32, %arg1: i32) -> (i32, i32) {
    %c0_i32 = arith.constant 0 : i32
    %c0_i32_0 = arith.constant 0 : i32
    return %c0_i32, %arg0 : i32, i32
  }
  func.func @transform_8(%arg0: i32, %arg1: i32) -> (i32, i32) {
    %c0_i32 = arith.constant 0 : i32
    %c0_i32_0 = arith.constant 0 : i32
    return %c0_i32, %arg0 : i32, i32
  }
}

module attributes {stable_mosaic.version = 11 : i64} {
  func.func @body(%arg0: i32, %arg1: i32, %arg2: memref<1x9x9x512xbf16, #tpu.memory_space<vmem>>, %arg3: memref<3x3x128x128xbf16, #tpu.memory_space<vmem>>, %arg4: memref<128x128xbf16, #tpu.memory_space<vmem>>, %arg5: memref<1x8x8x128xf32, #tpu.memory_space<vmem>>, %arg6: memref<1x128xf32, #tpu.memory_space<vmem>>, %arg7: memref<1x128xf32, #tpu.memory_space<vmem>>, %arg8: memref<1x8x8x128xf32, #tpu.memory_space<vmem>>, %arg9: memref<1x128xf32, #tpu.memory_space<vmem>>, %arg10: memref<1x128xf32, #tpu.memory_space<vmem>>) attributes {dimension_semantics = [#tpu.dimension_semantics<parallel>, #tpu.dimension_semantics<arbitrary>], iteration_bounds = array<i64: 1, 2>, scalar_prefetch = 0 : i64, scratch_operands = 0 : i64, tpu.core_type = #tpu.core_type<tc>, window_params = [{transform_indices = @transform_0, window_bounds = array<i64: 1, 9, 9, 512>}, {transform_indices = @transform_1, window_bounds = array<i64: 3, 3, 128, 128>}, {transform_indices = @transform_2, window_bounds = array<i64: 128, 128>}, {transform_indices = @transform_3, window_bounds = array<i64: 1, 8, 8, 128>}, {transform_indices = @transform_4, window_bounds = array<i64: 1, 128>}, {transform_indices = @transform_5, window_bounds = array<i64: 1, 128>}, {transform_indices = @transform_6, window_bounds = array<i64: 1, 8, 8, 128>}, {transform_indices = @transform_7, window_bounds = array<i64: 1, 128>}, {transform_indices = @transform_8, window_bounds = array<i64: 1, 128>}]} {
    %c0_i32 = arith.constant 0 : i32
    %0 = arith.cmpi eq, %arg1, %c0_i32 : i32
    %1 = arith.extui %0 : i1 to i32
    %c0_i32_0 = arith.constant 0 : i32
    %2 = arith.cmpi ne, %1, %c0_i32_0 : i32
    scf.if %2 {
      %cst_111 = arith.constant 0.000000e+00 : f32
      %98 = vector.broadcast %cst_111 : f32 to vector<1x128xf32>
      %c0_112 = arith.constant 0 : index
      %c0_113 = arith.constant 0 : index
      %99 = vector.load %arg6[%c0_112, %c0_113] : memref<1x128xf32, #tpu.memory_space<vmem>>, vector<1x128xf32>
      tpu.vector_store %arg6[%c0_112, %c0_113], %98 {strides = array<i32>} : memref<1x128xf32, #tpu.memory_space<vmem>>, vector<1x128xf32>,
      %cst_114 = arith.constant 0.000000e+00 : f32
      %100 = vector.broadcast %cst_114 : f32 to vector<1x128xf32>
      %c0_115 = arith.constant 0 : index
      %c0_116 = arith.constant 0 : index
      %101 = vector.load %arg7[%c0_115, %c0_116] : memref<1x128xf32, #tpu.memory_space<vmem>>, vector<1x128xf32>
      tpu.vector_store %arg7[%c0_115, %c0_116], %100 {strides = array<i32>} : memref<1x128xf32, #tpu.memory_space<vmem>>, vector<1x128xf32>,
      %cst_117 = arith.constant 0.000000e+00 : f32
      %102 = vector.broadcast %cst_117 : f32 to vector<1x128xf32>
      %c0_118 = arith.constant 0 : index
      %c0_119 = arith.constant 0 : index
      %103 = vector.load %arg9[%c0_118, %c0_119] : memref<1x128xf32, #tpu.memory_space<vmem>>, vector<1x128xf32>
      tpu.vector_store %arg9[%c0_118, %c0_119], %102 {strides = array<i32>} : memref<1x128xf32, #tpu.memory_space<vmem>>, vector<1x128xf32>,
      %cst_120 = arith.constant 0.000000e+00 : f32
      %104 = vector.broadcast %cst_120 : f32 to vector<1x128xf32>
      %c0_121 = arith.constant 0 : index
      %c0_122 = arith.constant 0 : index
      %105 = vector.load %arg10[%c0_121, %c0_122] : memref<1x128xf32, #tpu.memory_space<vmem>>, vector<1x128xf32>
      tpu.vector_store %arg10[%c0_121, %c0_122], %104 {strides = array<i32>} : memref<1x128xf32, #tpu.memory_space<vmem>>, vector<1x128xf32>,
    } else {
    }
    %cst = arith.constant 0.000000e+00 : f32
    %3 = vector.broadcast %cst : f32 to vector<64x128xf32>
    %c0 = arith.constant 0 : index
    %c0_1 = arith.constant 0 : index
    %c0_2 = arith.constant 0 : index
    %c0_3 = arith.constant 0 : index
    %4 = vector.load %arg2[%c0, %c0_1, %c0_2, %c0_3] : memref<1x9x9x512xbf16, #tpu.memory_space<vmem>>, vector<1x8x8x128xbf16>
    %5 = vector.shape_cast %4 : vector<1x8x8x128xbf16> to vector<8x8x128xbf16>
    %6 = vector.shape_cast %5 : vector<8x8x128xbf16> to vector<64x128xbf16>
    %c0_4 = arith.constant 0 : index
    %c0_5 = arith.constant 0 : index
    %c0_6 = arith.constant 0 : index
    %c0_7 = arith.constant 0 : index
    %7 = vector.load %arg3[%c0_4, %c0_5, %c0_6, %c0_7] : memref<3x3x128x128xbf16, #tpu.memory_space<vmem>>, vector<1x1x128x128xbf16>
    %8 = vector.shape_cast %7 : vector<1x1x128x128xbf16> to vector<128x128xbf16>
    %cst_8 = arith.constant dense<0.000000e+00> : vector<64x128xf32>
    %9 = tpu.matmul %6, %8, %cst_8 {dimension_numbers = #tpu.dot_dimension_numbers<[1], [0], [0], [1], [0, 0, 1, 1], [], []>} : vector<64x128xbf16>, vector<128x128xbf16>, vector<64x128xf32> -> vector<64x128xf32>
    %10 = arith.addf %3, %9 : vector<64x128xf32>
    %c0_9 = arith.constant 0 : index
    %c0_10 = arith.constant 0 : index
    %c0_11 = arith.constant 0 : index
    %c128 = arith.constant 128 : index
    %11 = vector.load %arg2[%c0_9, %c0_10, %c0_11, %c128] : memref<1x9x9x512xbf16, #tpu.memory_space<vmem>>, vector<1x8x8x128xbf16>
    %12 = vector.shape_cast %11 : vector<1x8x8x128xbf16> to vector<8x8x128xbf16>
    %13 = vector.shape_cast %12 : vector<8x8x128xbf16> to vector<64x128xbf16>
    %c0_12 = arith.constant 0 : index
    %c1 = arith.constant 1 : index
    %c0_13 = arith.constant 0 : index
    %c0_14 = arith.constant 0 : index
    %14 = vector.load %arg3[%c0_12, %c1, %c0_13, %c0_14] : memref<3x3x128x128xbf16, #tpu.memory_space<vmem>>, vector<1x1x128x128xbf16>
    %15 = vector.shape_cast %14 : vector<1x1x128x128xbf16> to vector<128x128xbf16>
    %cst_15 = arith.constant dense<0.000000e+00> : vector<64x128xf32>
    %16 = tpu.matmul %13, %15, %cst_15 {dimension_numbers = #tpu.dot_dimension_numbers<[1], [0], [0], [1], [0, 0, 1, 1], [], []>} : vector<64x128xbf16>, vector<128x128xbf16>, vector<64x128xf32> -> vector<64x128xf32>
    %17 = arith.addf %10, %16 : vector<64x128xf32>
    %c0_16 = arith.constant 0 : index
    %c0_17 = arith.constant 0 : index
    %c1_18 = arith.constant 1 : index
    %c0_19 = arith.constant 0 : index
    %18 = vector.load %arg2[%c0_16, %c0_17, %c1_18, %c0_19] : memref<1x9x9x512xbf16, #tpu.memory_space<vmem>>, vector<1x8x8x128xbf16>
    %19 = vector.shape_cast %18 : vector<1x8x8x128xbf16> to vector<8x8x128xbf16>
    %20 = vector.shape_cast %19 : vector<8x8x128xbf16> to vector<64x128xbf16>
    %c0_20 = arith.constant 0 : index
    %c2 = arith.constant 2 : index
    %c0_21 = arith.constant 0 : index
    %c0_22 = arith.constant 0 : index
    %21 = vector.load %arg3[%c0_20, %c2, %c0_21, %c0_22] : memref<3x3x128x128xbf16, #tpu.memory_space<vmem>>, vector<1x1x128x128xbf16>
    %22 = vector.shape_cast %21 : vector<1x1x128x128xbf16> to vector<128x128xbf16>
    %cst_23 = arith.constant dense<0.000000e+00> : vector<64x128xf32>
    %23 = tpu.matmul %20, %22, %cst_23 {dimension_numbers = #tpu.dot_dimension_numbers<[1], [0], [0], [1], [0, 0, 1, 1], [], []>} : vector<64x128xbf16>, vector<128x128xbf16>, vector<64x128xf32> -> vector<64x128xf32>
    %24 = arith.addf %17, %23 : vector<64x128xf32>
    %c0_24 = arith.constant 0 : index
    %c0_25 = arith.constant 0 : index
    %c0_26 = arith.constant 0 : index
    %c256 = arith.constant 256 : index
    %25 = vector.load %arg2[%c0_24, %c0_25, %c0_26, %c256] : memref<1x9x9x512xbf16, #tpu.memory_space<vmem>>, vector<1x8x8x128xbf16>
    %26 = vector.shape_cast %25 : vector<1x8x8x128xbf16> to vector<8x8x128xbf16>
    %27 = vector.shape_cast %26 : vector<8x8x128xbf16> to vector<64x128xbf16>
    %c1_27 = arith.constant 1 : index
    %c0_28 = arith.constant 0 : index
    %c0_29 = arith.constant 0 : index
    %c0_30 = arith.constant 0 : index
    %28 = vector.load %arg3[%c1_27, %c0_28, %c0_29, %c0_30] : memref<3x3x128x128xbf16, #tpu.memory_space<vmem>>, vector<1x1x128x128xbf16>
    %29 = vector.shape_cast %28 : vector<1x1x128x128xbf16> to vector<128x128xbf16>
    %cst_31 = arith.constant dense<0.000000e+00> : vector<64x128xf32>
    %30 = tpu.matmul %27, %29, %cst_31 {dimension_numbers = #tpu.dot_dimension_numbers<[1], [0], [0], [1], [0, 0, 1, 1], [], []>} : vector<64x128xbf16>, vector<128x128xbf16>, vector<64x128xf32> -> vector<64x128xf32>
    %31 = arith.addf %24, %30 : vector<64x128xf32>
    %c0_32 = arith.constant 0 : index
    %c0_33 = arith.constant 0 : index
    %c0_34 = arith.constant 0 : index
    %c384 = arith.constant 384 : index
    %32 = vector.load %arg2[%c0_32, %c0_33, %c0_34, %c384] : memref<1x9x9x512xbf16, #tpu.memory_space<vmem>>, vector<1x8x8x128xbf16>
    %33 = vector.shape_cast %32 : vector<1x8x8x128xbf16> to vector<8x8x128xbf16>
    %34 = vector.shape_cast %33 : vector<8x8x128xbf16> to vector<64x128xbf16>
    %c1_35 = arith.constant 1 : index
    %c1_36 = arith.constant 1 : index
    %c0_37 = arith.constant 0 : index
    %c0_38 = arith.constant 0 : index
    %35 = vector.load %arg3[%c1_35, %c1_36, %c0_37, %c0_38] : memref<3x3x128x128xbf16, #tpu.memory_space<vmem>>, vector<1x1x128x128xbf16>
    %36 = vector.shape_cast %35 : vector<1x1x128x128xbf16> to vector<128x128xbf16>
    %cst_39 = arith.constant dense<0.000000e+00> : vector<64x128xf32>
    %37 = tpu.matmul %34, %36, %cst_39 {dimension_numbers = #tpu.dot_dimension_numbers<[1], [0], [0], [1], [0, 0, 1, 1], [], []>} : vector<64x128xbf16>, vector<128x128xbf16>, vector<64x128xf32> -> vector<64x128xf32>
    %38 = arith.addf %31, %37 : vector<64x128xf32>
    %c0_40 = arith.constant 0 : index
    %c0_41 = arith.constant 0 : index
    %c1_42 = arith.constant 1 : index
    %c256_43 = arith.constant 256 : index
    %39 = vector.load %arg2[%c0_40, %c0_41, %c1_42, %c256_43] : memref<1x9x9x512xbf16, #tpu.memory_space<vmem>>, vector<1x8x8x128xbf16>
    %40 = vector.shape_cast %39 : vector<1x8x8x128xbf16> to vector<8x8x128xbf16>
    %41 = vector.shape_cast %40 : vector<8x8x128xbf16> to vector<64x128xbf16>
    %c1_44 = arith.constant 1 : index
    %c2_45 = arith.constant 2 : index
    %c0_46 = arith.constant 0 : index
    %c0_47 = arith.constant 0 : index
    %42 = vector.load %arg3[%c1_44, %c2_45, %c0_46, %c0_47] : memref<3x3x128x128xbf16, #tpu.memory_space<vmem>>, vector<1x1x128x128xbf16>
    %43 = vector.shape_cast %42 : vector<1x1x128x128xbf16> to vector<128x128xbf16>
    %cst_48 = arith.constant dense<0.000000e+00> : vector<64x128xf32>
    %44 = tpu.matmul %41, %43, %cst_48 {dimension_numbers = #tpu.dot_dimension_numbers<[1], [0], [0], [1], [0, 0, 1, 1], [], []>} : vector<64x128xbf16>, vector<128x128xbf16>, vector<64x128xf32> -> vector<64x128xf32>
    %45 = arith.addf %38, %44 : vector<64x128xf32>
    %c0_49 = arith.constant 0 : index
    %c1_50 = arith.constant 1 : index
    %c0_51 = arith.constant 0 : index
    %c0_52 = arith.constant 0 : index
    %46 = vector.load %arg2[%c0_49, %c1_50, %c0_51, %c0_52] : memref<1x9x9x512xbf16, #tpu.memory_space<vmem>>, vector<1x8x8x128xbf16>
    %47 = vector.shape_cast %46 : vector<1x8x8x128xbf16> to vector<8x8x128xbf16>
    %48 = vector.shape_cast %47 : vector<8x8x128xbf16> to vector<64x128xbf16>
    %c2_53 = arith.constant 2 : index
    %c0_54 = arith.constant 0 : index
    %c0_55 = arith.constant 0 : index
    %c0_56 = arith.constant 0 : index
    %49 = vector.load %arg3[%c2_53, %c0_54, %c0_55, %c0_56] : memref<3x3x128x128xbf16, #tpu.memory_space<vmem>>, vector<1x1x128x128xbf16>
    %50 = vector.shape_cast %49 : vector<1x1x128x128xbf16> to vector<128x128xbf16>
    %cst_57 = arith.constant dense<0.000000e+00> : vector<64x128xf32>
    %51 = tpu.matmul %48, %50, %cst_57 {dimension_numbers = #tpu.dot_dimension_numbers<[1], [0], [0], [1], [0, 0, 1, 1], [], []>} : vector<64x128xbf16>, vector<128x128xbf16>, vector<64x128xf32> -> vector<64x128xf32>
    %52 = arith.addf %45, %51 : vector<64x128xf32>
    %c0_58 = arith.constant 0 : index
    %c1_59 = arith.constant 1 : index
    %c0_60 = arith.constant 0 : index
    %c128_61 = arith.constant 128 : index
    %53 = vector.load %arg2[%c0_58, %c1_59, %c0_60, %c128_61] : memref<1x9x9x512xbf16, #tpu.memory_space<vmem>>, vector<1x8x8x128xbf16>
    %54 = vector.shape_cast %53 : vector<1x8x8x128xbf16> to vector<8x8x128xbf16>
    %55 = vector.shape_cast %54 : vector<8x8x128xbf16> to vector<64x128xbf16>
    %c2_62 = arith.constant 2 : index
    %c1_63 = arith.constant 1 : index
    %c0_64 = arith.constant 0 : index
    %c0_65 = arith.constant 0 : index
    %56 = vector.load %arg3[%c2_62, %c1_63, %c0_64, %c0_65] : memref<3x3x128x128xbf16, #tpu.memory_space<vmem>>, vector<1x1x128x128xbf16>
    %57 = vector.shape_cast %56 : vector<1x1x128x128xbf16> to vector<128x128xbf16>
    %cst_66 = arith.constant dense<0.000000e+00> : vector<64x128xf32>
    %58 = tpu.matmul %55, %57, %cst_66 {dimension_numbers = #tpu.dot_dimension_numbers<[1], [0], [0], [1], [0, 0, 1, 1], [], []>} : vector<64x128xbf16>, vector<128x128xbf16>, vector<64x128xf32> -> vector<64x128xf32>
    %59 = arith.addf %52, %58 : vector<64x128xf32>
    %c0_67 = arith.constant 0 : index
    %c1_68 = arith.constant 1 : index
    %c1_69 = arith.constant 1 : index
    %c0_70 = arith.constant 0 : index
    %60 = vector.load %arg2[%c0_67, %c1_68, %c1_69, %c0_70] : memref<1x9x9x512xbf16, #tpu.memory_space<vmem>>, vector<1x8x8x128xbf16>
    %61 = vector.shape_cast %60 : vector<1x8x8x128xbf16> to vector<8x8x128xbf16>
    %62 = vector.shape_cast %61 : vector<8x8x128xbf16> to vector<64x128xbf16>
    %c2_71 = arith.constant 2 : index
    %c2_72 = arith.constant 2 : index
    %c0_73 = arith.constant 0 : index
    %c0_74 = arith.constant 0 : index
    %63 = vector.load %arg3[%c2_71, %c2_72, %c0_73, %c0_74] : memref<3x3x128x128xbf16, #tpu.memory_space<vmem>>, vector<1x1x128x128xbf16>
    %64 = vector.shape_cast %63 : vector<1x1x128x128xbf16> to vector<128x128xbf16>
    %cst_75 = arith.constant dense<0.000000e+00> : vector<64x128xf32>
    %65 = tpu.matmul %62, %64, %cst_75 {dimension_numbers = #tpu.dot_dimension_numbers<[1], [0], [0], [1], [0, 0, 1, 1], [], []>} : vector<64x128xbf16>, vector<128x128xbf16>, vector<64x128xf32> -> vector<64x128xf32>
    %66 = arith.addf %59, %65 : vector<64x128xf32>
    %67 = vector.shape_cast %66 : vector<64x128xf32> to vector<1x8x8x128xf32>
    %c0_76 = arith.constant 0 : index
    %c0_77 = arith.constant 0 : index
    %c0_78 = arith.constant 0 : index
    %c0_79 = arith.constant 0 : index
    %68 = vector.load %arg5[%c0_76, %c0_77, %c0_78, %c0_79] : memref<1x8x8x128xf32, #tpu.memory_space<vmem>>, vector<1x8x8x128xf32>
    tpu.vector_store %arg5[%c0_76, %c0_77, %c0_78, %c0_79], %67 {strides = array<i32>} : memref<1x8x8x128xf32, #tpu.memory_space<vmem>>, vector<1x8x8x128xf32>,
    %c0_80 = arith.constant 0 : index
    %c0_81 = arith.constant 0 : index
    %69 = vector.load %arg6[%c0_80, %c0_81] : memref<1x128xf32, #tpu.memory_space<vmem>>, vector<1x128xf32>
    %cst_82 = arith.constant dense<0.000000e+00> : vector<128xf32>
    %70 = vector.multi_reduction <add>, %66, %cst_82 [0] : vector<64x128xf32> to vector<128xf32>
    %71 = vector.shape_cast %70 : vector<128xf32> to vector<1x128xf32>
    %72 = arith.addf %69, %71 : vector<1x128xf32>
    %c0_83 = arith.constant 0 : index
    %c0_84 = arith.constant 0 : index
    %73 = vector.load %arg6[%c0_83, %c0_84] : memref<1x128xf32, #tpu.memory_space<vmem>>, vector<1x128xf32>
    tpu.vector_store %arg6[%c0_83, %c0_84], %72 {strides = array<i32>} : memref<1x128xf32, #tpu.memory_space<vmem>>, vector<1x128xf32>,
    %c0_85 = arith.constant 0 : index
    %c0_86 = arith.constant 0 : index
    %74 = vector.load %arg7[%c0_85, %c0_86] : memref<1x128xf32, #tpu.memory_space<vmem>>, vector<1x128xf32>
    %75 = arith.mulf %66, %66 : vector<64x128xf32>
    %cst_87 = arith.constant dense<0.000000e+00> : vector<128xf32>
    %76 = vector.multi_reduction <add>, %75, %cst_87 [0] : vector<64x128xf32> to vector<128xf32>
    %77 = vector.shape_cast %76 : vector<128xf32> to vector<1x128xf32>
    %78 = arith.addf %74, %77 : vector<1x128xf32>
    %c0_88 = arith.constant 0 : index
    %c0_89 = arith.constant 0 : index
    %79 = vector.load %arg7[%c0_88, %c0_89] : memref<1x128xf32, #tpu.memory_space<vmem>>, vector<1x128xf32>
    tpu.vector_store %arg7[%c0_88, %c0_89], %78 {strides = array<i32>} : memref<1x128xf32, #tpu.memory_space<vmem>>, vector<1x128xf32>,
    %c0_90 = arith.constant 0 : index
    %c0_91 = arith.constant 0 : index
    %c0_92 = arith.constant 0 : index
    %c384_93 = arith.constant 384 : index
    %80 = vector.load %arg2[%c0_90, %c0_91, %c0_92, %c384_93] : memref<1x9x9x512xbf16, #tpu.memory_space<vmem>>, vector<1x8x8x128xbf16>
    %81 = vector.shape_cast %80 : vector<1x8x8x128xbf16> to vector<8x8x128xbf16>
    %82 = vector.shape_cast %81 : vector<8x8x128xbf16> to vector<64x128xbf16>
    %c0_94 = arith.constant 0 : index
    %c0_95 = arith.constant 0 : index
    %83 = vector.load %arg4[%c0_94, %c0_95] : memref<128x128xbf16, #tpu.memory_space<vmem>>, vector<128x128xbf16>
    %cst_96 = arith.constant dense<0.000000e+00> : vector<64x128xf32>
    %84 = tpu.matmul %82, %83, %cst_96 {dimension_numbers = #tpu.dot_dimension_numbers<[1], [0], [0], [1], [0, 0, 1, 1], [], []>} : vector<64x128xbf16>, vector<128x128xbf16>, vector<64x128xf32> -> vector<64x128xf32>
    %85 = vector.shape_cast %84 : vector<64x128xf32> to vector<1x8x8x128xf32>
    %c0_97 = arith.constant 0 : index
    %c0_98 = arith.constant 0 : index
    %c0_99 = arith.constant 0 : index
    %c0_100 = arith.constant 0 : index
    %86 = vector.load %arg8[%c0_97, %c0_98, %c0_99, %c0_100] : memref<1x8x8x128xf32, #tpu.memory_space<vmem>>, vector<1x8x8x128xf32>
    tpu.vector_store %arg8[%c0_97, %c0_98, %c0_99, %c0_100], %85 {strides = array<i32>} : memref<1x8x8x128xf32, #tpu.memory_space<vmem>>, vector<1x8x8x128xf32>,
    %c0_101 = arith.constant 0 : index
    %c0_102 = arith.constant 0 : index
    %87 = vector.load %arg9[%c0_101, %c0_102] : memref<1x128xf32, #tpu.memory_space<vmem>>, vector<1x128xf32>
    %cst_103 = arith.constant dense<0.000000e+00> : vector<128xf32>
    %88 = vector.multi_reduction <add>, %84, %cst_103 [0] : vector<64x128xf32> to vector<128xf32>
    %89 = vector.shape_cast %88 : vector<128xf32> to vector<1x128xf32>
    %90 = arith.addf %87, %89 : vector<1x128xf32>
    %c0_104 = arith.constant 0 : index
    %c0_105 = arith.constant 0 : index
    %91 = vector.load %arg9[%c0_104, %c0_105] : memref<1x128xf32, #tpu.memory_space<vmem>>, vector<1x128xf32>
    tpu.vector_store %arg9[%c0_104, %c0_105], %90 {strides = array<i32>} : memref<1x128xf32, #tpu.memory_space<vmem>>, vector<1x128xf32>,
    %c0_106 = arith.constant 0 : index
    %c0_107 = arith.constant 0 : index
    %92 = vector.load %arg10[%c0_106, %c0_107] : memref<1x128xf32, #tpu.memory_space<vmem>>, vector<1x128xf32>
    %93 = arith.mulf %84, %84 : vector<64x128xf32>
    %cst_108 = arith.constant dense<0.000000e+00> : vector<128xf32>
    %94 = vector.multi_reduction <add>, %93, %cst_108 [0] : vector<64x128xf32> to vector<128xf32>
    %95 = vector.shape_cast %94 : vector<128xf32> to vector<1x128xf32>
    %96 = arith.addf %92, %95 : vector<1x128xf32>
    %c0_109 = arith.constant 0 : index
    %c0_110 = arith.constant 0 : index
    %97 = vector.load %arg10[%c0_109, %c0_110] : memref<1x128xf32, #tpu.memory_space<vmem>>, vector<1x128xf32>
    tpu.vector_store %arg10[%c0_109, %c0_110], %96 {strides = array<i32>} : memref<1x128xf32, #tpu.memory_space<vmem>>, vector<1x128xf32>,
    return
  }
  func.func @transform_0(%arg0: i32, %arg1: i32) -> (i32, i32, i32, i32) {
    %c0_i32 = arith.constant 0 : i32
    %c0_i32_0 = arith.constant 0 : i32
    %c0_i32_1 = arith.constant 0 : i32
    %c0_i32_2 = arith.constant 0 : i32
    return %arg1, %c0_i32, %c0_i32_0, %c0_i32_1 : i32, i32, i32, i32
  }
  func.func @transform_1(%arg0: i32, %arg1: i32) -> (i32, i32, i32, i32) {
    %c0_i32 = arith.constant 0 : i32
    %c0_i32_0 = arith.constant 0 : i32
    %c0_i32_1 = arith.constant 0 : i32
    %c0_i32_2 = arith.constant 0 : i32
    return %c0_i32, %c0_i32_0, %c0_i32_1, %arg0 : i32, i32, i32, i32
  }
  func.func @transform_2(%arg0: i32, %arg1: i32) -> (i32, i32) {
    %c0_i32 = arith.constant 0 : i32
    %c0_i32_0 = arith.constant 0 : i32
    return %c0_i32, %arg0 : i32, i32
  }
  func.func @transform_3(%arg0: i32, %arg1: i32) -> (i32, i32, i32, i32) {
    %c0_i32 = arith.constant 0 : i32
    %c0_i32_0 = arith.constant 0 : i32
    %c0_i32_1 = arith.constant 0 : i32
    return %arg1, %c0_i32, %c0_i32_0, %arg0 : i32, i32, i32, i32
  }
  func.func @transform_4(%arg0: i32, %arg1: i32) -> (i32, i32) {
    %c0_i32 = arith.constant 0 : i32
    %c0_i32_0 = arith.constant 0 : i32
    return %c0_i32, %arg0 : i32, i32
  }
  func.func @transform_5(%arg0: i32, %arg1: i32) -> (i32, i32) {
    %c0_i32 = arith.constant 0 : i32
    %c0_i32_0 = arith.constant 0 : i32
    return %c0_i32, %arg0 : i32, i32
  }
  func.func @transform_6(%arg0: i32, %arg1: i32) -> (i32, i32, i32, i32) {
    %c0_i32 = arith.constant 0 : i32
    %c0_i32_0 = arith.constant 0 : i32
    %c0_i32_1 = arith.constant 0 : i32
    return %arg1, %c0_i32, %c0_i32_0, %arg0 : i32, i32, i32, i32
  }
  func.func @transform_7(%arg0: i32, %arg1: i32) -> (i32, i32) {
    %c0_i32 = arith.constant 0 : i32
    %c0_i32_0 = arith.constant 0 : i32
    return %c0_i32, %arg0 : i32, i32
  }
  func.func @transform_8(%arg0: i32, %arg1: i32) -> (i32, i32) {
    %c0_i32 = arith.constant 0 : i32
    %c0_i32_0 = arith.constant 0 : i32
    return %c0_i32, %arg0 : i32, i32
  }
}

module attributes {stable_mosaic.version = 11 : i64} {
  func.func @body(%arg0: i32, %arg1: i32, %arg2: memref<1x8x8x128xf32, #tpu.memory_space<vmem>>, %arg3: memref<1x128xf32, #tpu.memory_space<vmem>>, %arg4: memref<1x128xf32, #tpu.memory_space<vmem>>, %arg5: memref<1x128xf32, #tpu.memory_space<vmem>>, %arg6: memref<1x128xf32, #tpu.memory_space<vmem>>, %arg7: memref<1x8x8x128xf32, #tpu.memory_space<vmem>>, %arg8: memref<1x128xf32, #tpu.memory_space<vmem>>, %arg9: memref<1x128xf32, #tpu.memory_space<vmem>>, %arg10: memref<1x128xf32, #tpu.memory_space<vmem>>, %arg11: memref<1x128xf32, #tpu.memory_space<vmem>>, %arg12: memref<1x8x8x128xf32, #tpu.memory_space<vmem>>) attributes {dimension_semantics = [#tpu.dimension_semantics<parallel>, #tpu.dimension_semantics<parallel>], iteration_bounds = array<i64: 1, 2>, scalar_prefetch = 0 : i64, scratch_operands = 0 : i64, tpu.core_type = #tpu.core_type<tc>, window_params = [{transform_indices = @transform_0, window_bounds = array<i64: 1, 8, 8, 128>}, {transform_indices = @transform_1, window_bounds = array<i64: 1, 128>}, {transform_indices = @transform_2, window_bounds = array<i64: 1, 128>}, {transform_indices = @transform_3, window_bounds = array<i64: 1, 128>}, {transform_indices = @transform_4, window_bounds = array<i64: 1, 128>}, {transform_indices = @transform_5, window_bounds = array<i64: 1, 8, 8, 128>}, {transform_indices = @transform_6, window_bounds = array<i64: 1, 128>}, {transform_indices = @transform_7, window_bounds = array<i64: 1, 128>}, {transform_indices = @transform_8, window_bounds = array<i64: 1, 128>}, {transform_indices = @transform_9, window_bounds = array<i64: 1, 128>}, {transform_indices = @transform_10, window_bounds = array<i64: 1, 8, 8, 128>}]} {
    %c0 = arith.constant 0 : index
    %c0_0 = arith.constant 0 : index
    %c0_1 = arith.constant 0 : index
    %c0_2 = arith.constant 0 : index
    %0 = vector.load %arg2[%c0, %c0_0, %c0_1, %c0_2] : memref<1x8x8x128xf32, #tpu.memory_space<vmem>>, vector<1x8x8x128xf32>
    %c0_3 = arith.constant 0 : index
    %c0_4 = arith.constant 0 : index
    %1 = vector.load %arg3[%c0_3, %c0_4] : memref<1x128xf32, #tpu.memory_space<vmem>>, vector<1x128xf32>
    %cst = arith.constant 7.812500e-03 : f32
    %2 = vector.broadcast %cst : f32 to vector<1x128xf32>
    %3 = arith.mulf %1, %2 : vector<1x128xf32>
    %c0_5 = arith.constant 0 : index
    %c0_6 = arith.constant 0 : index
    %4 = vector.load %arg4[%c0_5, %c0_6] : memref<1x128xf32, #tpu.memory_space<vmem>>, vector<1x128xf32>
    %cst_7 = arith.constant 7.812500e-03 : f32
    %5 = vector.broadcast %cst_7 : f32 to vector<1x128xf32>
    %6 = arith.mulf %4, %5 : vector<1x128xf32>
    %7 = arith.mulf %3, %3 : vector<1x128xf32>
    %8 = arith.subf %6, %7 : vector<1x128xf32>
    %c0_8 = arith.constant 0 : index
    %c0_9 = arith.constant 0 : index
    %9 = vector.load %arg5[%c0_8, %c0_9] : memref<1x128xf32, #tpu.memory_space<vmem>>, vector<1x128xf32>
    %cst_10 = arith.constant 9.99999974E-6 : f32
    %10 = vector.broadcast %cst_10 : f32 to vector<1x128xf32>
    %11 = arith.addf %8, %10 : vector<1x128xf32>
    %12 = math.rsqrt %11 : vector<1x128xf32>
    %13 = arith.mulf %9, %12 : vector<1x128xf32>
    %c0_11 = arith.constant 0 : index
    %c0_12 = arith.constant 0 : index
    %14 = vector.load %arg6[%c0_11, %c0_12] : memref<1x128xf32, #tpu.memory_space<vmem>>, vector<1x128xf32>
    %15 = arith.mulf %3, %13 : vector<1x128xf32>
    %16 = arith.subf %14, %15 : vector<1x128xf32>
    %17 = vector.shape_cast %13 : vector<1x128xf32> to vector<1x1x1x128xf32>
    %18 = vector.broadcast %17 : vector<1x1x1x128xf32> to vector<1x8x8x128xf32>
    %19 = arith.mulf %0, %18 : vector<1x8x8x128xf32>
    %20 = vector.shape_cast %16 : vector<1x128xf32> to vector<1x1x1x128xf32>
    %21 = vector.broadcast %20 : vector<1x1x1x128xf32> to vector<1x8x8x128xf32>
    %22 = arith.addf %19, %21 : vector<1x8x8x128xf32>
    %c0_13 = arith.constant 0 : index
    %c0_14 = arith.constant 0 : index
    %c0_15 = arith.constant 0 : index
    %c0_16 = arith.constant 0 : index
    %23 = vector.load %arg7[%c0_13, %c0_14, %c0_15, %c0_16] : memref<1x8x8x128xf32, #tpu.memory_space<vmem>>, vector<1x8x8x128xf32>
    %c0_17 = arith.constant 0 : index
    %c0_18 = arith.constant 0 : index
    %24 = vector.load %arg8[%c0_17, %c0_18] : memref<1x128xf32, #tpu.memory_space<vmem>>, vector<1x128xf32>
    %cst_19 = arith.constant 7.812500e-03 : f32
    %25 = vector.broadcast %cst_19 : f32 to vector<1x128xf32>
    %26 = arith.mulf %24, %25 : vector<1x128xf32>
    %c0_20 = arith.constant 0 : index
    %c0_21 = arith.constant 0 : index
    %27 = vector.load %arg9[%c0_20, %c0_21] : memref<1x128xf32, #tpu.memory_space<vmem>>, vector<1x128xf32>
    %cst_22 = arith.constant 7.812500e-03 : f32
    %28 = vector.broadcast %cst_22 : f32 to vector<1x128xf32>
    %29 = arith.mulf %27, %28 : vector<1x128xf32>
    %30 = arith.mulf %26, %26 : vector<1x128xf32>
    %31 = arith.subf %29, %30 : vector<1x128xf32>
    %c0_23 = arith.constant 0 : index
    %c0_24 = arith.constant 0 : index
    %32 = vector.load %arg10[%c0_23, %c0_24] : memref<1x128xf32, #tpu.memory_space<vmem>>, vector<1x128xf32>
    %cst_25 = arith.constant 9.99999974E-6 : f32
    %33 = vector.broadcast %cst_25 : f32 to vector<1x128xf32>
    %34 = arith.addf %31, %33 : vector<1x128xf32>
    %35 = math.rsqrt %34 : vector<1x128xf32>
    %36 = arith.mulf %32, %35 : vector<1x128xf32>
    %c0_26 = arith.constant 0 : index
    %c0_27 = arith.constant 0 : index
    %37 = vector.load %arg11[%c0_26, %c0_27] : memref<1x128xf32, #tpu.memory_space<vmem>>, vector<1x128xf32>
    %38 = arith.mulf %26, %36 : vector<1x128xf32>
    %39 = arith.subf %37, %38 : vector<1x128xf32>
    %40 = vector.shape_cast %36 : vector<1x128xf32> to vector<1x1x1x128xf32>
    %41 = vector.broadcast %40 : vector<1x1x1x128xf32> to vector<1x8x8x128xf32>
    %42 = arith.mulf %23, %41 : vector<1x8x8x128xf32>
    %43 = vector.shape_cast %39 : vector<1x128xf32> to vector<1x1x1x128xf32>
    %44 = vector.broadcast %43 : vector<1x1x1x128xf32> to vector<1x8x8x128xf32>
    %45 = arith.addf %42, %44 : vector<1x8x8x128xf32>
    %46 = arith.addf %22, %45 : vector<1x8x8x128xf32>
    %cst_28 = arith.constant 0.000000e+00 : f32
    %47 = vector.broadcast %cst_28 : f32 to vector<1x8x8x128xf32>
    %48 = arith.maximumf %46, %47 : vector<1x8x8x128xf32>
    %c0_29 = arith.constant 0 : index
    %c0_30 = arith.constant 0 : index
    %c0_31 = arith.constant 0 : index
    %c0_32 = arith.constant 0 : index
    %49 = vector.load %arg12[%c0_29, %c0_30, %c0_31, %c0_32] : memref<1x8x8x128xf32, #tpu.memory_space<vmem>>, vector<1x8x8x128xf32>
    tpu.vector_store %arg12[%c0_29, %c0_30, %c0_31, %c0_32], %48 {strides = array<i32>} : memref<1x8x8x128xf32, #tpu.memory_space<vmem>>, vector<1x8x8x128xf32>,
    return
  }
  func.func @transform_0(%arg0: i32, %arg1: i32) -> (i32, i32, i32, i32) {
    %c0_i32 = arith.constant 0 : i32
    %c0_i32_0 = arith.constant 0 : i32
    %c0_i32_1 = arith.constant 0 : i32
    return %arg1, %c0_i32, %c0_i32_0, %arg0 : i32, i32, i32, i32
  }
  func.func @transform_1(%arg0: i32, %arg1: i32) -> (i32, i32) {
    %c0_i32 = arith.constant 0 : i32
    %c0_i32_0 = arith.constant 0 : i32
    return %c0_i32, %arg0 : i32, i32
  }
  func.func @transform_2(%arg0: i32, %arg1: i32) -> (i32, i32) {
    %c0_i32 = arith.constant 0 : i32
    %c0_i32_0 = arith.constant 0 : i32
    return %c0_i32, %arg0 : i32, i32
  }
  func.func @transform_3(%arg0: i32, %arg1: i32) -> (i32, i32) {
    %c0_i32 = arith.constant 0 : i32
    %c0_i32_0 = arith.constant 0 : i32
    return %c0_i32, %arg0 : i32, i32
  }
  func.func @transform_4(%arg0: i32, %arg1: i32) -> (i32, i32) {
    %c0_i32 = arith.constant 0 : i32
    %c0_i32_0 = arith.constant 0 : i32
    return %c0_i32, %arg0 : i32, i32
  }
  func.func @transform_5(%arg0: i32, %arg1: i32) -> (i32, i32, i32, i32) {
    %c0_i32 = arith.constant 0 : i32
    %c0_i32_0 = arith.constant 0 : i32
    %c0_i32_1 = arith.constant 0 : i32
    return %arg1, %c0_i32, %c0_i32_0, %arg0 : i32, i32, i32, i32
  }
  func.func @transform_6(%arg0: i32, %arg1: i32) -> (i32, i32) {
    %c0_i32 = arith.constant 0 : i32
    %c0_i32_0 = arith.constant 0 : i32
    return %c0_i32, %arg0 : i32, i32
  }
  func.func @transform_7(%arg0: i32, %arg1: i32) -> (i32, i32) {
    %c0_i32 = arith.constant 0 : i32
    %c0_i32_0 = arith.constant 0 : i32
    return %c0_i32, %arg0 : i32, i32
  }
  func.func @transform_8(%arg0: i32, %arg1: i32) -> (i32, i32) {
    %c0_i32 = arith.constant 0 : i32
    %c0_i32_0 = arith.constant 0 : i32
    return %c0_i32, %arg0 : i32, i32
  }
  func.func @transform_9(%arg0: i32, %arg1: i32) -> (i32, i32) {
    %c0_i32 = arith.constant 0 : i32
    %c0_i32_0 = arith.constant 0 : i32
    return %c0_i32, %arg0 : i32, i32
  }
  func.func @transform_10(%arg0: i32, %arg1: i32) -> (i32, i32, i32, i32) {
    %c0_i32 = arith.constant 0 : i32
    %c0_i32_0 = arith.constant 0 : i32
    %c0_i32_1 = arith.constant 0 : i32
    return %arg1, %c0_i32, %c0_i32_0, %arg0 : i32, i32, i32, i32
  }
}

</mosaic_0001>

<bundles_post_ra>
// kernel: basic_block_forward.5
= control target key start
LH: loop header
LB: loop body
LE: loop exit
PB: predicated region body
PF: predicated region fallthrough
CT: control target
= control target key end

     0   :  { %s985_s13 = smov 0   ;;  %s987_s14 = smov 0   ;;  %s1080_s0 = inlined_call_operand.vmem [shape: f32[2,8,8,128], index: 0, kind: input, shape index: {}]   ;;  %s1081_s1 = inlined_call_operand.vmem [shape: f32[1,128], index: 1, kind: input, shape index: {}]   ;;  %s1082_s2 = inlined_call_operand.vmem [shape: f32[1,128], index: 2, kind: input, shape index: {}]   ;;  %s1083_s3 = inlined_call_operand.vmem [shape: f32[1,128], index: 3, kind: input, shape index: {}]   ;;  %s1084_s4 = inlined_call_operand.vmem [shape: f32[1,128], index: 4, kind: input, shape index: {}]   ;;  %s1085_s5 = inlined_call_operand.vmem [shape: f32[2,8,8,128], index: 5, kind: input, shape index: {}]   ;;  %s1086_s6 = inlined_call_operand.vmem [shape: f32[1,128], index: 6, kind: input, shape index: {}]   ;;  %s1087_s7 = inlined_call_operand.vmem [shape: f32[1,128], index: 7, kind: input, shape index: {}]   ;;  %s1088_s8 = inlined_call_operand.vmem [shape: f32[1,128], index: 8, kind: input, shape index: {}]   ;;  %s1089_s9 = inlined_call_operand.vmem [shape: f32[1,128], index: 9, kind: input, shape index: {}]   ;;  %s1090_s10 = inlined_call_operand.vmem [shape: f32[2,8,8,128], index: 10, kind: output, shape index: {}]  }
   0x1   :  { %s989_s15 = smov 0  }
   0x2 LB: > { %s29_s16 = sadd.s32 1, %s924_s14  ;;  %p866_p0 = scmp.ge.s32.totalorder %s928_s15, 1  ;;  %s928_s15 = sphi %s989_s15, %s20_s15   ;;  %s924_s14 = sphi %s987_s14, %s1092_s14   ;;  %s920_s13 = sphi %s985_s13, %s1091_s13  }
   0x3   : > { %p30_p1 = scmp.ge.s32.totalorder %s29_s16, 2  ;;  %p410_p2 = scmp.lt.s32.totalorder %s928_s15, 3 }
   0x5   : > { %s1094_s16 = smov (%p30_p1, %s29_s16), 0  ;;  %p411_p3 = pnand %p866_p0, %p410_p2 }
   0x6   : > { %v542_v0 = vld [vmem:[%s1081_s1] sm:$0x1] (!%p411_p3)  ;;  %p486_p4 = scmp.lt.s32.totalorder (!%p411_p3), %s920_s13, 1  ;;  %v556_v14 = vlaneseq (!%p411_p3) }
   0x7   : > { %414 = sbr.rel (%p411_p3) target bundleno = 51 (0x33), region = 60  ;;  %v544_v1 = vld [vmem:[%s1082_s2] sm:$0x1] (!%p411_p3)  ;;  %v543_v2 = vmul.f32 (!%p411_p3), 0.0078125, %v542_v0 }
   0x8   : > { %v545_v3 = vmul.f32 (!%p411_p3), 0.0078125, %v544_v1  ;;  %v591_v4 = vld [vmem:[%s1086_s6] sm:$0x1] (!%p411_p3)  ;;  %v557_v15 = vshrl.u32 (!%p411_p3), %v556_v14, 7 }
   0x9   : > { %v593_v5 = vld [vmem:[%s1087_s7] sm:$0x1] (!%p411_p3)  ;;  %v546_v6 = vmul.f32 (!%p411_p3), %v543_v2, %v543_v2  ;;  %v592_v7 = vmul.f32 (!%p411_p3), 0.0078125, %v591_v4 }
   0xa   : > { %v594_v8 = vmul.f32 (!%p411_p3), 0.0078125, %v593_v5  ;;  %v548_v16 = vld [vmem:[%s1083_s3] sm:$0x1] (!%p411_p3)  ;;  %v558_v17 = vsub.s32 (!%p411_p3), 0, %v557_v15 }
   0xb   : > { %v547_v9 = vsub.f32 (!%p411_p3), %v545_v3, %v546_v6  ;;  %v595_v10 = vmul.f32 (!%p411_p3), %v592_v7, %v592_v7  ;;  %v597_v19 = vld [vmem:[%s1088_s8] sm:$0x1] (!%p411_p3) }
   0xc   : > { %v552_v21 = vld [vmem:[%s1084_s4] sm:$0x1] (!%p411_p3) }
   0xd   : > { %v549_v11 = vadd.f32 (!%p411_p3), 1e-05, %v547_v9  ;;  %v596_v12 = vsub.f32 (!%p411_p3), %v594_v8, %v595_v10  ;;  %v601_v24 = vld [vmem:[%s1089_s9] sm:$0x1] (!%p411_p3) }
   0xe   : > { %s1096_s13 = smov (!%p486_p4, %s920_s13), 1 }
   0xf   : > { %902 = vrsqrt.f32 %v549_v11  ;;  %v598_v13 = vadd.f32 1e-05, %v596_v12  ;;  %s1015_s25 = sshll.u32 %s1096_s13, 6 }
  0x10   : > { %s1024_s30 = scalar_lea.vmem %s1080_s0, %s1015_s25  ;;  %s1033_s18 = scalar_lea.vmem %s1085_s5, %s1015_s25 }
  0x11   : > { %904 = vrsqrt.f32 %v598_v13  ;;  %v534_v23 = vld [vmem:[%s1024_s30] sm:$0xff]  ;;  %v535_v25 = vld [vmem:[%s1024_s30 + $0x8] sm:$0xff]  ;;  %v536_v29 = vld [vmem:[%s1024_s30 + $0x10] sm:$0xff]  ;;  %s533_s26 = scalar_lea.vmem %s1090_s10, %s1015_s25 }
  0x12   : > { %v537_v30 = vld [vmem:[%s1024_s30 + $0x18] sm:$0xff]  ;;  %v538_v31 = vld [vmem:[%s1024_s30 + $0x20] sm:$0xff]  ;;  %v584_v33 = vld [vmem:[%s1033_s18 + $0x8] sm:$0xff] }
  0x13   : > { %v583_v32 = vld [vmem:[%s1033_s18] sm:$0xff]  ;;  %v585_v34 = vld [vmem:[%s1033_s18 + $0x10] sm:$0xff]  ;;  %v586_v39 = vld [vmem:[%s1033_s18 + $0x18] sm:$0xff] }
  0x14   : > { %v587_v40 = vld [vmem:[%s1033_s18 + $0x20] sm:$0xff]  ;;  %v539_v41 = vld [vmem:[%s1024_s30 + $0x28] sm:$0xff]  ;;  %v540_v59 = vld [vmem:[%s1024_s30 + $0x30] sm:$0xff] }
  0x15   : > { %v588_v50 = vld [vmem:[%s1033_s18 + $0x28] sm:$0xff]  ;;  %v589_v60 = vld [vmem:[%s1033_s18 + $0x30] sm:$0xff]  ;;  %v541_v13 = vld [vmem:[%s1024_s30 + $0x38] sm:$0xff] }
  0x19   : > { %v903_v18 = vpop.eup %902 }
  0x1a   : > { %v551_v20 = vmul.f32 %v903_v18, %v548_v16  ;;  %v590_v18 = vld [vmem:[%s1033_s18 + $0x38] sm:$0xff] }
  0x1b   : > { %v905_v22 = vpop.eup %904 }
  0x1c   : > { %v553_v26 = vmul.f32 %v551_v20, %v543_v2  ;;  %v1043_v27 = vrot.slane %v551_v20, %v558_v17  ;;  %v600_v28 = vmul.f32 %v905_v22, %v597_v19 }
  0x1e   : > { %v554_v35 = vsub.f32 %v552_v21, %v553_v26  ;;  %v561_v36 = vmul.f32 %v1043_v27, %v534_v23  ;;  %v602_v37 = vmul.f32 %v600_v28, %v592_v7  ;;  %v608_v38 = vrot.slane %v600_v28, %v558_v17 }
  0x1f   : > { %v562_v42 = vmul.f32 %v1043_v27, %v535_v25  ;;  %v563_v43 = vmul.f32 %v1043_v27, %v536_v29  ;;  %v564_v44 = vmul.f32 %v1043_v27, %v537_v30  ;;  %v565_v45 = vmul.f32 %v1043_v27, %v538_v31 }
  0x20   : > { %v573_v46 = vrot.slane %v554_v35, %v558_v17  ;;  %v603_v47 = vsub.f32 %v601_v24, %v602_v37  ;;  %v610_v48 = vmul.f32 %v608_v38, %v583_v32  ;;  %v611_v49 = vmul.f32 %v608_v38, %v584_v33 }
  0x21   : > { %v612_v51 = vmul.f32 %v608_v38, %v585_v34  ;;  %v613_v52 = vmul.f32 %v608_v38, %v586_v39  ;;  %v614_v53 = vmul.f32 %v608_v38, %v587_v40  ;;  %v566_v54 = vmul.f32 %v1043_v27, %v539_v41 }
  0x22   : > { %v575_v55 = vadd.f32 %v573_v46, %v561_v36  ;;  %v622_v56 = vrot.slane %v603_v47, %v558_v17  ;;  %v576_v57 = vadd.f32 %v573_v46, %v562_v42  ;;  %v577_v58 = vadd.f32 %v573_v46, %v563_v43 }
  0x23   : > { %v578_v61 = vadd.f32 %v573_v46, %v564_v44  ;;  %v579_v62 = vadd.f32 %v573_v46, %v565_v45  ;;  %v580_v63 = vadd.f32 %v573_v46, %v566_v54  ;;  %v615_v0 = vmul.f32 %v608_v38, %v588_v50 }
  0x24   : > { %v624_v1 = vadd.f32 %v622_v56, %v610_v48  ;;  %v625_v2 = vadd.f32 %v622_v56, %v611_v49  ;;  %v626_v3 = vadd.f32 %v622_v56, %v612_v51  ;;  %v627_v4 = vadd.f32 %v622_v56, %v613_v52 }
  0x25   : > { %v628_v5 = vadd.f32 %v622_v56, %v614_v53  ;;  %v629_v6 = vadd.f32 %v622_v56, %v615_v0  ;;  %v567_v7 = vmul.f32 %v1043_v27, %v540_v59  ;;  %v616_v8 = vmul.f32 %v608_v38, %v589_v60 }
  0x26   : > { %v632_v9 = vadd.f32 %v624_v1, %v575_v55  ;;  %v633_v10 = vadd.f32 %v625_v2, %v576_v57  ;;  %v634_v11 = vadd.f32 %v626_v3, %v577_v58  ;;  %v635_v12 = vadd.f32 %v627_v4, %v578_v61 }
  0x27   : > { %v636_v14 = vadd.f32 %v628_v5, %v579_v62  ;;  %v637_v15 = vadd.f32 %v629_v6, %v580_v63  ;;  %v581_v16 = vadd.f32 %v573_v46, %v567_v7  ;;  %v630_v17 = vadd.f32 %v622_v56, %v616_v8 }
  0x28   : > { %v640_v19 = vmax.f32 %v632_v9, 0.0  ;;  %v641_v20 = vmax.f32 %v633_v10, 0.0  ;;  %v642_v21 = vmax.f32 %v634_v11, 0.0  ;;  %v643_v22 = vmax.f32 %v635_v12, 0.0 }
  0x29   : > { %v644_v23 = vmax.f32 %v636_v14, 0.0  ;;  %v645_v24 = vmax.f32 %v637_v15, 0.0  ;;  %v638_v25 = vadd.f32 %v630_v17, %v581_v16  ;;  %v568_v26 = vmul.f32 %v1043_v27, %v541_v13 }
  0x2a   : > { %648 = vst [vmem:[%s533_s26] sm:$0xff] %v640_v19  ;;  %649 = vst [vmem:[%s533_s26 + $0x8] sm:$0xff] %v641_v20  ;;  %v617_v28 = vmul.f32 %v608_v38, %v590_v18 }
  0x2b   : > { %650 = vst [vmem:[%s533_s26 + $0x10] sm:$0xff] %v642_v21  ;;  %651 = vst [vmem:[%s533_s26 + $0x18] sm:$0xff] %v643_v22  ;;  %v646_v29 = vmax.f32 %v638_v25, 0.0  ;;  %v582_v30 = vadd.f32 %v573_v46, %v568_v26 }
  0x2c   : > { %652 = vst [vmem:[%s533_s26 + $0x20] sm:$0xff] %v644_v23  ;;  %653 = vst [vmem:[%s533_s26 + $0x28] sm:$0xff] %v645_v24  ;;  %v631_v31 = vadd.f32 %v622_v56, %v617_v28 }
  0x2d   : > { %654 = vst [vmem:[%s533_s26 + $0x30] sm:$0xff] %v646_v29 }
  0x2e   : > { %v639_v32 = vadd.f32 %v631_v31, %v582_v30 }
  0x30   : > { %v647_v33 = vmax.f32 %v639_v32, 0.0 }
  0x32   : > { %655 = vst [vmem:[%s533_s26 + $0x38] sm:$0xff] %v647_v33 }
  0x33 PF: > { %s20_s15 = sadd.s32 1, %s928_s15   ;;  %s1091_s13 = smov %s924_s14 }
  0x34   : > { %p17_p5 = scmp.ge.s32.totalorder %s20_s15, 4   ;;  %s1092_s14 = smov %s1094_s16 }
  0x36   :  { %19 = sbr.rel (!%p17_p5) target bundleno = 2 (0x2), region = 117 }

// kernel: basic_block_forward.4
= control target key start
LH: loop header
LB: loop body
LE: loop exit
PB: predicated region body
PF: predicated region fallthrough
CT: control target
= control target key end

     0   :  { %s3644_s27 = smov 0   ;;  %s3646_s28 = smov 0   ;;  %s4315_s0 = inlined_call_operand.vmem [shape: f32[2,8,8,128], index: 0, kind: input, shape index: {}]   ;;  %s4316_s1 = inlined_call_operand.vmem [shape: f32[1,128], index: 1, kind: input, shape index: {}]   ;;  %s4317_s2 = inlined_call_operand.vmem [shape: f32[1,128], index: 2, kind: input, shape index: {}]   ;;  %s4318_s3 = inlined_call_operand.vmem [shape: f32[1,128], index: 3, kind: input, shape index: {}]   ;;  %s4319_s4 = inlined_call_operand.vmem [shape: f32[1,128], index: 4, kind: input, shape index: {}]   ;;  %s4320_s5 = inlined_call_operand.vmem [shape: bf16[3,3,128,128], index: 5, kind: input, shape index: {}]   ;;  %s4321_s6 = inlined_call_operand.vmem [shape: f32[2,8,8,128], index: 6, kind: output, shape index: {0}]   ;;  %s4322_s7 = inlined_call_operand.vmem [shape: f32[1,128], index: 7, kind: output, shape index: {1}]   ;;  %s4323_s8 = inlined_call_operand.vmem [shape: f32[1,128], index: 8, kind: output, shape index: {2}]  }
   0x1   :  { %s3648_s29 = smov 0  }
   0x2 LB: > { %s28_s30 = sadd.s32 1, %s3591_s28  ;;  %p2769_p0 = scmp.ge.s32.totalorder %s3595_s29, 1  ;;  %s3595_s29 = sphi %s3648_s29, %s19_s29   ;;  %s3591_s28 = sphi %s3646_s28, %s4333_s28   ;;  %s3587_s27 = sphi %s3644_s27, %s4332_s27  }
   0x3   : > { %p29_p1 = scmp.ge.s32.totalorder %s28_s30, 2  ;;  %p290_p2 = scmp.lt.s32.totalorder %s3595_s29, 3 }
   0x5   : > { %s4335_s30 = smov (%p29_p1, %s28_s30), 0  ;;  %p291_p3 = pnand %p2769_p0, %p290_p2 }
   0x6   : > { %p337_p4 = scmp.lt.s32.totalorder (!%p291_p3), %s3587_s27, 1  ;;  %p2774_p5 = scmp.ne.s32.totalorder (!%p291_p3), %s3587_s27, 0 }
   0x7   : > { %294 = sbr.rel (%p291_p3) target bundleno = 479 (0x1df), region = 44 }
   0xe   : > { %s338_s9 = scalar_select %p337_p4, %s3587_s27, 1 }
   0xf   : > { %364 = sbr.rel (%p2774_p5) target bundleno = 22 (0x16), region = 48  ;;  %v3597_v0 = vmov (!%p2774_p5), 0.0  }
  0x10   : > { %s3047_s10 = sshll.u32 %s338_s9, 6  ;;  %365 = vst [vmem:[%s4322_s7] sm:$0x1] (!%p2774_p5), %v3597_v0  ;;  %366 = vst [vmem:[%s4323_s8] sm:$0x1] (!%p2774_p5), %v3597_v0 }
  0x11   : > { %s3665_s13 = scalar_lea.vmem %s4315_s0, %s3047_s10  ;;  %s3670_s16 = scalar_lea.vmem %s4321_s6, %s3047_s10 }
  0x16 PF: > { %v3487_v1 = vld [vmem:[%s4320_s5 + $0x40] sm:$0xff]   ;;  %v3598_v3 = vmov 0   ;;  %v3489_v4 = vld [vmem:[%s4320_s5 + $0x48] sm:$0xff]   ;;  %v3491_v6 = vld [vmem:[%s4320_s5 + $0x50] sm:$0xff]   ;;  %v389_v25 = vlaneseq  ;;  %vm557_vm0 = vcmask 1043456   ;;  %vm563_vm2 = vcmask 1040384  }
  0x17   : > { %v3488_v2 = vld [vmem:[%s4320_s5 + $0x100] sm:$0xff]   ;;  %432 = vst [vmem:[#allocation2] sm:$0xf] %v3598_v3  ;;  %433 = vst [vmem:[#allocation2 + $0x4] sm:$0x1] %v3598_v3  ;;  %3165 = vmatprep.subr.bf16.mxu1 %v3487_v1  ;;  %v3490_v5 = vld [vmem:[%s4320_s5 + $0x108] sm:$0xff]  }
  0x18   : > { %434 = vst [vmem:[#allocation2 + $0x8] sm:$0xf] %v3598_v3  ;;  %435 = vst [vmem:[#allocation2 + $0xc] sm:$0x1] %v3598_v3  ;;  %3261 = vmatprep.subr.bf16.mxu0 %v3488_v2  ;;  %3166 = vmatpush3.bf16.msra.mxu1 %v3487_v1  ;;  %v3492_v7 = vld [vmem:[%s4320_s5 + $0x110] sm:$0xff]   ;;  %v3493_v8 = vld [vmem:[%s4320_s5 + $0x58] sm:$0xff]  }
  0x19   : > { %436 = vst [vmem:[#allocation2 + $0x10] sm:$0xf] %v3598_v3  ;;  %437 = vst [vmem:[#allocation2 + $0x14] sm:$0x1] %v3598_v3  ;;  %3262 = vmatpush3.bf16.msra.mxu0 %v3488_v2  ;;  %3167 = vmatprep.subr.bf16.mxu1 %v3489_v4  ;;  %v3494_v9 = vld [vmem:[%s4320_s5 + $0x118] sm:$0xff]   ;;  %v3495_v10 = vld [vmem:[%s4320_s5 + $0x60] sm:$0xff]  }
  0x1a   : > { %438 = vst [vmem:[#allocation2 + $0x18] sm:$0xf] %v3598_v3  ;;  %439 = vst [vmem:[#allocation2 + $0x1c] sm:$0x1] %v3598_v3  ;;  %3263 = vmatprep.subr.bf16.mxu0 %v3490_v5  ;;  %v3496_v11 = vld [vmem:[%s4320_s5 + $0x120] sm:$0xff]   ;;  %v3497_v12 = vld [vmem:[%s4320_s5 + $0x68] sm:$0xff]  }
  0x1b   : > { %440 = vst [vmem:[#allocation2 + $0x20] sm:$0xf] %v3598_v3  ;;  %441 = vst [vmem:[#allocation2 + $0x24] sm:$0x1] %v3598_v3  ;;  %v367_v13 = vld [vmem:[%s4316_s1] sm:$0x1] }
  0x1c   : > { %442 = vst [vmem:[#allocation2 + $0x28] sm:$0xf] %v3598_v3  ;;  %443 = vst [vmem:[#allocation2 + $0x2c] sm:$0x1] %v3598_v3  ;;  %3168 = vmatpush3.bf16.msra.mxu1 %v3489_v4  ;;  %v369_v14 = vld [vmem:[%s4317_s2] sm:$0x1] }
  0x1d   : > { %444 = vst [vmem:[#allocation2 + $0x30] sm:$0xf] %v3598_v3  ;;  %445 = vst [vmem:[#allocation2 + $0x34] sm:$0x1] %v3598_v3  ;;  %3264 = vmatpush3.bf16.msra.mxu0 %v3490_v5  ;;  %3169 = vmatprep.subr.bf16.mxu1 %v3491_v6  ;;  %v3498_v15 = vld [vmem:[%s4320_s5 + $0x128] sm:$0xff]   ;;  %v368_v16 = vmul.f32 0.0078125, %v367_v13 }
  0x1e   : > { %446 = vst [vmem:[#allocation2 + $0x38] sm:$0xf] %v3598_v3  ;;  %447 = vst [vmem:[#allocation2 + $0x3c] sm:$0x1] %v3598_v3  ;;  %3265 = vmatprep.subr.bf16.mxu0 %v3492_v7  ;;  %v370_v17 = vmul.f32 0.0078125, %v369_v14  ;;  %v3499_v19 = vld [vmem:[%s4320_s5 + $0x70] sm:$0xff]  }
  0x1f   : > { %448 = vst [vmem:[#allocation2 + $0x40] sm:$0xf] %v3598_v3  ;;  %449 = vst [vmem:[#allocation2 + $0x44] sm:$0x1] %v3598_v3  ;;  %v371_v18 = vmul.f32 %v368_v16, %v368_v16  ;;  %v3500_v20 = vld [vmem:[%s4320_s5 + $0x130] sm:$0xff]   ;;  %v3501_v23 = vld [vmem:[%s4320_s5 + $0x78] sm:$0xff]  }
  0x20   : > { %450 = vst [vmem:[#allocation2 + $0x48] sm:$0xf] %v3598_v3  ;;  %451 = vst [vmem:[#allocation2 + $0x4c] sm:$0x1] %v3598_v3  ;;  %3170 = vmatpush3.bf16.msra.mxu1 %v3491_v6  ;;  %v3502_v24 = vld [vmem:[%s4320_s5 + $0x138] sm:$0xff]   ;;  %v3735_v26 = vld [vmem:[%s4320_s5] sm:$0xff]  }
  0x21   : > { %3266 = vmatpush3.bf16.msra.mxu0 %v3492_v7  ;;  %3171 = vmatprep.subr.bf16.mxu1 %v3493_v8  ;;  %v372_v21 = vsub.f32 %v370_v17, %v371_v18  ;;  %v3740_v27 = vld [vmem:[%s4320_s5 + $0x140] sm:$0xff]   ;;  %v390_v28 = vshrl.u32 %v389_v25, 7  ;;  %v381_v36 = vld [vmem:[%s3665_s13 + $0x8] sm:$0xff]  ;;  %v382_v37 = vld [vmem:[%s3665_s13 + $0x10] sm:$0xff]  ;;  %vm558_vm1 = vsmask.f32 7938 }
  0x22   : > { %3267 = vmatprep.subr.bf16.mxu0 %v3494_v9  ;;  %v373_v29 = vld [vmem:[%s4318_s3] sm:$0x1]  ;;  %v383_v40 = vld [vmem:[%s3665_s13 + $0x18] sm:$0xff]  ;;  %v385_v42 = vld [vmem:[%s3665_s13 + $0x28] sm:$0xff]  ;;  %vm564_vm3 = vsmask.f32 256 }
  0x23   : > { %v374_v22 = vadd.f32 1e-05, %v372_v21  ;;  %v391_v30 = vsub.s32 0, %v390_v28  ;;  %v377_v32 = vld [vmem:[%s4319_s4] sm:$0x1]  ;;  %v386_v49 = vld [vmem:[%s3665_s13 + $0x30] sm:$0xff]  ;;  %vm3780_vm4 = vmand %vm557_vm0, %vm558_vm1 }
  0x24   : > { %3172 = vmatpush3.bf16.msra.mxu1 %v3493_v8  ;;  %v380_v34 = vld [vmem:[%s3665_s13] sm:$0xff]  ;;  %v387_v54 = vld [vmem:[%s3665_s13 + $0x38] sm:$0xff]  ;;  %v566_v25 = vld [vmem:[#allocation2 + $0xc] sm:$0x1]  ;;  %vm643_vm6 = vsmask.f32 3328 }
  0x25   : > { %3268 = vmatpush3.bf16.msra.mxu0 %v3494_v9  ;;  %3173 = vmatprep.subr.bf16.mxu1 %v3495_v10  ;;  %3571 = vrsqrt.f32 %v374_v22  ;;  %v3751_v35 = vld [vmem:[#allocation2] sm:$0xf]  ;;  %v3759_v46 = vld [vmem:[#allocation2 + $0x4] sm:$0x1]  ;;  %v569_v28 = vld [vmem:[#allocation2 + $0x10] sm:$0xf] }
  0x26   : > { %3269 = vmatprep.subr.bf16.mxu0 %v3496_v11  ;;  %v384_v41 = vld [vmem:[%s3665_s13 + $0x20] sm:$0xff]  ;;  %v647_v43 = vshrl.u32 %v3751_v35, 16  ;;  %v650_v56 = vshll.u32 %v3751_v35, 16  ;;  %v656_v59 = vshll.u32 %v3759_v46, 16  ;;  %vm3788_vm5 = vmand %vm563_vm2, %vm564_vm3  ;;  %vm644_vm7 = vsmask.f32 7440 }
  0x27   : > { %vm3840_vm8 = vmor %vm643_vm6, %vm644_vm7  ;;  %vm1065_vm9 = vcmask 1042432   ;;  %vm1066_vm10 = vcmask 1046532  }
  0x28   : > { %3174 = vmatpush3.bf16.msra.mxu1 %v3495_v10  ;;  %v3764_v58 = vrot.slane %v647_v43, 4  ;;  %v3769_v8 = vrot.slane %v650_v56, 5  ;;  %v3513_v43 = vld [vmem:[%s4320_s5 + $0x28] sm:$0xff]   ;;  %vm4012_vm11 = vmor %vm1065_vm9, %vm1066_vm10 }
  0x29   : > { %3270 = vmatpush3.bf16.msra.mxu0 %v3496_v11  ;;  %3175 = vmatprep.subr.bf16.mxu1 %v3497_v12 }
  0x2a   : > { %3271 = vmatprep.subr.bf16.mxu0 %v3498_v15 }
  0x2c   : > { %3176 = vmatpush3.bf16.msra.mxu1 %v3497_v12 }
  0x2d   : > { %3272 = vmatpush3.bf16.msra.mxu0 %v3498_v15  ;;  %3177 = vmatprep.subr.bf16.mxu1 %v3499_v19 }
  0x2e   : > { %3273 = vmatprep.subr.bf16.mxu0 %v3500_v20 }
  0x2f   : > { %v3572_v31 = vpop.eup %3571 }
  0x30   : > { %3178 = vmatpush3.bf16.msra.mxu1 %v3499_v19  ;;  %v376_v33 = vmul.f32 %v3572_v31, %v373_v29  ;;  %v572_v29 = vld [vmem:[#allocation2 + $0x14] sm:$0x1] }
  0x31   : > { %3274 = vmatpush3.bf16.msra.mxu0 %v3500_v20  ;;  %3179 = vmatprep.subr.bf16.mxu1 %v3501_v23 }
  0x32   : > { %3275 = vmatprep.subr.bf16.mxu0 %v3502_v24  ;;  %v378_v38 = vmul.f32 %v376_v33, %v368_v16  ;;  %v392_v39 = vrot.slane %v376_v33, %v391_v30 }
  0x34   : > { %3180 = vmatpush3.bf16.msra.mxu1 %v3501_v23  ;;  %v379_v44 = vsub.f32 %v377_v32, %v378_v38  ;;  %v394_v45 = vmul.f32 %v392_v39, %v380_v34  ;;  %v395_v47 = vmul.f32 %v392_v39, %v381_v36  ;;  %v396_v48 = vmul.f32 %v392_v39, %v382_v37  ;;  %v575_v38 = vld [vmem:[#allocation2 + $0x18] sm:$0xf] }
  0x35   : > { %3276 = vmatpush3.bf16.msra.mxu0 %v3502_v24  ;;  %3189 = vmatprep.subr.bf16.mxu1 %v3735_v26  ;;  %v397_v50 = vmul.f32 %v392_v39, %v383_v40  ;;  %v398_v51 = vmul.f32 %v392_v39, %v384_v41  ;;  %v399_v52 = vmul.f32 %v392_v39, %v385_v42  ;;  %v560_v24 = vld [vmem:[#allocation2 + $0x8] sm:$0xf]  ;;  %v581_v40 = vld [vmem:[#allocation2 + $0x20] sm:$0xf] }
  0x36   : > { %3285 = vmatprep.subr.bf16.mxu0 %v3740_v27  ;;  %v400_v53 = vmul.f32 %v392_v39, %v386_v49  ;;  %v406_v55 = vrot.slane %v379_v44, %v391_v30  ;;  %v401_v57 = vmul.f32 %v392_v39, %v387_v54  ;;  %v578_v39 = vld [vmem:[#allocation2 + $0x1c] sm:$0x1] }
  0x38   : > { %v408_v60 = vadd.f32 %v406_v55, %v394_v45  ;;  %v409_v61 = vadd.f32 %v406_v55, %v395_v47  ;;  %v410_v62 = vadd.f32 %v406_v55, %v396_v48  ;;  %v411_v63 = vadd.f32 %v406_v55, %v397_v50 }
  0x39   : > { %v412_v0 = vadd.f32 %v406_v55, %v398_v51  ;;  %v413_v1 = vadd.f32 %v406_v55, %v399_v52  ;;  %v414_v2 = vadd.f32 %v406_v55, %v400_v53  ;;  %v3767_v3 = vadd.f32 %v406_v55, %v401_v57  ;;  %v584_v53 = vld [vmem:[#allocation2 + $0x24] sm:$0x1] }
  0x3a   : > { %v416_v4 = vmax.f32 %v408_v60, 0.0  ;;  %v417_v5 = vmax.f32 %v409_v61, 0.0  ;;  %v418_v6 = vmax.f32 %v410_v62, 0.0  ;;  %v419_v7 = vmax.f32 %v411_v63, 0.0 }
  0x3b   : > { %v420_v9 = vmax.f32 %v412_v0, 0.0  ;;  %v421_v10 = vmax.f32 %v413_v1, 0.0  ;;  %v422_v11 = vmax.f32 %v414_v2, 0.0  ;;  %v423_v19 = vmax.f32 %v3767_v3, 0.0 }
  0x3c   : > { %v3049_v12 = vpack.c.bf16 %v416_v4, %v416_v4  ;;  %v3050_v13 = vpack.c.bf16 %v417_v5, %v417_v5  ;;  %v3051_v14 = vpack.c.bf16 %v418_v6, %v418_v6  ;;  %v3052_v15 = vpack.c.bf16 %v419_v7, %v419_v7  ;;  %v587_v4 = vld [vmem:[#allocation2 + $0x28] sm:$0xf]  ;;  %v590_v5 = vld [vmem:[#allocation2 + $0x2c] sm:$0x1]  ;;  %v593_v6 = vld [vmem:[#allocation2 + $0x30] sm:$0xf] }
  0x3d   : > { %v3771_v16 = vpack.c.bf16 %v420_v9, %v420_v9  ;;  %v3773_v17 = vpack.c.bf16 %v421_v10, %v421_v10  ;;  %v3775_v18 = vpack.c.bf16 %v422_v11, %v422_v11  ;;  %v596_v11 = vld [vmem:[#allocation2 + $0x34] sm:$0x1] }
  0x3e   : > { %v477_v20 = vshrl.u32 %v3049_v12, 16  ;;  %v480_v21 = vshll.u32 %v3049_v12, 16  ;;  %v485_v22 = vshrl.u32 %v3050_v13, 16  ;;  %v488_v23 = vshll.u32 %v3050_v13, 16 }
  0x3f   : > { %v493_v30 = vshrl.u32 %v3051_v14, 16  ;;  %v496_v31 = vshll.u32 %v3051_v14, 16  ;;  %v501_v32 = vshrl.u32 %v3052_v15, 16  ;;  %v504_v33 = vshll.u32 %v3052_v15, 16 }
  0x40   : > { %v479_v34 = vrot.slane %v477_v20, 7  ;;  %v487_v37 = vrot.slane %v485_v22, 7  ;;  %v509_v41 = vshrl.u32 %v3771_v16, 16  ;;  %v512_v42 = vshll.u32 %v3771_v16, 16 }
  0x41   : > { %v495_v44 = vrot.slane %v493_v30, 7  ;;  %v503_v45 = vrot.slane %v501_v32, 7  ;;  %v517_v47 = vshrl.u32 %v3773_v17, 16  ;;  %v520_v48 = vshll.u32 %v3773_v17, 16 }
  0x42   : > { %v482_v49 = vor.u32 %v480_v21, %v479_v34  ;;  %v483_v50 = vrot.slane %v479_v34, 4  ;;  %v490_v51 = vor.u32 %v488_v23, %v487_v37  ;;  %v491_v52 = vrot.slane %v487_v37, 4 }
  0x43   : > { %v498_v54 = vor.u32 %v496_v31, %v495_v44  ;;  %v499_v55 = vrot.slane %v495_v44, 4  ;;  %v506_v56 = vor.u32 %v504_v33, %v503_v45  ;;  %v507_v57 = vrot.slane %v503_v45, 4 }
  0x44   : > { %v561_v60 = vsel %vm3780_vm4, %v482_v49, %v560_v24  ;;  %v567_v61 = vsel %vm3788_vm5, %v483_v50, %v566_v25  ;;  %v570_v62 = vsel %vm3780_vm4, %v490_v51, %v569_v28  ;;  %v573_v63 = vsel %vm3788_vm5, %v491_v52, %v572_v29  ;;  %v599_v25 = vld [vmem:[#allocation2 + $0x38] sm:$0xf] }
  0x45   : > { %562 = vst [vmem:[#allocation2 + $0x8] sm:$0xf] %v561_v60  ;;  %568 = vst [vmem:[#allocation2 + $0xc] sm:$0x1] %v567_v61  ;;  %v576_v0 = vsel %vm3780_vm4, %v498_v54, %v575_v38  ;;  %v579_v1 = vsel %vm3788_vm5, %v499_v55, %v578_v39  ;;  %v582_v2 = vsel %vm3780_vm4, %v506_v56, %v581_v40  ;;  %v511_v7 = vrot.slane %v509_v41, 7  ;;  %v3568_v39 = vld [vmem:[%s4320_s5 + $0x228] sm:$0xff]  }
  0x46   : > { %571 = vst [vmem:[#allocation2 + $0x10] sm:$0xf] %v570_v62  ;;  %574 = vst [vmem:[#allocation2 + $0x14] sm:$0x1] %v573_v63  ;;  %v585_v3 = vsel %vm3788_vm5, %v507_v57, %v584_v53  ;;  %v519_v9 = vrot.slane %v517_v47, 7  ;;  %v525_v10 = vshrl.u32 %v3775_v18, 16  ;;  %v3812_v13 = vpack.c.bf16 %v423_v19, %v423_v19 }
  0x47   : > { %577 = vst [vmem:[#allocation2 + $0x18] sm:$0xf] %v576_v0  ;;  %580 = vst [vmem:[#allocation2 + $0x1c] sm:$0x1] %v579_v1  ;;  %v528_v12 = vshll.u32 %v3775_v18, 16  ;;  %v514_v14 = vor.u32 %v512_v42, %v511_v7  ;;  %v515_v15 = vrot.slane %v511_v7, 4  ;;  %v653_v20 = vor.u32 %v3769_v8, %v3764_v58 }
  0x48   : > { %583 = vst [vmem:[#allocation2 + $0x20] sm:$0xf] %v582_v2  ;;  %586 = vst [vmem:[#allocation2 + $0x24] sm:$0x1] %v585_v3  ;;  %v522_v16 = vor.u32 %v520_v48, %v519_v9  ;;  %v523_v17 = vrot.slane %v519_v9, 4  ;;  %v3818_v21 = vrot.slane %v656_v59, 5 }
  0x49   : > { %v527_v22 = vrot.slane %v525_v10, 7  ;;  %v588_v23 = vsel %vm3780_vm4, %v514_v14, %v587_v4  ;;  %v591_v18 = vsel %vm3788_vm5, %v515_v15, %v590_v5  ;;  %v602_v8 = vld [vmem:[#allocation2 + $0x3c] sm:$0x1]  ;;  %v533_v28 = vshrl.u32 %v3812_v13, 16 }
  0x4a   : > { %v594_v19 = vsel %vm3780_vm4, %v522_v16, %v593_v6  ;;  %v597_v24 = vsel %vm3788_vm5, %v523_v17, %v596_v11  ;;  %589 = vst [vmem:[#allocation2 + $0x28] sm:$0xf] %v588_v23  ;;  %592 = vst [vmem:[#allocation2 + $0x2c] sm:$0x1] %v591_v18  ;;  %v654_v32 = vrot.slane %v653_v20, 4 }
  0x4b   : > { %595 = vst [vmem:[#allocation2 + $0x30] sm:$0xf] %v594_v19  ;;  %598 = vst [vmem:[#allocation2 + $0x34] sm:$0x1] %v597_v24  ;;  %v530_v58 = vor.u32 %v528_v12, %v527_v22  ;;  %v531_v59 = vrot.slane %v527_v22, 4  ;;  %v3851_v51 = vrot.slane %v533_v28, 7 }
  0x4c   : > { %v3829_v29 = vld [vmem:[#allocation2 + $0x8] sm:$0xf]  ;;  %v3831_v30 = vld [vmem:[#allocation2 + $0xc] sm:$0x1]  ;;  %v659_v57 = vsel %vm3840_vm8, %v654_v32, %v3818_v21 }
  0x4d   : > { %v1424_v31 = vld [vmem:[#allocation2 + $0x8] sm:$0xf]  ;;  %v661_v33 = vshrl.u32 %v3829_v29, 16  ;;  %v664_v34 = vshll.u32 %v3829_v29, 16  ;;  %v670_v37 = vshll.u32 %v3831_v30, 16  ;;  %v600_v45 = vsel %vm3780_vm4, %v530_v58, %v599_v25 }
  0x4e   : > { %v3836_v38 = vld [vmem:[#allocation2 + $0xc] sm:$0x1]  ;;  %v1426_v40 = vld [vmem:[#allocation2 + $0x10] sm:$0xf]  ;;  %v3844_v41 = vld [vmem:[#allocation2 + $0x14] sm:$0x1]  ;;  %v603_v47 = vsel %vm3788_vm5, %v531_v59, %v602_v8 }
  0x4f   : > { %v1441_v42 = vshrl.u32 %v1424_v31, 16  ;;  %v1444_v44 = vshll.u32 %v1424_v31, 16  ;;  %v663_v48 = vrot.slane %v661_v33, 4  ;;  %v666_v49 = vrot.slane %v664_v34, 5  ;;  %601 = vst [vmem:[#allocation2 + $0x38] sm:$0xf] %v600_v45 }
  0x50   : > { %v1450_v50 = vshll.u32 %v3836_v38, 16  ;;  %604 = vst [vmem:[#allocation2 + $0x3c] sm:$0x1] %v603_v47  ;;  %v1455_v54 = vshrl.u32 %v1426_v40, 16  ;;  %v1458_v55 = vshll.u32 %v1426_v40, 16  ;;  %v672_v61 = vrot.slane %v670_v37, 5 }
  0x51   : > { %v1443_v52 = vrot.slane %v1441_v42, 4  ;;  %v1446_v53 = vrot.slane %v1444_v44, 5  ;;  %v3853_v56 = vld [vmem:[#allocation2 + $0x10] sm:$0xf]  ;;  %v667_v60 = vor.u32 %v666_v49, %v663_v48  ;;  %v1464_v62 = vshll.u32 %v3844_v41, 16 }
  0x52   : > { %v3859_v63 = vld [vmem:[#allocation2 + $0x18] sm:$0xf]  ;;  %v3861_v0 = vld [vmem:[#allocation2 + $0x14] sm:$0x1]  ;;  %v1452_v2 = vrot.slane %v1450_v50, 5  ;;  %v1457_v3 = vrot.slane %v1455_v54, 4 }
  0x53   : > { %v1447_v1 = vor.u32 %v1446_v53, %v1443_v52  ;;  %v1460_v4 = vrot.slane %v1458_v55, 5  ;;  %v668_v5 = vrot.slane %v667_v60, 4  ;;  %v1466_v6 = vrot.slane %v1464_v62, 5  ;;  %v3865_v12 = vld [vmem:[#allocation2 + $0x1c] sm:$0x1] }
  0x54   : > { %v675_v7 = vshrl.u32 %v3853_v56, 16  ;;  %v678_v9 = vshll.u32 %v3853_v56, 16  ;;  %v684_v14 = vshll.u32 %v3861_v0, 16  ;;  %v689_v15 = vshrl.u32 %v3859_v63, 16  ;;  %v1428_v22 = vld [vmem:[#allocation2 + $0x18] sm:$0xf] }
  0x55   : > { %v1448_v10 = vrot.slane %v1447_v1, 4  ;;  %v1461_v11 = vor.u32 %v1460_v4, %v1457_v3  ;;  %v673_v16 = vsel %vm3840_vm8, %v668_v5, %v672_v61  ;;  %v692_v21 = vshll.u32 %v3859_v63, 16  ;;  %v3874_v25 = vld [vmem:[#allocation2 + $0x1c] sm:$0x1]  ;;  %v1430_v31 = vld [vmem:[#allocation2 + $0x20] sm:$0xf] }
  0x56   : > { %v677_v17 = vrot.slane %v675_v7, 4  ;;  %v680_v20 = vrot.slane %v678_v9, 5  ;;  %v2799_v23 = vcombine.low %v659_v57, %v673_v16  ;;  %v686_v24 = vrot.slane %v684_v14, 5  ;;  %v3879_v33 = vld [vmem:[#allocation2 + $0x24] sm:$0x1] }
  0x57   : > { %v1453_v18 = vsel %vm3840_vm8, %v1448_v10, %v1452_v2  ;;  %v1462_v19 = vrot.slane %v1461_v11, 4  ;;  %v691_v59 = vrot.slane %v689_v15, 4  ;;  %v694_v8 = vrot.slane %v692_v21, 5  ;;  %v3889_v62 = vld [vmem:[#allocation2 + $0x28] sm:$0xf] }
  0x58   : > { %v681_v58 = vor.u32 %v680_v20, %v677_v17  ;;  %v698_v28 = vshll.u32 %v3865_v12, 16  ;;  %3181 = vmatprep.mubr.bf16.mxu1 %v2799_v23  ;;  %v1469_v34 = vshrl.u32 %v1428_v22, 16  ;;  %v536_v37 = vshll.u32 %v3812_v13, 16  ;;  %v3887_v13 = vld [vmem:[#allocation2 + $0x20] sm:$0xf]  ;;  %v3505_v11 = vld [vmem:[%s4320_s5 + $0x8] sm:$0xff]  }
  0x59   : > { %v1467_v32 = vsel %vm3840_vm8, %v1462_v19, %v1466_v6  ;;  %v539_v40 = vrot.slane %v3851_v51, 4  ;;  %v695_v45 = vor.u32 %v694_v8, %v691_v59  ;;  %v1472_v49 = vshll.u32 %v1428_v22, 16  ;;  %v3891_v1 = vld [vmem:[#allocation2 + $0x24] sm:$0x1]  ;;  %v3898_v7 = vld [vmem:[#allocation2 + $0x2c] sm:$0x1] }
  0x5a   : > { %v2903_v42 = vcombine.low %v1453_v18, %v1467_v32  ;;  %v682_v44 = vrot.slane %v681_v58, 4  ;;  %v700_v47 = vrot.slane %v698_v28, 5  ;;  %v1471_v48 = vrot.slane %v1469_v34, 4  ;;  %v1432_v22 = vld [vmem:[#allocation2 + $0x28] sm:$0xf] }
  0x5b   : > { %v1478_v50 = vshll.u32 %v3874_v25, 16  ;;  %v1483_v52 = vshrl.u32 %v1430_v31, 16  ;;  %v696_v54 = vrot.slane %v695_v45, 4  ;;  %v1486_v55 = vshll.u32 %v1430_v31, 16  ;;  %v3909_v58 = vld [vmem:[#allocation2 + $0x2c] sm:$0x1] }
  0x5c   : > { %3277 = vmatprep.mubr.bf16.mxu0 %v2903_v42  ;;  %v687_v53 = vsel %vm3840_vm8, %v682_v44, %v686_v24  ;;  %v1492_v57 = vshll.u32 %v3879_v33, 16  ;;  %v1474_v60 = vrot.slane %v1472_v49, 5  ;;  %v3894_v2 = vor.u32 %v536_v37, %v3851_v51  ;;  %v1434_v32 = vld [vmem:[#allocation2 + $0x30] sm:$0xf] }
  0x5d   : > { %v1485_v61 = vrot.slane %v1483_v52, 4  ;;  %v701_v3 = vsel %vm3840_vm8, %v696_v54, %v700_v47  ;;  %v1480_v4 = vrot.slane %v1478_v50, 5  ;;  %v1488_v5 = vrot.slane %v1486_v55, 5  ;;  %v3507_v37 = vld [vmem:[%s4320_s5 + $0x10] sm:$0xff]   ;;  %v3506_v54 = vld [vmem:[%s4320_s5 + $0x148] sm:$0xff]  }
  0x5e   : > { %v1494_v6 = vrot.slane %v1492_v57, 5  ;;  %v2800_v9 = vcombine.low %v687_v53, %v701_v3  ;;  %v1475_v10 = vor.u32 %v1474_v60, %v1471_v48  ;;  %v703_v14 = vshrl.u32 %v3887_v13, 16  ;;  %v3919_v48 = vld [vmem:[#allocation2 + $0x34] sm:$0x1]  ;;  %v3922_v52 = vld [vmem:[#allocation2 + $0x30] sm:$0xf] }
  0x5f   : > { %v706_v15 = vshll.u32 %v3887_v13, 16  ;;  %v1489_v16 = vor.u32 %v1488_v5, %v1485_v61  ;;  %v712_v17 = vshll.u32 %v3891_v1, 16  ;;  %v717_v20 = vshrl.u32 %v3889_v62, 16  ;;  %v3927_v61 = vld [vmem:[#allocation2 + $0x38] sm:$0xf] }
  0x60   : > { %v720_v21 = vshll.u32 %v3889_v62, 16  ;;  %3182 = vmatmul.mubr.bf16.vlgmr.msra.gmra.mrb[0].mxu1 %v2800_v9  ;;  %v1476_v23 = vrot.slane %v1475_v10, 4  ;;  %v705_v18 = vrot.slane %v703_v14, 4  ;;  %v726_v24 = vshll.u32 %v3898_v7, 16  ;;  %v3929_v9 = vld [vmem:[#allocation2 + $0x34] sm:$0x1] }
  0x61   : > { %v708_v19 = vrot.slane %v706_v15, 5  ;;  %3190 = vmatpush3.bf16.msra.mxu1 %v3735_v26  ;;  %v1490_v59 = vrot.slane %v1489_v16, 4  ;;  %v714_v8 = vrot.slane %v712_v17, 5  ;;  %v719_v28 = vrot.slane %v717_v20, 4  ;;  %v605_v10 = vld [vmem:[#allocation2 + $0x40] sm:$0xf] }
  0x62   : > { %v722_v31 = vrot.slane %v720_v21, 5  ;;  %v1481_v34 = vsel %vm3840_vm8, %v1476_v23, %v1480_v4  ;;  %3191 = vmatprep.subr.bf16.mxu1 %v3505_v11  ;;  %v728_v44 = vrot.slane %v726_v24, 5  ;;  %v1497_v45 = vshrl.u32 %v1432_v22, 16  ;;  %v3509_v14 = vld [vmem:[%s4320_s5 + $0x18] sm:$0xff]   ;;  %v3508_v24 = vld [vmem:[%s4320_s5 + $0x150] sm:$0xff]  }
  0x63   : > { %v709_v42 = vor.u32 %v708_v19, %v705_v18  ;;  %v1495_v47 = vsel %vm3840_vm8, %v1490_v59, %v1494_v6  ;;  %v1500_v49 = vshll.u32 %v1432_v22, 16  ;;  %v1506_v50 = vshll.u32 %v3909_v58, 16  ;;  %v608_v19 = vld [vmem:[#allocation2 + $0x44] sm:$0x1] }
  0x64   : > { %v723_v26 = vor.u32 %v722_v31, %v719_v28  ;;  %v2904_v53 = vcombine.low %v1481_v34, %v1495_v47  ;;  %v1499_v57 = vrot.slane %v1497_v45, 4  ;;  %v1511_v60 = vshrl.u32 %v1434_v32, 16  ;;  %v3511_v47 = vld [vmem:[%s4320_s5 + $0x20] sm:$0xff]  }
  0x65   : > { %v710_v55 = vrot.slane %v709_v42, 4  ;;  %3192 = vmatpush3.bf16.msra.mxu1 %v3505_v11  ;;  %v1502_v4 = vrot.slane %v1500_v49, 5  ;;  %v1508_v5 = vrot.slane %v1506_v50, 5  ;;  %v1514_v6 = vshll.u32 %v1434_v32, 16  ;;  %v3937_v11 = vld [vmem:[#allocation2 + $0x3c] sm:$0x1] }
  0x66   : > { %v724_v3 = vrot.slane %v723_v26, 4  ;;  %3278 = vmatmul.mubr.bf16.vlgmr.msra.gmra.mrb[0].mxu0 %v2904_v53  ;;  %3193 = vmatprep.subr.bf16.mxu1 %v3507_v37  ;;  %v1513_v16 = vrot.slane %v1511_v60, 4  ;;  %v1520_v17 = vshll.u32 %v3919_v48, 16  ;;  %v731_v20 = vshrl.u32 %v3922_v52, 16  ;;  %v3510_v60 = vld [vmem:[%s4320_s5 + $0x158] sm:$0xff]  }
  0x67   : > { %v715_v15 = vsel %vm3840_vm8, %v710_v55, %v714_v8  ;;  %3286 = vmatpush3.bf16.msra.mxu0 %v3740_v27  ;;  %v1503_v22 = vor.u32 %v1502_v4, %v1499_v57  ;;  %v1516_v23 = vrot.slane %v1514_v6, 5  ;;  %v734_v18 = vshll.u32 %v3922_v52, 16  ;;  %v3969_v6 = vld [vmem:[#allocation2 + $0x3c] sm:$0x1] }
  0x68   : > { %v729_v21 = vsel %vm3840_vm8, %v724_v3, %v728_v44  ;;  %3287 = vmatprep.subr.bf16.mxu0 %v3506_v54  ;;  %v1522_v8 = vrot.slane %v1520_v17, 5  ;;  %v733_v28 = vrot.slane %v731_v20, 4  ;;  %v740_v31 = vshll.u32 %v3929_v9, 16  ;;  %v1436_v44 = vld [vmem:[#allocation2 + $0x38] sm:$0xf] }
  0x69   : > { %v2801_v59 = vcombine.low %v715_v15, %v729_v21  ;;  %3194 = vmatpush3.bf16.msra.mxu1 %v3507_v37  ;;  %v1504_v27 = vrot.slane %v1503_v22, 4  ;;  %v1517_v32 = vor.u32 %v1516_v23, %v1513_v16  ;;  %v736_v34 = vrot.slane %v734_v18, 5  ;;  %v3512_v15 = vld [vmem:[%s4320_s5 + $0x160] sm:$0xff]   ;;  %v3515_v18 = vld [vmem:[%s4320_s5 + $0x30] sm:$0xff]  }
  0x6a   : > { %v745_v42 = vshrl.u32 %v3927_v61, 16  ;;  %v1070_v45 = vrot.slane %v3759_v46, 5  ;;  %3195 = vmatprep.subr.bf16.mxu1 %v3509_v14  ;;  %v748_v26 = vshll.u32 %v3927_v61, 16  ;;  %v754_v37 = vshll.u32 %v3937_v11, 16  ;;  %v3527_v46 = vld [vmem:[%s4320_s5 + $0x98] sm:$0xff]  }
  0x6b   : > { %3185 = vmatprep.mubr.bf16.mxu1 %v2801_v59  ;;  %v606_v49 = vsel %vm3780_vm4, %v3894_v2, %v605_v10  ;;  %3288 = vmatpush3.bf16.msra.mxu0 %v3506_v54  ;;  %v1509_v50 = vsel %vm3840_vm8, %v1504_v27, %v1508_v5  ;;  %v1518_v53 = vrot.slane %v1517_v32, 4  ;;  %v737_v55 = vor.u32 %v736_v34, %v733_v28  ;;  %v1706_v28 = vld [vmem:[#allocation2 + $0x8] sm:$0xe] }
  0x6c   : > { %v747_v57 = vrot.slane %v745_v42, 4  ;;  %607 = vst [vmem:[#allocation2 + $0x40] sm:$0xf] %v606_v49  ;;  %3289 = vmatprep.subr.bf16.mxu0 %v3508_v24  ;;  %v742_v3 = vrot.slane %v740_v31, 5  ;;  %v750_v4 = vrot.slane %v748_v26, 5  ;;  %v609_v36 = vsel %vm3788_vm5, %v539_v40, %v608_v19 }
  0x6d   : > { %v1525_v2 = vshrl.u32 %v1436_v44, 16  ;;  %3196 = vmatpush3.bf16.msra.mxu1 %v3509_v14  ;;  %v1523_v54 = vsel %vm3840_vm8, %v1518_v53, %v1522_v8  ;;  %v738_v5 = vrot.slane %v737_v55, 4  ;;  %610 = vst [vmem:[#allocation2 + $0x44] sm:$0x1] %v609_v36  ;;  %v1528_v10 = vshll.u32 %v1436_v44, 16 }
  0x6e   : > { %3197 = vmatprep.subr.bf16.mxu1 %v3511_v47  ;;  %v2905_v51 = vcombine.low %v1509_v50, %v1523_v54  ;;  %v751_v40 = vor.u32 %v750_v4, %v747_v57  ;;  %v756_v14 = vrot.slane %v754_v37, 5  ;;  %v1074_v17 = vrot.slane %v3831_v30, 5  ;;  %v3995_v44 = vld [vmem:[#allocation2 + $0x20] sm:$0xe]  ;;  %v4000_v53 = vld [vmem:[#allocation2 + $0x28] sm:$0xe] }
  0x6f   : > { %v1527_v16 = vrot.slane %v1525_v2, 4  ;;  %v1732_v20 = vrot.slane %v3836_v38, 5  ;;  %v1736_v21 = vrot.slane %v3844_v41, 5  ;;  %3290 = vmatpush3.bf16.msra.mxu0 %v3508_v24  ;;  %v1530_v22 = vrot.slane %v1528_v10, 5  ;;  %v1707_v41 = vld [vmem:[#allocation2 + $0x10] sm:$0xe] }
  0x70   : > { %v1078_v23 = vrot.slane %v3861_v0, 5  ;;  %3291 = vmatprep.subr.bf16.mxu0 %v3510_v60  ;;  %3281 = vmatprep.mubr.bf16.mxu0 %v2905_v51  ;;  %v743_v19 = vsel %vm3840_vm8, %v738_v5, %v742_v3  ;;  %v752_v59 = vrot.slane %v751_v40, 4  ;;  %v1534_v8 = vshll.u32 %v3969_v6, 16  ;;  %v3987_v24 = vld [vmem:[#allocation2 + $0x18] sm:$0xe]  ;;  %v3516_v10 = vld [vmem:[%s4320_s5 + $0x170] sm:$0xff]  }
  0x71   : > { %3198 = vmatpush3.bf16.msra.mxu1 %v3511_v47  ;;  %v1531_v38 = vor.u32 %v1530_v22, %v1527_v16  ;;  %v1082_v31 = vrot.slane %v3865_v12, 5  ;;  %v1740_v27 = vrot.slane %v3874_v25, 5  ;;  %v2811_v42 = vcombine.low %v3751_v35, %v3829_v29  ;;  %v3514_v47 = vld [vmem:[%s4320_s5 + $0x168] sm:$0xff]   ;;  %v4002_v55 = vld [vmem:[#allocation2 + $0x30] sm:$0xe]  ;;  %v3517_v29 = vld [vmem:[%s4320_s5 + $0x38] sm:$0xff]  }
  0x72   : > { %3199 = vmatprep.subr.bf16.mxu1 %v3513_v43  ;;  %v757_v32 = vsel %vm3840_vm8, %v752_v59, %v756_v14  ;;  %v2915_v50 = vrot.slane %v1706_v28, 9  ;;  %v1744_v57 = vrot.slane %v3879_v33, 5  ;;  %v1536_v35 = vrot.slane %v1534_v8, 5  ;;  %v1043_v51 = vld [vmem:[#allocation2 + $0x10] sm:$0xe] }
  0x73   : > { %v1438_v34 = vld [vmem:[#allocation2 + $0x40] sm:$0xf]  ;;  %3292 = vmatpush3.bf16.msra.mxu0 %v3510_v60  ;;  %v2802_v26 = vcombine.low %v743_v19, %v757_v32  ;;  %v2916_v4 = vrot.slane %v1707_v41, 9  ;;  %v2917_v36 = vrot.slane %v3987_v24, 9  ;;  %v1532_v2 = vrot.slane %v1531_v38, 4 }
  0x74   : > { %v1539_v37 = vshrl.u32 %v1438_v34, 16  ;;  %v1542_v49 = vshll.u32 %v1438_v34, 16  ;;  %3293 = vmatprep.subr.bf16.mxu0 %v3512_v15  ;;  %v4005_v3 = vld [vmem:[#allocation2 + $0x44] sm:$0x1]  ;;  %v1733_v16 = vsel %vm4012_vm11, %v2915_v50, %v1732_v20  ;;  %v1044_v22 = vld [vmem:[#allocation2 + $0x18] sm:$0xe] }
  0x75   : > { %3200 = vmatpush3.bf16.msra.mxu1 %v3513_v43  ;;  %v1548_v5 = vshll.u32 %v4005_v3, 16  ;;  %v2918_v43 = vrot.slane %v3995_v44, 9  ;;  %v3520_v19 = vld [vmem:[%s4320_s5 + $0x80] sm:$0xff]   ;;  %v1737_v59 = vsel %vm4012_vm11, %v2916_v4, %v1736_v21  ;;  %v2919_v8 = vrot.slane %v4000_v53, 9  ;;  %v1042_v32 = vld [vmem:[#allocation2 + $0x8] sm:$0xe] }
  0x76   : > { %v1541_v33 = vrot.slane %v1539_v37, 4  ;;  %v1544_v54 = vrot.slane %v1542_v49, 5  ;;  %3201 = vmatprep.subr.bf16.mxu1 %v3515_v18  ;;  %3186 = vmatmul.mubr.bf16.gmra.mrb[4].mxu1 %v2802_v26  ;;  %v2920_v28 = vrot.slane %v4002_v55, 9  ;;  %v1537_v20 = vsel %vm3840_vm8, %v1532_v2, %v1536_v35  ;;  %v1041_v24 = vld [vmem:[#allocation2] sm:$0xe]  ;;  %v3518_v21 = vld [vmem:[%s4320_s5 + $0x178] sm:$0xff]  }
  0x77   : > { %3294 = vmatpush3.bf16.msra.mxu0 %v3512_v15  ;;  %v1550_v14 = vrot.slane %v1548_v5, 5  ;;  %3205 = vmatprep.mubr.bf16.mxu1 %v2811_v42  ;;  %v1748_v15 = vrot.slane %v3909_v58, 5  ;;  %v1752_v41 = vrot.slane %v3919_v48, 5  ;;  %v2825_v34 = vrot.slane %v1043_v51, 9  ;;  %v3523_v48 = vld [vmem:[%s4320_s5 + $0x88] sm:$0xff]   ;;  %v3525_v53 = vld [vmem:[%s4320_s5 + $0x90] sm:$0xff]  }
  0x78   : > { %v1545_v40 = vor.u32 %v1544_v54, %v1541_v33  ;;  %3295 = vmatprep.subr.bf16.mxu0 %v3514_v47  ;;  %v2826_v42 = vrot.slane %v1044_v22, 9  ;;  %v2812_v26 = vcombine.low %v3853_v56, %v3859_v63  ;;  %v2813_v56 = vcombine.low %v3887_v13, %v3889_v62  ;;  %v3521_v13 = vld [vmem:[%s4320_s5 + $0x180] sm:$0xff]   ;;  %v1712_v62 = vld [vmem:[#allocation2 + $0x38] sm:$0xe]  ;;  %v3524_v55 = vld [vmem:[%s4320_s5 + $0x188] sm:$0xff]  }
  0x79   : > { %3202 = vmatpush3.bf16.msra.mxu1 %v3515_v18  ;;  %v2939_v18 = vcombine.low %v1733_v16, %v1737_v59  ;;  %v4049_v37 = vsel %vm4012_vm11, %v2825_v34, %v1078_v23  ;;  %v1741_v0 = vsel %vm4012_vm11, %v2917_v36, %v1740_v27  ;;  %v1745_v12 = vsel %vm4012_vm11, %v2918_v43, %v1744_v57  ;;  %v1713_v49 = vld [vmem:[#allocation2 + $0x40] sm:$0xe]  ;;  %v3528_v5 = vld [vmem:[%s4320_s5 + $0x198] sm:$0xff]   ;;  %v1046_v16 = vld [vmem:[#allocation2 + $0x28] sm:$0xe] }
  0x7a   : > { %v1546_v38 = vrot.slane %v1545_v40, 4  ;;  %3203 = vmatprep.subr.bf16.mxu1 %v3517_v29  ;;  %v2823_v23 = vrot.slane %v1041_v24, 9  ;;  %v1749_v25 = vsel %vm4012_vm11, %v2919_v8, %v1748_v15  ;;  %v1753_v27 = vsel %vm4012_vm11, %v2920_v28, %v1752_v41  ;;  %v3530_v51 = vld [vmem:[%s4320_s5 + $0x1a0] sm:$0xff]   ;;  %v3534_v40 = vld [vmem:[%s4320_s5 + $0xb0] sm:$0xff]   ;;  %v3532_v43 = vld [vmem:[%s4320_s5 + $0x1a8] sm:$0xff]  }
  0x7b   : > { %3296 = vmatpush3.bf16.msra.mxu0 %v3514_v47  ;;  %v4055_v47 = vsel %vm4012_vm11, %v2826_v42, %v1082_v31  ;;  %v2824_v31 = vrot.slane %v1042_v32, 9  ;;  %v2940_v50 = vcombine.low %v1741_v0, %v1745_v12  ;;  %v2921_v57 = vrot.slane %v1712_v62, 9  ;;  %v2087_v22 = vld [vmem:[#allocation2 + $0x10] sm:$0xf]  ;;  %v3537_v59 = vld [vmem:[%s4320_s5 + $0xb8] sm:$0xff]   ;;  %v3543_v62 = vld [vmem:[%s4320_s5 + $0xc8] sm:$0xff]  }
  0x7c   : > { %v1551_v58 = vsel %vm3840_vm8, %v1546_v38, %v1550_v14  ;;  %3297 = vmatprep.subr.bf16.mxu0 %v3516_v10  ;;  %v2848_v63 = vcombine.low %v4049_v37, %v4055_v47  ;;  %v1756_v35 = vrot.slane %v3969_v6, 5  ;;  %v2941_v36 = vcombine.low %v1749_v25, %v1753_v27  ;;  %v1045_v14 = vld [vmem:[#allocation2 + $0x20] sm:$0xe]  ;;  %v1047_v38 = vld [vmem:[#allocation2 + $0x30] sm:$0xe]  ;;  %v3544_v37 = vld [vmem:[%s4320_s5 + $0x1c8] sm:$0xff]  }
  0x7d   : > { %v2906_v44 = vcombine.low %v1537_v20, %v1551_v58  ;;  %3204 = vmatpush3.bf16.msra.mxu1 %v3517_v29  ;;  %v1071_v29 = vsel %vm4012_vm11, %v2823_v23, %v1070_v45  ;;  %v1075_v4 = vsel %vm4012_vm11, %v2824_v31, %v1074_v17  ;;  %v2922_v2 = vrot.slane %v1713_v49, 9  ;;  %v1048_v41 = vld [vmem:[#allocation2 + $0x38] sm:$0xe]  ;;  %v3541_v49 = vld [vmem:[%s4320_s5 + $0x1c0] sm:$0xff]  }
  0x7e   : > { %3213 = vmatprep.subr.bf16.mxu1 %v3520_v19  ;;  %v1760_v33 = vrot.slane %v4005_v3, 5  ;;  %v2814_v54 = vcombine.low %v3922_v52, %v3927_v61  ;;  %v2847_v6 = vcombine.low %v1071_v29, %v1075_v4  ;;  %v1757_v30 = vsel %vm4012_vm11, %v2921_v57, %v1756_v35  ;;  %v3526_v52 = vld [vmem:[%s4320_s5 + $0x190] sm:$0xff]   ;;  %v3529_v61 = vld [vmem:[%s4320_s5 + $0xa0] sm:$0xff]  }
  0x7f   : > { %3282 = vmatmul.mubr.bf16.gmra.mrb[4].mxu0 %v2906_v44  ;;  %v3540_v3 = vld [vmem:[#allocation2 + $0x10] ss:$8 sps:$4 sm:$0xff]   ;;  %v2827_v8 = vrot.slane %v1045_v14, 9  ;;  %v1086_v15 = vrot.slane %v3891_v1, 5  ;;  %v2828_v28 = vrot.slane %v1046_v16, 9  ;;  %v1090_v20 = vrot.slane %v3898_v7, 5 }
  0x80   : > { %3298 = vmatpush3.bf16.msra.mxu0 %v3516_v10  ;;  %3301 = vmatprep.mubr.bf16.mxu0 %v2939_v18  ;;  %v1761_v45 = vsel %vm4012_vm11, %v2922_v2, %v1760_v33  ;;  %v3531_v10 = vld [vmem:[%s4320_s5 + $0xa8] sm:$0xff]   ;;  %v2104_v24 = vshrl.u32 %v2087_v22, 16  ;;  %v2107_v32 = vshll.u32 %v2087_v22, 16  ;;  %v1094_v58 = vrot.slane %v3929_v9, 5  ;;  %v3538_v7 = vld [vmem:[%s4320_s5 + $0x1b8] sm:$0xff]   ;;  %v3539_v18 = vld [vmem:[%s4320_s5 + $0xc0] sm:$0xff]  }
  0x81   : > { %3299 = vmatprep.subr.bf16.mxu0 %v3518_v21  ;;  %3206 = vmatmul.mubr.bf16.vlgmr.msra.gmra.mrb[0].mxu1 %v2812_v26  ;;  %v2942_v17 = vcombine.low %v1757_v30, %v1761_v45  ;;  %v1098_v1 = vrot.slane %v3937_v11, 5  ;;  %v1087_v44 = vsel %vm4012_vm11, %v2827_v8, %v1086_v15  ;;  %v1091_v26 = vsel %vm4012_vm11, %v2828_v28, %v1090_v20  ;;  %v4140_v9 = vld [vmem:[#allocation2 + $0x14] sm:$0x1]  ;;  %v4142_v11 = vld [vmem:[#allocation2 + $0x1c] sm:$0x1] }
  0x82   : > { %3214 = vmatpush3.bf16.msra.mxu1 %v3520_v19  ;;  %3209 = vmatprep.mubr.bf16.mxu1 %v2813_v56  ;;  %v2089_v19 = vld [vmem:[#allocation2 + $0x18] sm:$0xf]  ;;  %v2830_v56 = vrot.slane %v1048_v41, 9  ;;  %v2106_v0 = vrot.slane %v2104_v24, 4  ;;  %v2109_v12 = vrot.slane %v2107_v32, 5  ;;  %v2127_v57 = vshll.u32 %v4142_v11, 16 }
  0x83   : > { %3215 = vmatprep.subr.bf16.mxu1 %v3523_v48  ;;  %v2118_v34 = vshrl.u32 %v2089_v19, 16  ;;  %v2121_v42 = vshll.u32 %v2089_v19, 16  ;;  %v3542_v35 = vld [vmem:[#allocation2 + $0x20] ss:$8 sps:$4 sm:$0xff]   ;;  %v3545_v29 = vld [vmem:[%s4320_s5 + $0xd0] sm:$0xff]  }
  0x84   : > { %3300 = vmatpush3.bf16.msra.mxu0 %v3518_v21  ;;  %v3535_v21 = vld [vmem:[%s4320_s5 + $0x1b0] sm:$0xff]   ;;  %v1099_v27 = vsel %vm4012_vm11, %v2830_v56, %v1098_v1  ;;  %v2129_v33 = vrot.slane %v2127_v57, 5  ;;  %v2097_v16 = vld [vmem:[#allocation2 + $0x38] sm:$0xf]  ;;  %v4190_v32 = vld [vmem:[#allocation2 + $0x24] sm:$0x1] }
  0x85   : > { %3309 = vmatprep.subr.bf16.mxu0 %v3521_v13  ;;  %v2120_v23 = vrot.slane %v2118_v34, 4  ;;  %v2123_v31 = vrot.slane %v2121_v42, 5  ;;  %v3553_v4 = vld [vmem:[#allocation2 + $0x30] ss:$8 sps:$4 sm:$0xff]   ;;  %v2174_v28 = vshrl.u32 %v2097_v16, 16  ;;  %v2177_v20 = vshll.u32 %v2097_v16, 16 }
  0x86   : > { %3216 = vmatpush3.bf16.msra.mxu1 %v3523_v48  ;;  %v2829_v48 = vrot.slane %v1047_v38, 9  ;;  %v2095_v14 = vld [vmem:[#allocation2 + $0x30] sm:$0xf]  ;;  %v3552_v42 = vld [vmem:[%s4320_s5 + $0x1e8] sm:$0xff]   ;;  %v2099_v1 = vld [vmem:[#allocation2 + $0x40] sm:$0xf] }
  0x87   : > { %3302 = vmatmul.mubr.bf16.vlgmr.msra.gmra.mrb[0].mxu0 %v2940_v50  ;;  %3217 = vmatprep.subr.bf16.mxu1 %v3525_v53  ;;  %v2110_v50 = vor.u32 %v2109_v12, %v2106_v0  ;;  %v2160_v8 = vshrl.u32 %v2095_v14, 16  ;;  %v2163_v15 = vshll.u32 %v2095_v14, 16  ;;  %v3554_v24 = vld [vmem:[%s4320_s5 + $0xf0] sm:$0xff]   ;;  %v2141_v0 = vshll.u32 %v4190_v32, 16 }
  0x88   : > { %3310 = vmatpush3.bf16.msra.mxu0 %v3521_v13  ;;  %3305 = vmatprep.mubr.bf16.mxu0 %v2941_v36  ;;  %v2849_v13 = vcombine.low %v1087_v44, %v1091_v26  ;;  %v1095_v25 = vsel %vm4012_vm11, %v2829_v48, %v1094_v58  ;;  %v4195_v58 = vld [vmem:[#allocation2 + $0x2c] sm:$0x1]  ;;  %v2176_v44 = vrot.slane %v2174_v28, 4  ;;  %v2179_v26 = vrot.slane %v2177_v20, 5  ;;  %v2101_v48 = vld [vmem:[#allocation2 + $0x48] sm:$0xf] }
  0x89   : > { %3311 = vmatprep.subr.bf16.mxu0 %v3524_v55  ;;  %3210 = vmatmul.mubr.bf16.gmra.mrb[4].mxu1 %v2814_v54  ;;  %v2850_v36 = vcombine.low %v1095_v25, %v1099_v27  ;;  %v2111_v47 = vrot.slane %v2110_v50, 4  ;;  %v3559_v54 = vld [vmem:[#allocation2 + $0x8] ss:$8 sps:$4 sm:$0xff]   ;;  %v4198_v12 = vld [vmem:[#allocation2 + $0x34] sm:$0x1]  ;;  %v2188_v25 = vshrl.u32 %v2099_v1, 16 }
  0x8a   : > { %3218 = vmatpush3.bf16.msra.mxu1 %v3525_v53  ;;  %3229 = vmatprep.mubr.bf16.mxu1 %v2847_v6  ;;  %v2113_v53 = vshll.u32 %v4140_v9, 16  ;;  %v3547_v6 = vld [vmem:[%s4320_s5 + $0xd8] sm:$0xff]   ;;  %v2191_v27 = vshll.u32 %v2099_v1, 16  ;;  %v2205_v50 = vshll.u32 %v2101_v48, 16  ;;  %v2169_v57 = vshll.u32 %v4198_v12, 16 }
  0x8b   : > { %3219 = vmatprep.subr.bf16.mxu1 %v3527_v46  ;;  %v3563_v14 = vld [vmem:[#allocation2 + $0x28] ss:$8 sps:$4 sm:$0xff]  }
  0x8c   : > { %3312 = vmatpush3.bf16.msra.mxu0 %v3524_v55  ;;  %v2124_v55 = vor.u32 %v2123_v31, %v2120_v23  ;;  %v4200_v23 = vld [vmem:[#allocation2 + $0x3c] sm:$0x1] }
  0x8d   : > { %3313 = vmatprep.subr.bf16.mxu0 %v3526_v52  ;;  %v3557_v31 = vld [vmem:[%s4320_s5 + $0xf8] sm:$0xff]  }
  0x8e   : > { %3220 = vmatpush3.bf16.msra.mxu1 %v3527_v46  ;;  %v2125_v2 = vrot.slane %v2124_v55, 4  ;;  %v3546_v46 = vld [vmem:[%s4320_s5 + $0x1d0] sm:$0xff]  }
  0x8f   : > { %3221 = vmatprep.subr.bf16.mxu1 %v3529_v61  ;;  %3306 = vmatmul.mubr.bf16.gmra.mrb[4].mxu0 %v2942_v17  ;;  %v2091_v17 = vld [vmem:[#allocation2 + $0x20] sm:$0xf] }
  0x90   : > { %3314 = vmatpush3.bf16.msra.mxu0 %v3526_v52  ;;  %3325 = vmatprep.mubr.bf16.mxu0 %v3540_v3  ;;  %v2130_v45 = vsel %vm3840_vm8, %v2125_v2, %v2129_v33  ;;  %v3549_v52 = vld [vmem:[%s4320_s5 + $0xe0] sm:$0xff]  }
  0x91   : > { %3315 = vmatprep.subr.bf16.mxu0 %v3528_v5 }
  0x92   : > { %3222 = vmatpush3.bf16.msra.mxu1 %v3529_v61  ;;  %v3555_v61 = vld [vmem:[#allocation2 + $0x40] ss:$8 sps:$4 sm:$0xff]  }
  0x93   : > { %3223 = vmatprep.subr.bf16.mxu1 %v3531_v10 }
  0x94   : > { %3316 = vmatpush3.bf16.msra.mxu0 %v3528_v5  ;;  %v2093_v5 = vld [vmem:[#allocation2 + $0x28] sm:$0xf] }
  0x95   : > { %3317 = vmatprep.subr.bf16.mxu0 %v3530_v51  ;;  %v2146_v22 = vshrl.u32 %v2093_v5, 16  ;;  %v2149_v19 = vshll.u32 %v2093_v5, 16 }
  0x96   : > { %3224 = vmatpush3.bf16.msra.mxu1 %v3531_v10  ;;  %v3548_v10 = vld [vmem:[%s4320_s5 + $0x1d8] sm:$0xff]  }
  0x97   : > { %3225 = vmatprep.subr.bf16.mxu1 %v3534_v40  ;;  %v2151_v34 = vrot.slane %v2149_v19, 5  ;;  %v2411_v19 = vrot.slane %v4198_v12, 5  ;;  %v3564_v12 = vld [vmem:[#allocation2 + $0x38] ss:$8 sps:$4 sm:$0xff]  }
  0x98   : > { %3318 = vmatpush3.bf16.msra.mxu0 %v3530_v51  ;;  %v2132_v51 = vshrl.u32 %v2091_v17, 16 }
  0x99   : > { %3319 = vmatprep.subr.bf16.mxu0 %v3532_v43 }
  0x9a   : > { %3226 = vmatpush3.bf16.msra.mxu1 %v3534_v40  ;;  %v2135_v40 = vshll.u32 %v2091_v17, 16  ;;  %v2134_v38 = vrot.slane %v2132_v51, 4  ;;  %v4221_v51 = vld [vmem:[#allocation2 + $0x4c] sm:$0x1] }
  0x9b   : > { %3227 = vmatprep.subr.bf16.mxu1 %v3537_v59 }
  0x9c   : > { %3320 = vmatpush3.bf16.msra.mxu0 %v3532_v43  ;;  %v3551_v43 = vld [vmem:[%s4320_s5 + $0xe8] sm:$0xff]   ;;  %v2137_v41 = vrot.slane %v2135_v40, 5 }
  0x9d   : > { %3321 = vmatprep.subr.bf16.mxu0 %v3535_v21 }
  0x9e   : > { %3228 = vmatpush3.bf16.msra.mxu1 %v3537_v59  ;;  %v3550_v59 = vld [vmem:[%s4320_s5 + $0x1e0] sm:$0xff]   ;;  %v2138_v56 = vor.u32 %v2137_v41, %v2134_v38  ;;  %v2211_v38 = vshll.u32 %v4221_v51, 16 }
  0x9f   : > { %3237 = vmatprep.subr.bf16.mxu1 %v3539_v18 }
  0xa0   : > { %3322 = vmatpush3.bf16.msra.mxu0 %v3535_v21  ;;  %v2148_v21 = vrot.slane %v2146_v22, 4 }
  0xa1   : > { %3323 = vmatprep.subr.bf16.mxu0 %v3538_v7  ;;  %3230 = vmatmul.mubr.bf16.vlgmr.msra.gmra.mrb[0].mxu1 %v2848_v63  ;;  %v2115_v63 = vrot.slane %v2113_v53, 5  ;;  %v3556_v53 = vld [vmem:[%s4320_s5 + $0x1f0] sm:$0xff]  }
  0xa2   : > { %3238 = vmatpush3.bf16.msra.mxu1 %v3539_v18  ;;  %3233 = vmatprep.mubr.bf16.mxu1 %v2849_v13  ;;  %v2165_v18 = vrot.slane %v2163_v15, 5  ;;  %v2152_v13 = vor.u32 %v2151_v34, %v2148_v21  ;;  %v2369_v21 = vld [vmem:[#allocation2 + $0x10] sm:$0xe]  ;;  %v2370_v34 = vld [vmem:[#allocation2 + $0x18] sm:$0xe] }
  0xa3   : > { %3239 = vmatprep.subr.bf16.mxu1 %v3543_v62  ;;  %v2116_v30 = vsel %vm3840_vm8, %v2111_v47, %v2115_v63  ;;  %v3558_v47 = vld [vmem:[%s4320_s5 + $0x1f8] sm:$0xff]  }
  0xa4   : > { %3324 = vmatpush3.bf16.msra.mxu0 %v3538_v7  ;;  %v2995_v3 = vcombine.low %v2116_v30, %v2130_v45  ;;  %v2162_v7 = vrot.slane %v2160_v8, 4  ;;  %v3560_v63 = vld [vmem:[#allocation2 + $0x18] ss:$8 sps:$4 sm:$0xff]   ;;  %v2153_v2 = vrot.slane %v2152_v13, 4  ;;  %v2207_v45 = vrot.slane %v2205_v50, 5 }
  0xa5   : > { %3333 = vmatprep.subr.bf16.mxu0 %v3541_v49  ;;  %v2415_v8 = vrot.slane %v4200_v23, 5  ;;  %v3008_v13 = vrot.slane %v2370_v34, 9 }
  0xa6   : > { %3240 = vmatpush3.bf16.msra.mxu1 %v3543_v62  ;;  %v2155_v62 = vshll.u32 %v4195_v58, 16  ;;  %v2166_v55 = vor.u32 %v2165_v18, %v2162_v7  ;;  %v3565_v7 = vld [vmem:[%s4320_s5 + $0x210] sm:$0xff]  }
  0xa7   : > { %3326 = vmatmul.mubr.bf16.vlgmr.msra.gmra.mrb[0].mxu0 %v3542_v35  ;;  %3241 = vmatprep.subr.bf16.mxu1 %v3545_v29  ;;  %v2180_v35 = vor.u32 %v2179_v26, %v2176_v44 }
  0xa8   : > { %3334 = vmatpush3.bf16.msra.mxu0 %v3541_v49  ;;  %3329 = vmatprep.mubr.bf16.mxu0 %v3553_v4  ;;  %v2202_v49 = vshrl.u32 %v2101_v48, 16  ;;  %v2139_v4 = vrot.slane %v2138_v56, 4  ;;  %v2157_v33 = vrot.slane %v2155_v62, 5  ;;  %v2167_v17 = vrot.slane %v2166_v55, 4  ;;  %v3567_v55 = vld [vmem:[%s4320_s5 + $0x220] sm:$0xff]  }
  0xa9   : > { %3335 = vmatprep.subr.bf16.mxu0 %v3544_v37  ;;  %3234 = vmatmul.mubr.bf16.gmra.mrb[4].mxu1 %v2850_v36  ;;  %v2143_v36 = vrot.slane %v2141_v0, 5  ;;  %v2181_v5 = vrot.slane %v2180_v35, 4  ;;  %v2213_v0 = vrot.slane %v2211_v38, 5  ;;  %v2399_v62 = vrot.slane %v4142_v11, 5  ;;  %v3569_v35 = vld [vmem:[%s4320_s5 + $0x230] sm:$0xff]  }
  0xaa   : > { %3242 = vmatpush3.bf16.msra.mxu1 %v3545_v29  ;;  %3253 = vmatprep.mubr.bf16.mxu1 %v3559_v54  ;;  %v2183_v29 = vshll.u32 %v4200_v23, 16  ;;  %v4219_v54 = vld [vmem:[#allocation2 + $0x44] sm:$0x1]  ;;  %v2204_v30 = vrot.slane %v2202_v49, 4  ;;  %v2158_v15 = vsel %vm3840_vm8, %v2153_v2, %v2157_v33  ;;  %v3007_v23 = vrot.slane %v2369_v21, 9  ;;  %v3570_v2 = vld [vmem:[%s4320_s5 + $0x238] sm:$0xff]  }
  0xab   : > { %3243 = vmatprep.subr.bf16.mxu1 %v3547_v6  ;;  %v2144_v40 = vsel %vm3840_vm8, %v2139_v4, %v2143_v36  ;;  %v2197_v16 = vshll.u32 %v4219_v54, 16  ;;  %v2400_v50 = vsel %vm4012_vm11, %v3008_v13, %v2399_v62  ;;  %v2376_v4 = vld [vmem:[#allocation2 + $0x48] sm:$0xe]  ;;  %v2419_v36 = vrot.slane %v4219_v54, 5  ;;  %v2371_v33 = vld [vmem:[#allocation2 + $0x20] sm:$0xe] }
  0xac   : > { %3336 = vmatpush3.bf16.msra.mxu0 %v3544_v37  ;;  %v4214_v37 = vld [vmem:[%s4320_s5 + $0x200] sm:$0xff]   ;;  %v2208_v20 = vor.u32 %v2207_v45, %v2204_v30  ;;  %v3009_v30 = vrot.slane %v2371_v33, 9  ;;  %v2403_v45 = vrot.slane %v4190_v32, 5 }
  0xad   : > { %3337 = vmatprep.subr.bf16.mxu0 %v3546_v46  ;;  %v2199_v1 = vrot.slane %v2197_v16, 5 }
  0xae   : > { %3244 = vmatpush3.bf16.msra.mxu1 %v3547_v6  ;;  %v2190_v6 = vrot.slane %v2188_v25, 4  ;;  %v2209_v56 = vrot.slane %v2208_v20, 4 }
  0xaf   : > { %3245 = vmatprep.subr.bf16.mxu1 %v3549_v52  ;;  %3330 = vmatmul.mubr.bf16.gmra.mrb[4].mxu0 %v3555_v61  ;;  %v2374_v61 = vld [vmem:[#allocation2 + $0x38] sm:$0xe] }
  0xb0   : > { %3338 = vmatpush3.bf16.msra.mxu0 %v3546_v46  ;;  %3349 = vmatprep.mubr.bf16.mxu0 %v2995_v3  ;;  %v2193_v46 = vrot.slane %v2191_v27, 5  ;;  %v2171_v3 = vrot.slane %v2169_v57, 5  ;;  %v3566_v27 = vld [vmem:[%s4320_s5 + $0x218] sm:$0xff]  }
  0xb1   : > { %3339 = vmatprep.subr.bf16.mxu0 %v3548_v10 }
  0xb2   : > { %3246 = vmatpush3.bf16.msra.mxu1 %v3549_v52  ;;  %v2373_v52 = vld [vmem:[#allocation2 + $0x30] sm:$0xe]  ;;  %v2194_v28 = vor.u32 %v2193_v46, %v2190_v6  ;;  %v2172_v41 = vsel %vm3840_vm8, %v2167_v17, %v2171_v3  ;;  %v2372_v6 = vld [vmem:[#allocation2 + $0x28] sm:$0xe]  ;;  %v2404_v3 = vsel %vm4012_vm11, %v3009_v30, %v2403_v45 }
  0xb3   : > { %3247 = vmatprep.subr.bf16.mxu1 %v3551_v43  ;;  %v3011_v22 = vrot.slane %v2373_v52, 9  ;;  %v3010_v52 = vrot.slane %v2372_v6, 9 }
  0xb4   : > { %3340 = vmatpush3.bf16.msra.mxu0 %v3548_v10  ;;  %v2185_v10 = vrot.slane %v2183_v29, 5  ;;  %v2195_v48 = vrot.slane %v2194_v28, 4  ;;  %v2375_v29 = vld [vmem:[#allocation2 + $0x40] sm:$0xe] }
  0xb5   : > { %3341 = vmatprep.subr.bf16.mxu0 %v3550_v59  ;;  %v2412_v18 = vsel %vm4012_vm11, %v3011_v22, %v2411_v19 }
  0xb6   : > { %3248 = vmatpush3.bf16.msra.mxu1 %v3551_v43  ;;  %v3562_v43 = vld [vmem:[%s4320_s5 + $0x208] sm:$0xff]   ;;  %v2200_v49 = vsel %vm3840_vm8, %v2195_v48, %v2199_v1 }
  0xb7   : > { %3249 = vmatprep.subr.bf16.mxu1 %v3554_v24 }
  0xb8   : > { %3342 = vmatpush3.bf16.msra.mxu0 %v3550_v59  ;;  %v3012_v59 = vrot.slane %v2374_v61, 9  ;;  %v2407_v61 = vrot.slane %v4195_v58, 5 }
  0xb9   : > { %3343 = vmatprep.subr.bf16.mxu0 %v3552_v42 }
  0xba   : > { %3250 = vmatpush3.bf16.msra.mxu1 %v3554_v24  ;;  %v2186_v24 = vsel %vm3840_vm8, %v2181_v5, %v2185_v10  ;;  %v2416_v44 = vsel %vm4012_vm11, %v3012_v59, %v2415_v8  ;;  %v2408_v5 = vsel %vm4012_vm11, %v3010_v52, %v2407_v61 }
  0xbb   : > { %3251 = vmatprep.subr.bf16.mxu1 %v3557_v31  ;;  %v2997_v26 = vcombine.low %v2172_v41, %v2186_v24  ;;  %v3033_v25 = vcombine.low %v2412_v18, %v2416_v44  ;;  %v3032_v10 = vcombine.low %v2404_v3, %v2408_v5 }
  0xbc   : > { %3344 = vmatpush3.bf16.msra.mxu0 %v3552_v42  ;;  %v2996_v42 = vcombine.low %v2144_v40, %v2158_v15 }
  0xbd   : > { %3345 = vmatprep.subr.bf16.mxu0 %v3556_v53 }
  0xbe   : > { %3252 = vmatpush3.bf16.msra.mxu1 %v3557_v31  ;;  %v2395_v31 = vrot.slane %v4140_v9, 5  ;;  %v2214_v9 = vsel %vm3840_vm8, %v2209_v56, %v2213_v0 }
  0xbf   : > { %3381 = vmatprep.subr.bf16.mxu1 %v4214_v37 }
  0xc0   : > { %3346 = vmatpush3.bf16.msra.mxu0 %v3556_v53  ;;  %v2396_v11 = vsel %vm4012_vm11, %v3007_v23, %v2395_v31  ;;  %v2998_v53 = vcombine.low %v2200_v49, %v2214_v9 }
  0xc1   : > { %3347 = vmatprep.subr.bf16.mxu0 %v3558_v47  ;;  %3254 = vmatmul.mubr.bf16.vlgmr.msra.gmra.mrb[0].mxu1 %v3560_v63  ;;  %v3031_v57 = vcombine.low %v2396_v11, %v2400_v50  ;;  %v3014_v63 = vrot.slane %v2376_v4, 9 }
  0xc2   : > { %3389 = vmatpush3.bf16.msra.mxu1 %v4214_v37  ;;  %3257 = vmatprep.mubr.bf16.mxu1 %v3563_v14 }
  0xc3   : > { %3382 = vmatprep.subr.bf16.mxu1 %v3562_v43 }
  0xc4   : > { %3348 = vmatpush3.bf16.msra.mxu0 %v3558_v47  ;;  %v3013_v47 = vrot.slane %v2375_v29, 9 }
  0xc5   : > { %3357 = vmatprep.subr.bf16.mxu0 %v4214_v37 }
  0xc6   : > { %3390 = vmatpush3.bf16.msra.mxu1 %v3562_v43  ;;  %v2420_v46 = vsel %vm4012_vm11, %v3013_v47, %v2419_v36 }
  0xc7   : > { %3350 = vmatmul.mubr.bf16.vlgmr.msra.gmra.mrb[0].mxu0 %v2996_v42  ;;  %3383 = vmatprep.subr.bf16.mxu1 %v3565_v7 }
  0xc8   : > { %3358 = vmatpush3.bf16.msra.mxu0 %v4214_v37  ;;  %3353 = vmatprep.mubr.bf16.mxu0 %v2997_v26  ;;  %v2423_v37 = vrot.slane %v4221_v51, 5 }
  0xc9   : > { %3359 = vmatprep.subr.bf16.mxu0 %v3562_v43  ;;  %3258 = vmatmul.mubr.bf16.gmra.mrb[4].mxu1 %v3564_v12 }
  0xca   : > { %3391 = vmatpush3.bf16.msra.mxu1 %v3565_v7  ;;  %3377 = vmatprep.mubr.bf16.mxu1 %v3033_v25  ;;  %v2424_v54 = vsel %vm4012_vm11, %v3014_v63, %v2423_v37 }
  0xcb   : > { %3384 = vmatprep.subr.bf16.mxu1 %v3566_v27  ;;  %v3034_v17 = vcombine.low %v2420_v46, %v2424_v54 }
  0xcc   : > { %3360 = vmatpush3.bf16.msra.mxu0 %v3562_v43 }
  0xcd   : > { %3361 = vmatprep.subr.bf16.mxu0 %v3565_v7 }
  0xce   : > { %3392 = vmatpush3.bf16.msra.mxu1 %v3566_v27 }
  0xcf   : > { %3354 = vmatmul.mubr.bf16.gmra.mrb[4].mxu0 %v2998_v53  ;;  %3385 = vmatprep.subr.bf16.mxu1 %v3567_v55 }
  0xd0   : > { %3362 = vmatpush3.bf16.msra.mxu0 %v3565_v7  ;;  %3373 = vmatprep.mubr.bf16.mxu0 %v3031_v57 }
  0xd1   : > { %3363 = vmatprep.subr.bf16.mxu0 %v3566_v27 }
  0xd2   : > { %3393 = vmatpush3.bf16.msra.mxu1 %v3567_v55 }
  0xd3   : > { %3386 = vmatprep.subr.bf16.mxu1 %v3568_v39 }
  0xd4   : > { %3364 = vmatpush3.bf16.msra.mxu0 %v3566_v27 }
  0xd5   : > { %3365 = vmatprep.subr.bf16.mxu0 %v3567_v55 }
  0xd6   : > { %3394 = vmatpush3.bf16.msra.mxu1 %v3568_v39 }
  0xd7   : > { %3387 = vmatprep.subr.bf16.mxu1 %v3569_v35 }
  0xd8   : > { %3366 = vmatpush3.bf16.msra.mxu0 %v3567_v55 }
  0xd9   : > { %3367 = vmatprep.subr.bf16.mxu0 %v3568_v39 }
  0xda   : > { %3395 = vmatpush3.bf16.msra.mxu1 %v3569_v35 }
  0xdb   : > { %3388 = vmatprep.subr.bf16.mxu1 %v3570_v2 }
  0xdc   : > { %3368 = vmatpush3.bf16.msra.mxu0 %v3568_v39 }
  0xdd   : > { %3369 = vmatprep.subr.bf16.mxu0 %v3569_v35 }
  0xde   : > { %3396 = vmatpush3.bf16.msra.mxu1 %v3570_v2 }
  0xe0   : > { %3370 = vmatpush3.bf16.msra.mxu0 %v3569_v35 }
  0xe1   : > { %3371 = vmatprep.subr.bf16.mxu0 %v3570_v2  ;;  %3378 = vmatmul.mubr.bf16.vlgmr.msra.gmra.mrb[8].mxu1 %v3034_v17 }
  0xe4   : > { %3372 = vmatpush3.bf16.msra.mxu0 %v3570_v2 }
  0xe7   : > { %3374 = vmatmul.mubr.bf16.vlgmr.msra.gmra.mrb[0].mxu0 %v3032_v10  ;;  %v2587_v10 = vld [vmem:[%s4322_s7] sm:$0x1] }
 0x194   : > { %v3255_v51 = vpop.f32.mrb[0].mxu1 }
 0x195   : > { %v1385_v32 = vpop.f32.mrb[1].mxu1 }
 0x196   : > { %v3256_v40 = vpop.f32.mrb[2].mxu1 }
 0x197   : > { %v1388_v14 = vpop.f32.mrb[3].mxu1 }
 0x19c   : > { %v3259_v58 = vpop.f32.mrb[4].mxu1 }
 0x19d   : > { %v1401_v16 = vpop.f32.mrb[5].mxu1 }
 0x19e   : > { %v3260_v43 = vpop.f32.mrb[6].mxu1 }
 0x19f   : > { %v1404_v22 = vpop.f32.mrb[7].mxu1 }
 0x1a2   : > { %v3355_v19 = vpop.f32.mrb[4].mxu0 }
 0x1a3   : > { %v3401_v59 = vadd.f32 %v3355_v19, %v3259_v58  ;;  %v2346_v8 = vpop.f32.mrb[5].mxu0 }
 0x1a4   : > { %v3403_v60 = vadd.f32 %v2346_v8, %v1401_v16  ;;  %v3356_v15 = vpop.f32.mrb[6].mxu0 }
 0x1a5   : > { %v3405_v28 = vadd.f32 %v3356_v15, %v3260_v43  ;;  %v2349_v20 = vpop.f32.mrb[7].mxu0 }
 0x1a6   : > { %v3407_v38 = vadd.f32 %v2349_v20, %v1404_v22 }
 0x1b4   : > { %v3379_v41 = vpop.f32.mrb[8].mxu1 }
 0x1b5   : > { %v3402_v24 = vadd.f32 %v3401_v59, %v3379_v41  ;;  %v2556_v21 = vpop.f32.mrb[9].mxu1 }
 0x1b6   : > { %v3404_v34 = vadd.f32 %v3403_v60, %v2556_v21  ;;  %v3380_v42 = vpop.f32.mrb[10].mxu1 }
 0x1b7   : > { %2585 = vst [vmem:[%s3670_s16 + $0x30] sm:$0xff] %v3402_v24  ;;  %v3406_v1 = vadd.f32 %v3405_v28, %v3380_v42  ;;  %v2559_v7 = vpop.f32.mrb[11].mxu1  ;;  %v2610_v36 = vmul.f32 %v3402_v24, %v3402_v24 }
 0x1b8   : > { %2583 = vst [vmem:[%s3670_s16 + $0x20] sm:$0xff] %v3404_v34  ;;  %v3408_v18 = vadd.f32 %v3407_v38, %v2559_v7  ;;  %v2608_v55 = vmul.f32 %v3404_v34, %v3404_v34 }
 0x1b9   : > { %2586 = vst [vmem:[%s3670_s16 + $0x38] sm:$0xff] %v3406_v1  ;;  %v2611_v63 = vmul.f32 %v3406_v1, %v3406_v1 }
 0x1ba   : > { %v3375_v44 = vpop.f32.mrb[0].mxu0  ;;  %2584 = vst [vmem:[%s3670_s16 + $0x28] sm:$0xff] %v3408_v18  ;;  %v2609_v29 = vmul.f32 %v3408_v18, %v3408_v18 }
 0x1bb   : > { %v3397_v26 = vadd.f32 %v3375_v44, %v3255_v51  ;;  %v2540_v48 = vpop.f32.mrb[1].mxu0 }
 0x1bc   : > { %v3398_v56 = vadd.f32 %v2540_v48, %v1385_v32  ;;  %v3376_v0 = vpop.f32.mrb[2].mxu0 }
 0x1bd   : > { %2581 = vst [vmem:[%s3670_s16 + $0x10] sm:$0xff] %v3397_v26  ;;  %v3399_v12 = vadd.f32 %v3376_v0, %v3256_v40  ;;  %v2543_v23 = vpop.f32.mrb[3].mxu0  ;;  %v2606_v27 = vmul.f32 %v3397_v26, %v3397_v26  ;;  %v2603_v40 = vld [vmem:[%s4323_s8] sm:$0x1] }
 0x1be   : > { %2579 = vst [vmem:[%s3670_s16] sm:$0xff] %v3398_v56  ;;  %v3400_v31 = vadd.f32 %v2543_v23, %v1388_v14  ;;  %v2604_v13 = vmul.f32 %v3398_v56, %v3398_v56 }
 0x1bf   : > { %2582 = vst [vmem:[%s3670_s16 + $0x18] sm:$0xff] %v3399_v12  ;;  %v2607_v11 = vmul.f32 %v3399_v12, %v3399_v12 }
 0x1c0   : > { %2580 = vst [vmem:[%s3670_s16 + $0x8] sm:$0xff] %v3400_v31  ;;  %v2588_v62 = vadd.f32 %v3400_v31, %v3398_v56  ;;  %v2605_v25 = vmul.f32 %v3400_v31, %v3400_v31 }
 0x1c2   : > { %v2589_v49 = vadd.f32 %v3397_v26, %v2588_v62  ;;  %v2612_v9 = vadd.f32 %v2605_v25, %v2604_v13 }
 0x1c4   : > { %v2613_v50 = vadd.f32 %v2612_v9, %v2606_v27  ;;  %v2590_v53 = vadd.f32 %v3399_v12, %v2589_v49 }
 0x1c6   : > { %v2591_v57 = vadd.f32 %v3404_v34, %v2590_v53  ;;  %v2614_v39 = vadd.f32 %v2613_v50, %v2607_v11 }
 0x1c8   : > { %v2592_v35 = vadd.f32 %v3408_v18, %v2591_v57  ;;  %v2615_v4 = vadd.f32 %v2614_v39, %v2608_v55 }
 0x1ca   : > { %v2593_v37 = vadd.f32 %v3402_v24, %v2592_v35  ;;  %v2616_v47 = vadd.f32 %v2615_v4, %v2609_v29 }
 0x1cc   : > { %v2594_v2 = vadd.f32 %v3406_v1, %v2593_v37  ;;  %v2617_v33 = vadd.f32 %v2616_v47, %v2610_v36 }
 0x1ce   : > { %v2595_v6 = vrot.slane %v2594_v2, 4  ;;  %v2618_v46 = vadd.f32 %v2617_v33, %v2611_v63 }
 0x1d0   : > { %v2596_v54 = vadd.f32 %v2595_v6, %v2594_v2  ;;  %v2619_v30 = vrot.slane %v2618_v46, 4 }
 0x1d2   : > { %v2597_v45 = vrot.slane %v2596_v54, 2  ;;  %v2620_v52 = vadd.f32 %v2619_v30, %v2618_v46 }
 0x1d4   : > { %v2598_v61 = vadd.f32 %v2597_v45, %v2596_v54  ;;  %v2621_v17 = vrot.slane %v2620_v52, 2 }
 0x1d6   : > { %v2599_v3 = vrot.slane %v2598_v61, 1  ;;  %v2622_v5 = vadd.f32 %v2621_v17, %v2620_v52 }
 0x1d8   : > { %v2600_v51 = vadd.f32 %v2599_v3, %v2598_v61  ;;  %v2623_v32 = vrot.slane %v2622_v5, 1 }
 0x1da   : > { %v2601_v14 = vadd.f32 %v2600_v51, %v2587_v10  ;;  %v2624_v58 = vadd.f32 %v2623_v32, %v2622_v5 }
 0x1dc   : > { %2602 = vst [vmem:[%s4322_s7] sm:$0x1] %v2601_v14  ;;  %v2625_v16 = vadd.f32 %v2624_v58, %v2603_v40 }
 0x1de   : > { %2626 = vst [vmem:[%s4323_s8] sm:$0x1] %v2625_v16 }
 0x1df PF: > { %s19_s29 = sadd.s32 1, %s3595_s29   ;;  %s4332_s27 = smov %s3591_s28 }
 0x1e0   : > { %p16_p6 = scmp.ge.s32.totalorder %s19_s29, 4   ;;  %s4333_s28 = smov %s4335_s30 }
 0x1e2   :  { %18 = sbr.rel (!%p16_p6) target bundleno = 2 (0x2), region = 115 }

// kernel: basic_block_forward.3
= control target key start
LH: loop header
LB: loop body
LE: loop exit
PB: predicated region body
PF: predicated region fallthrough
CT: control target
= control target key end

     0   :  { %s3676_s27 = smov 0   ;;  %s3678_s28 = smov 0   ;;  %s4180_s0 = inlined_call_operand.vmem [shape: bf16[2,9,9,512], index: 0, kind: input, shape index: {}]   ;;  %s4181_s1 = inlined_call_operand.vmem [shape: bf16[3,3,128,128], index: 1, kind: input, shape index: {}]   ;;  %s4182_s2 = inlined_call_operand.vmem [shape: bf16[128,128], index: 2, kind: input, shape index: {}]   ;;  %s4183_s3 = inlined_call_operand.vmem [shape: f32[2,8,8,128], index: 3, kind: output, shape index: {0}]   ;;  %s4184_s4 = inlined_call_operand.vmem [shape: f32[1,128], index: 4, kind: output, shape index: {1}]   ;;  %s4185_s5 = inlined_call_operand.vmem [shape: f32[1,128], index: 5, kind: output, shape index: {2}]   ;;  %s4186_s6 = inlined_call_operand.vmem [shape: f32[2,8,8,128], index: 6, kind: output, shape index: {3}]   ;;  %s4187_s7 = inlined_call_operand.vmem [shape: f32[1,128], index: 7, kind: output, shape index: {4}]   ;;  %s4188_s8 = inlined_call_operand.vmem [shape: f32[1,128], index: 8, kind: output, shape index: {5}]  }
   0x1   :  { %s3680_s29 = smov 0  }
   0x2 LB: > { %s28_s30 = sadd.s32 1, %s3624_s28  ;;  %p2781_p0 = scmp.ge.s32.totalorder %s3628_s29, 1  ;;  %s3628_s29 = sphi %s3680_s29, %s19_s29   ;;  %s3624_s28 = sphi %s3678_s28, %s4192_s28   ;;  %s3620_s27 = sphi %s3676_s27, %s4191_s27  }
   0x3   : > { %p29_p1 = scmp.ge.s32.totalorder %s28_s30, 2  ;;  %p307_p2 = scmp.lt.s32.totalorder %s3628_s29, 3 }
   0x5   : > { %s4194_s30 = smov (%p29_p1, %s28_s30), 0  ;;  %p308_p3 = pnand %p2781_p0, %p307_p2 }
   0x6   : > { %p372_p4 = scmp.lt.s32.totalorder (!%p308_p3), %s3620_s27, 1  ;;  %p2787_p5 = scmp.ne.s32.totalorder (!%p308_p3), %s3620_s27, 0 }
   0x7   : > { %311 = sbr.rel (%p308_p3) target bundleno = 432 (0x1b0), region = 32 }
   0xe   : > { %s373_s9 = scalar_select %p372_p4, %s3620_s27, 1 }
   0xf   : > { %417 = sbr.rel (%p2787_p5) target bundleno = 22 (0x16), region = 36  ;;  %v3630_v0 = vmov (!%p2787_p5), 0.0  }
  0x10   : > { %s3500_s10 = smul.u32 288, %s373_s9  ;;  %s3074_s11 = sshll.u32 %s373_s9, 6  ;;  %418 = vst [vmem:[%s4184_s4] sm:$0x1] (!%p2787_p5), %v3630_v0  ;;  %419 = vst [vmem:[%s4185_s5] sm:$0x1] (!%p2787_p5), %v3630_v0 }
  0x11   : > { %s3697_s14 = scalar_lea.vmem %s4183_s3, %s3074_s11  ;;  %s3702_s17 = scalar_lea.vmem %s4186_s6, %s3074_s11  ;;  %420 = vst [vmem:[%s4187_s7] sm:$0x1] (!%p2787_p5), %v3630_v0  ;;  %421 = vst [vmem:[%s4188_s8] sm:$0x1] (!%p2787_p5), %v3630_v0 }
  0x12   : > { %s3707_s20 = scalar_lea.vmem %s4180_s0, %s3500_s10 }
  0x16 PF: > { %v3526_v1 = vld [vmem:[%s4181_s1 + $0x40] sm:$0xff]   ;;  %v3528_v3 = vld [vmem:[%s4181_s1 + $0x48] sm:$0xff]   ;;  %v3530_v5 = vld [vmem:[%s4181_s1 + $0x50] sm:$0xff]   ;;  %vm761_vm0 = vsmask.f32 3328 }
  0x17   : > { %v3527_v2 = vld [vmem:[%s4181_s1 + $0x100] sm:$0xff]   ;;  %3196 = vmatprep.subr.bf16.mxu1 %v3526_v1  ;;  %v3529_v4 = vld [vmem:[%s4181_s1 + $0x108] sm:$0xff]   ;;  %v3531_v6 = vld [vmem:[%s4181_s1 + $0x110] sm:$0xff]   ;;  %vm762_vm1 = vsmask.f32 7440 }
  0x18   : > { %3292 = vmatprep.subr.bf16.mxu0 %v3527_v2  ;;  %3197 = vmatpush3.bf16.msra.mxu1 %v3526_v1  ;;  %v3532_v7 = vld [vmem:[%s4181_s1 + $0x58] sm:$0xff]   ;;  %v3534_v9 = vld [vmem:[%s4181_s1 + $0x60] sm:$0xff]   ;;  %v3536_v11 = vld [vmem:[%s4181_s1 + $0x68] sm:$0xff]  }
  0x19   : > { %3293 = vmatpush3.bf16.msra.mxu0 %v3527_v2  ;;  %3198 = vmatprep.subr.bf16.mxu1 %v3528_v3  ;;  %v3533_v8 = vld [vmem:[%s4181_s1 + $0x118] sm:$0xff]   ;;  %v3535_v10 = vld [vmem:[%s4181_s1 + $0x120] sm:$0xff]   ;;  %v3537_v14 = vld [vmem:[%s4181_s1 + $0x128] sm:$0xff]  }
  0x1a   : > { %3294 = vmatprep.subr.bf16.mxu0 %v3529_v4  ;;  %v446_v12 = vld [vmem:[%s3707_s20 + $0x4] sm:$0xf]  ;;  %v1200_v16 = vld [vmem:[%s3707_s20 + $0xc] sm:$0xf]  ;;  %v3538_v19 = vld [vmem:[%s4181_s1 + $0x70] sm:$0xff]  }
  0x1b   : > { %v447_v13 = vld [vmem:[%s3707_s20 + $0x24] sm:$0xf]  ;;  %v1201_v17 = vld [vmem:[%s3707_s20 + $0x2c] sm:$0xf]  ;;  %v3539_v20 = vld [vmem:[%s4181_s1 + $0x130] sm:$0xff]  }
  0x1c   : > { %3199 = vmatpush3.bf16.msra.mxu1 %v3528_v3  ;;  %v2804_v15 = vcombine.low %v446_v12, %v447_v13  ;;  %v2900_v18 = vcombine.low %v1200_v16, %v1201_v17  ;;  %v3540_v21 = vld [vmem:[%s4181_s1 + $0x78] sm:$0xff]   ;;  %v448_v23 = vld [vmem:[%s3707_s20 + $0x44] sm:$0xf]  ;;  %v1202_v26 = vld [vmem:[%s3707_s20 + $0x4c] sm:$0xf] }
  0x1d   : > { %3295 = vmatpush3.bf16.msra.mxu0 %v3529_v4  ;;  %3200 = vmatprep.subr.bf16.mxu1 %v3530_v5  ;;  %v3541_v22 = vld [vmem:[%s4181_s1 + $0x138] sm:$0xff]   ;;  %v3542_v24 = vld [vmem:[%s4181_s1] sm:$0xff]   ;;  %v1203_v27 = vld [vmem:[%s3707_s20 + $0x6c] sm:$0xf] }
  0x1e   : > { %3296 = vmatprep.subr.bf16.mxu0 %v3531_v6  ;;  %3212 = vmatprep.mubr.bf16.mxu1 %v2804_v15  ;;  %v449_v25 = vld [vmem:[%s3707_s20 + $0x64] sm:$0xf]  ;;  %v2901_v31 = vcombine.low %v1202_v26, %v1203_v27  ;;  %v3544_v33 = vld [vmem:[%s4181_s1 + $0x8] sm:$0xff]   ;;  %v3546_v38 = vld [vmem:[%s4181_s1 + $0x10] sm:$0xff]  }
  0x1f   : > { %3308 = vmatprep.mubr.bf16.mxu0 %v2900_v18  ;;  %v3543_v28 = vld [vmem:[%s4181_s1 + $0x140] sm:$0xff]   ;;  %v2805_v29 = vcombine.low %v448_v23, %v449_v25  ;;  %v1204_v34 = vld [vmem:[%s3707_s20 + $0x8c] sm:$0xf]  ;;  %v3547_v44 = vld [vmem:[%s4181_s1 + $0x150] sm:$0xff]  }
  0x20   : > { %3201 = vmatpush3.bf16.msra.mxu1 %v3530_v5  ;;  %v450_v30 = vld [vmem:[%s3707_s20 + $0x84] sm:$0xf]  ;;  %v1205_v35 = vld [vmem:[%s3707_s20 + $0xac] sm:$0xf]  ;;  %v422_v45 = vld [vmem:[%s3707_s20] sm:$0xf] }
  0x21   : > { %3297 = vmatpush3.bf16.msra.mxu0 %v3531_v6  ;;  %3202 = vmatprep.subr.bf16.mxu1 %v3532_v7  ;;  %v451_v32 = vld [vmem:[%s3707_s20 + $0xa4] sm:$0xf]  ;;  %v3545_v36 = vld [vmem:[%s4181_s1 + $0x148] sm:$0xff]   ;;  %v2902_v39 = vcombine.low %v1204_v34, %v1205_v35  ;;  %v3548_v46 = vld [vmem:[%s4181_s1 + $0x18] sm:$0xff]  }
  0x22   : > { %3298 = vmatprep.subr.bf16.mxu0 %v3533_v8  ;;  %v2806_v37 = vcombine.low %v450_v30, %v451_v32  ;;  %v452_v40 = vld [vmem:[%s3707_s20 + $0xc4] sm:$0xf]  ;;  %v1206_v42 = vld [vmem:[%s3707_s20 + $0xcc] sm:$0xf]  ;;  %v423_v48 = vld [vmem:[%s3707_s20 + $0x20] sm:$0xf] }
  0x23   : > { %v453_v41 = vld [vmem:[%s3707_s20 + $0xe4] sm:$0xf]  ;;  %v1207_v43 = vld [vmem:[%s3707_s20 + $0xec] sm:$0xf]  ;;  %v1370_v50 = vld [vmem:[%s3707_s20 + $0x8] sm:$0xf]  ;;  %v2816_v56 = vcombine.low %v422_v45, %v423_v48 }
  0x24   : > { %3203 = vmatpush3.bf16.msra.mxu1 %v3532_v7  ;;  %v2807_v47 = vcombine.low %v452_v40, %v453_v41  ;;  %v2903_v49 = vcombine.low %v1206_v42, %v1207_v43  ;;  %v1371_v51 = vld [vmem:[%s3707_s20 + $0x18] sm:$0x1]  ;;  %v1372_v52 = vld [vmem:[%s3707_s20 + $0x28] sm:$0xf]  ;;  %v1387_v53 = vshrl.u32 %v1370_v50, 16  ;;  %v1390_v54 = vshll.u32 %v1370_v50, 16  ;;  %vm3823_vm2 = vmor %vm761_vm0, %vm762_vm1 }
  0x25   : > { %3299 = vmatpush3.bf16.msra.mxu0 %v3533_v8  ;;  %3204 = vmatprep.subr.bf16.mxu1 %v3534_v9  ;;  %v3549_v55 = vld [vmem:[%s4181_s1 + $0x158] sm:$0xff]   ;;  %v1396_v58 = vshll.u32 %v1371_v51, 16  ;;  %v1401_v59 = vshrl.u32 %v1372_v52, 16  ;;  %v1404_v60 = vshll.u32 %v1372_v52, 16  ;;  %v3550_v2 = vld [vmem:[%s4181_s1 + $0x20] sm:$0xff]  }
  0x26   : > { %3300 = vmatprep.subr.bf16.mxu0 %v3535_v10  ;;  %v1373_v57 = vld [vmem:[%s3707_s20 + $0x38] sm:$0x1]  ;;  %v1389_v61 = vrot.slane %v1387_v53, 4  ;;  %v1392_v62 = vrot.slane %v1390_v54, 5  ;;  %v3551_v3 = vld [vmem:[%s4181_s1 + $0x160] sm:$0xff]  }
  0x27   : > { %v1410_v63 = vshll.u32 %v1373_v57, 16  ;;  %v1403_v0 = vrot.slane %v1401_v59, 4  ;;  %v1406_v1 = vrot.slane %v1404_v60, 5  ;;  %v1398_v6 = vrot.slane %v1396_v58, 5  ;;  %v1377_v13 = vld [vmem:[%s3707_s20 + $0x78] sm:$0x1] }
  0x28   : > { %3205 = vmatpush3.bf16.msra.mxu1 %v3534_v9  ;;  %v1393_v5 = vor.u32 %v1392_v62, %v1389_v61  ;;  %v1374_v9 = vld [vmem:[%s3707_s20 + $0x48] sm:$0xf]  ;;  %v424_v40 = vld [vmem:[%s3707_s20 + $0x40] sm:$0xf]  ;;  %v1381_v51 = vld [vmem:[%s3707_s20 + $0xb8] sm:$0x1] }
  0x29   : > { %3301 = vmatpush3.bf16.msra.mxu0 %v3535_v10  ;;  %3206 = vmatprep.subr.bf16.mxu1 %v3536_v11  ;;  %v1412_v7 = vrot.slane %v1410_v63, 5  ;;  %v1407_v8 = vor.u32 %v1406_v1, %v1403_v0  ;;  %v1375_v10 = vld [vmem:[%s3707_s20 + $0x58] sm:$0x1]  ;;  %v1418_v15 = vshll.u32 %v1374_v9, 16  ;;  %v3558_v41 = vld [vmem:[%s4181_s1 + $0x80] sm:$0xff]   ;;  %v1466_v57 = vshll.u32 %v1381_v51, 16 }
  0x2a   : > { %3302 = vmatprep.subr.bf16.mxu0 %v3537_v14  ;;  %v1394_v12 = vrot.slane %v1393_v5, 4  ;;  %v1424_v23 = vshll.u32 %v1375_v10, 16  ;;  %v425_v42 = vld [vmem:[%s3707_s20 + $0x60] sm:$0xf]  ;;  %v1378_v48 = vld [vmem:[%s3707_s20 + $0x88] sm:$0xf] }
  0x2b   : > { %v1408_v16 = vrot.slane %v1407_v8, 4  ;;  %v3559_v43 = vld [vmem:[%s4181_s1 + $0x180] sm:$0xff]   ;;  %v1380_v50 = vld [vmem:[%s3707_s20 + $0xa8] sm:$0xf]  ;;  %v1443_v52 = vshrl.u32 %v1378_v48, 16  ;;  %v1446_v53 = vshll.u32 %v1378_v48, 16  ;;  %v2817_v58 = vcombine.low %v424_v40, %v425_v42 }
  0x2c   : > { %3207 = vmatpush3.bf16.msra.mxu1 %v3536_v11  ;;  %v1376_v11 = vld [vmem:[%s3707_s20 + $0x68] sm:$0xf]  ;;  %v1426_v34 = vrot.slane %v1424_v23, 5  ;;  %v748_v40 = vld [vmem:[%s3707_s20 + $0x30] sm:$0x1]  ;;  %v3565_v51 = vld [vmem:[%s4181_s1 + $0x198] sm:$0xff]  }
  0x2d   : > { %3303 = vmatpush3.bf16.msra.mxu0 %v3537_v14  ;;  %3208 = vmatprep.subr.bf16.mxu1 %v3538_v19  ;;  %v1415_v14 = vshrl.u32 %v1374_v9, 16  ;;  %v1429_v17 = vshrl.u32 %v1376_v11, 16  ;;  %v1432_v18 = vshll.u32 %v1376_v11, 16  ;;  %v1413_v25 = vsel %vm3823_vm2, %v1408_v16, %v1412_v7  ;;  %v3560_v63 = vld [vmem:[%s4181_s1 + $0x88] sm:$0xff]   ;;  %v3878_v7 = vld [vmem:[%s3707_s20 + $0xe0] sm:$0xf] }
  0x2e   : > { %3304 = vmatprep.subr.bf16.mxu0 %v3539_v20  ;;  %v1445_v59 = vrot.slane %v1443_v52, 4  ;;  %v1448_v60 = vrot.slane %v1446_v53, 5  ;;  %v1382_v8 = vld [vmem:[%s3707_s20 + $0xc8] sm:$0xf]  ;;  %v1383_v9 = vld [vmem:[%s3707_s20 + $0xd8] sm:$0x1] }
  0x2f   : > { %v1431_v26 = vrot.slane %v1429_v17, 4  ;;  %v1434_v27 = vrot.slane %v1432_v18, 5  ;;  %v1384_v10 = vld [vmem:[%s3707_s20 + $0xe8] sm:$0xf]  ;;  %v1480_v16 = vshll.u32 %v1383_v9, 16  ;;  %v3562_v17 = vld [vmem:[%s4181_s1 + $0x90] sm:$0xff]  }
  0x30   : > { %3209 = vmatpush3.bf16.msra.mxu1 %v3538_v19  ;;  %v3552_v19 = vld [vmem:[%s4181_s1 + $0x28] sm:$0xff]   ;;  %v1449_v5 = vor.u32 %v1448_v60, %v1445_v59 }
  0x31   : > { %3305 = vmatpush3.bf16.msra.mxu0 %v3539_v20  ;;  %3210 = vmatprep.subr.bf16.mxu1 %v3540_v21  ;;  %v1399_v20 = vsel %vm3823_vm2, %v1394_v12, %v1398_v6  ;;  %v1435_v32 = vor.u32 %v1434_v27, %v1431_v26  ;;  %v3875_v6 = vld [vmem:[%s3707_s20 + $0xc0] sm:$0xf]  ;;  %v3561_v11 = vld [vmem:[%s4181_s1 + $0x188] sm:$0xff]   ;;  %v3563_v26 = vld [vmem:[%s4181_s1 + $0x190] sm:$0xff]  }
  0x32   : > { %3306 = vmatprep.subr.bf16.mxu0 %v3541_v22  ;;  %v2928_v30 = vcombine.low %v1399_v20, %v1413_v25  ;;  %v1450_v18 = vrot.slane %v1449_v5, 4  ;;  %v1488_v20 = vshll.u32 %v1384_v10, 16  ;;  %v1482_v25 = vrot.slane %v1480_v16, 5  ;;  %v751_v5 = vld [vmem:[%s3707_s20 + $0x60] sm:$0xf]  ;;  %v3568_v16 = vld [vmem:[%s4181_s1 + $0xa8] sm:$0xff]  }
  0x34   : > { %3211 = vmatpush3.bf16.msra.mxu1 %v3540_v21  ;;  %v1417_v21 = vrot.slane %v1415_v14, 4  ;;  %v1471_v14 = vshrl.u32 %v1382_v8, 16 }
  0x35   : > { %3307 = vmatpush3.bf16.msra.mxu0 %v3541_v22  ;;  %3220 = vmatprep.subr.bf16.mxu1 %v3542_v24  ;;  %v1420_v22 = vrot.slane %v1418_v15, 5  ;;  %v1474_v15 = vshll.u32 %v1382_v8, 16  ;;  %v3567_v8 = vld [vmem:[%s4181_s1 + $0x1a0] sm:$0xff]  }
  0x36   : > { %3316 = vmatprep.subr.bf16.mxu0 %v3543_v28  ;;  %v1473_v23 = vrot.slane %v1471_v14, 4 }
  0x37   : > { %3213 = vmatmul.mubr.bf16.vlgmr.msra.gmra.mrb[0].mxu1 %v2805_v29  ;;  %v3554_v29 = vld [vmem:[%s4181_s1 + $0x30] sm:$0xff]  }
  0x38   : > { %3221 = vmatpush3.bf16.msra.mxu1 %v3542_v24  ;;  %3309 = vmatmul.mubr.bf16.vlgmr.msra.gmra.mrb[0].mxu0 %v2901_v31  ;;  %v3553_v24 = vld [vmem:[%s4181_s1 + $0x168] sm:$0xff]   ;;  %v1421_v31 = vor.u32 %v1420_v22, %v1417_v21 }
  0x39   : > { %3317 = vmatpush3.bf16.msra.mxu0 %v3543_v28  ;;  %3222 = vmatprep.subr.bf16.mxu1 %v3544_v33  ;;  %v1438_v28 = vshll.u32 %v1377_v13, 16  ;;  %v1385_v13 = vld [vmem:[%s3707_s20 + $0xf8] sm:$0x1] }
  0x3a   : > { %3318 = vmatprep.subr.bf16.mxu0 %v3545_v36  ;;  %3216 = vmatprep.mubr.bf16.mxu1 %v2806_v37  ;;  %v1436_v37 = vrot.slane %v1435_v32, 4  ;;  %v1494_v21 = vshll.u32 %v1385_v13, 16  ;;  %v2819_v32 = vcombine.low %v3875_v6, %v3878_v7  ;;  %v752_v6 = vld [vmem:[%s3707_s20 + $0x70] sm:$0x1] }
  0x3b   : > { %3312 = vmatprep.mubr.bf16.mxu0 %v2902_v39  ;;  %v1440_v35 = vrot.slane %v1438_v28, 5  ;;  %v3557_v39 = vld [vmem:[%s4181_s1 + $0x178] sm:$0xff]  }
  0x3c   : > { %3223 = vmatpush3.bf16.msra.mxu1 %v3544_v33  ;;  %v3555_v33 = vld [vmem:[%s4181_s1 + $0x170] sm:$0xff]  }
  0x3d   : > { %3319 = vmatpush3.bf16.msra.mxu0 %v3545_v36  ;;  %3224 = vmatprep.subr.bf16.mxu1 %v3546_v38  ;;  %v1422_v36 = vrot.slane %v1421_v31, 4  ;;  %v1441_v45 = vsel %vm3823_vm2, %v1436_v37, %v1440_v35  ;;  %v746_v35 = vld [vmem:[%s3707_s20 + $0x10] sm:$0x1] }
  0x3e   : > { %3320 = vmatprep.subr.bf16.mxu0 %v3547_v44 }
  0x3f   : > { %3217 = vmatmul.mubr.bf16.gmra.mrb[4].mxu1 %v2807_v47  ;;  %v427_v47 = vld [vmem:[%s3707_s20 + $0xa0] sm:$0xf] }
  0x40   : > { %3225 = vmatpush3.bf16.msra.mxu1 %v3546_v38  ;;  %3313 = vmatmul.mubr.bf16.gmra.mrb[4].mxu0 %v2903_v49  ;;  %v3556_v38 = vld [vmem:[%s4181_s1 + $0x38] sm:$0xff]  }
  0x41   : > { %3321 = vmatpush3.bf16.msra.mxu0 %v3547_v44  ;;  %3226 = vmatprep.subr.bf16.mxu1 %v3548_v46  ;;  %v1427_v44 = vsel %vm3823_vm2, %v1422_v36, %v1426_v34  ;;  %v1379_v49 = vld [vmem:[%s3707_s20 + $0x98] sm:$0x1]  ;;  %v745_v34 = vld [vmem:[%s3707_s20] sm:$0xf] }
  0x42   : > { %3322 = vmatprep.subr.bf16.mxu0 %v3549_v55  ;;  %3236 = vmatprep.mubr.bf16.mxu1 %v2816_v56  ;;  %v1452_v54 = vshll.u32 %v1379_v49, 16  ;;  %v1460_v56 = vshll.u32 %v1380_v50, 16  ;;  %v2929_v62 = vcombine.low %v1427_v44, %v1441_v45  ;;  %v3564_v36 = vld [vmem:[%s4181_s1 + $0x98] sm:$0xff]   ;;  %v768_v42 = vshll.u32 %v745_v34, 16 }
  0x43   : > { %3332 = vmatprep.mubr.bf16.mxu0 %v2928_v30  ;;  %v1496_v30 = vrot.slane %v1494_v21, 5  ;;  %v774_v44 = vshll.u32 %v746_v35, 16  ;;  %v3569_v21 = vld [vmem:[%s4181_s1 + $0x1a8] sm:$0xff]  }
  0x44   : > { %3227 = vmatpush3.bf16.msra.mxu1 %v3548_v46  ;;  %v426_v46 = vld [vmem:[%s3707_s20 + $0x80] sm:$0xf]  ;;  %v1454_v0 = vrot.slane %v1452_v54, 5  ;;  %v1462_v1 = vrot.slane %v1460_v56, 5  ;;  %v770_v49 = vrot.slane %v768_v42, 5 }
  0x45   : > { %3323 = vmatpush3.bf16.msra.mxu0 %v3549_v55  ;;  %3228 = vmatprep.subr.bf16.mxu1 %v3550_v2  ;;  %v1457_v55 = vshrl.u32 %v1380_v50, 16  ;;  %v788_v50 = vshll.u32 %v748_v40, 16  ;;  %v3566_v56 = vld [vmem:[%s4181_s1 + $0xa0] sm:$0xff]   ;;  %v776_v59 = vrot.slane %v774_v44, 5  ;;  %v756_v42 = vld [vmem:[%s3707_s20 + $0xb0] sm:$0x1] }
  0x46   : > { %3324 = vmatprep.subr.bf16.mxu0 %v3551_v3  ;;  %v1455_v27 = vsel %vm3823_vm2, %v1450_v18, %v1454_v0  ;;  %v755_v40 = vld [vmem:[%s3707_s20 + $0xa0] sm:$0xf] }
  0x47   : > { %v1459_v61 = vrot.slane %v1457_v55, 4  ;;  %v2940_v55 = vld [vmem:[%s3707_s20 + $0x20] sm:$0xf]  ;;  %v790_v60 = vrot.slane %v788_v50, 5  ;;  %v838_v50 = vshll.u32 %v755_v40, 16 }
  0x48   : > { %3229 = vmatpush3.bf16.msra.mxu1 %v3550_v2  ;;  %v1468_v2 = vrot.slane %v1466_v57, 5 }
  0x49   : > { %3325 = vmatpush3.bf16.msra.mxu0 %v3551_v3  ;;  %3230 = vmatprep.subr.bf16.mxu1 %v3552_v19  ;;  %v2818_v3 = vcombine.low %v426_v46, %v427_v47  ;;  %v1463_v12 = vor.u32 %v1462_v1, %v1459_v61  ;;  %v2941_v61 = vld [vmem:[%s3707_s20 + $0x40] sm:$0xf] }
  0x4a   : > { %3326 = vmatprep.subr.bf16.mxu0 %v3553_v24  ;;  %v2964_v0 = vcombine.low %v2940_v55, %v2941_v61  ;;  %v749_v1 = vld [vmem:[%s3707_s20 + $0x40] sm:$0xf]  ;;  %v760_v61 = vld [vmem:[%s3707_s20 + $0xf0] sm:$0x1] }
  0x4b   : > { %v1464_v22 = vrot.slane %v1463_v12, 4  ;;  %v793_v7 = vshrl.u32 %v749_v1, 16 }
  0x4c   : > { %3231 = vmatpush3.bf16.msra.mxu1 %v3552_v19  ;;  %v1485_v19 = vshrl.u32 %v1384_v10, 16  ;;  %v796_v10 = vshll.u32 %v749_v1, 16 }
  0x4d   : > { %3327 = vmatpush3.bf16.msra.mxu0 %v3553_v24  ;;  %3232 = vmatprep.subr.bf16.mxu1 %v3554_v29  ;;  %v1476_v24 = vrot.slane %v1474_v15, 5  ;;  %v1469_v31 = vsel %vm3823_vm2, %v1464_v22, %v1468_v2  ;;  %v750_v2 = vld [vmem:[%s3707_s20 + $0x50] sm:$0x1]  ;;  %v795_v13 = vrot.slane %v793_v7, 4  ;;  %v810_v15 = vshll.u32 %v751_v5, 16 }
  0x4e   : > { %3328 = vmatprep.subr.bf16.mxu0 %v3555_v33  ;;  %v1487_v28 = vrot.slane %v1485_v19, 4  ;;  %v2930_v37 = vcombine.low %v1455_v27, %v1469_v31  ;;  %v802_v14 = vshll.u32 %v750_v2, 16  ;;  %v798_v18 = vrot.slane %v796_v10, 5  ;;  %v3571_v31 = vld [vmem:[%s4181_s1 + $0x1b0] sm:$0xff]  }
  0x4f   : > { %v872_v10 = vshll.u32 %v760_v61, 16 }
  0x50   : > { %3233 = vmatpush3.bf16.msra.mxu1 %v3554_v29  ;;  %v1490_v29 = vrot.slane %v1488_v20, 5  ;;  %v816_v20 = vshll.u32 %v752_v6, 16  ;;  %v804_v27 = vrot.slane %v802_v14, 5  ;;  %v3577_v6 = vld [vmem:[%s4181_s1 + $0x1c8] sm:$0xff]  }
  0x51   : > { %3329 = vmatpush3.bf16.msra.mxu0 %v3555_v33  ;;  %3234 = vmatprep.subr.bf16.mxu1 %v3556_v38  ;;  %v1477_v33 = vor.u32 %v1476_v24, %v1473_v23  ;;  %v812_v23 = vrot.slane %v810_v15, 5  ;;  %v799_v24 = vor.u32 %v798_v18, %v795_v13  ;;  %v2944_v15 = vld [vmem:[%s3707_s20 + $0xa0] sm:$0xf]  ;;  %v874_v18 = vrot.slane %v872_v10, 5 }
  0x52   : > { %3330 = vmatprep.subr.bf16.mxu0 %v3557_v39 }
  0x54   : > { %3235 = vmatpush3.bf16.msra.mxu1 %v3556_v38  ;;  %v1491_v38 = vor.u32 %v1490_v29, %v1487_v28  ;;  %v818_v28 = vrot.slane %v816_v20, 5  ;;  %v800_v29 = vrot.slane %v799_v24, 4  ;;  %v2947_v24 = vld [vmem:[%s3707_s20 + $0x100] sm:$0xf] }
  0x55   : > { %3331 = vmatpush3.bf16.msra.mxu0 %v3557_v39  ;;  %3244 = vmatprep.subr.bf16.mxu1 %v3558_v41  ;;  %v747_v39 = vld [vmem:[%s3707_s20 + $0x20] sm:$0xf] }
  0x56   : > { %3340 = vmatprep.subr.bf16.mxu0 %v3559_v43  ;;  %v779_v45 = vshrl.u32 %v747_v39, 16  ;;  %v782_v46 = vshll.u32 %v747_v39, 16  ;;  %v1492_v47 = vrot.slane %v1491_v38, 4  ;;  %v805_v35 = vsel %vm3823_vm2, %v800_v29, %v804_v27  ;;  %v753_v38 = vld [vmem:[%s3707_s20 + $0x80] sm:$0xf]  ;;  %v3578_v27 = vld [vmem:[%s4181_s1 + $0xd0] sm:$0xff]  }
  0x57   : > { %3237 = vmatmul.mubr.bf16.vlgmr.msra.gmra.mrb[0].mxu1 %v2817_v58  ;;  %v754_v39 = vld [vmem:[%s3707_s20 + $0x90] sm:$0x1]  ;;  %v824_v44 = vshll.u32 %v753_v38, 16 }
  0x58   : > { %3245 = vmatpush3.bf16.msra.mxu1 %v3558_v41  ;;  %3333 = vmatmul.mubr.bf16.vlgmr.msra.gmra.mrb[0].mxu0 %v2929_v62  ;;  %v765_v41 = vshrl.u32 %v745_v34, 16  ;;  %v781_v53 = vrot.slane %v779_v45, 4  ;;  %v784_v54 = vrot.slane %v782_v46, 5  ;;  %v1497_v57 = vsel %vm3823_vm2, %v1492_v47, %v1496_v30  ;;  %v3948_v34 = vld [vmem:[%s3707_s20 + $0x60] sm:$0xf] }
  0x59   : > { %3341 = vmatpush3.bf16.msra.mxu0 %v3559_v43  ;;  %3246 = vmatprep.subr.bf16.mxu1 %v3560_v63  ;;  %v1478_v43 = vrot.slane %v1477_v33, 4  ;;  %v3573_v33 = vld [vmem:[%s4181_s1 + $0x1b8] sm:$0xff]   ;;  %v830_v45 = vshll.u32 %v754_v39, 16  ;;  %v835_v46 = vshrl.u32 %v755_v40, 16  ;;  %v3575_v47 = vld [vmem:[%s4181_s1 + $0x1c0] sm:$0xff]   ;;  %v826_v55 = vrot.slane %v824_v44, 5 }
  0x5a   : > { %3342 = vmatprep.subr.bf16.mxu0 %v3561_v11  ;;  %3240 = vmatprep.mubr.bf16.mxu1 %v2818_v3  ;;  %v767_v48 = vrot.slane %v765_v41, 4  ;;  %v3574_v41 = vld [vmem:[%s4181_s1 + $0xc0] sm:$0xff]   ;;  %v3580_v39 = vld [vmem:[%s4181_s1 + $0xd8] sm:$0xff]  }
  0x5b   : > { %3336 = vmatprep.mubr.bf16.mxu0 %v2930_v37  ;;  %v1483_v52 = vsel %vm3823_vm2, %v1478_v43, %v1482_v25  ;;  %v3570_v25 = vld [vmem:[%s4181_s1 + $0xb0] sm:$0xff]   ;;  %v2943_v37 = vld [vmem:[%s3707_s20 + $0x80] sm:$0xf]  ;;  %v821_v43 = vshrl.u32 %v753_v38, 16  ;;  %v2977_v38 = vld [vmem:[%s3707_s20 + $0x44] sm:$0xf] }
  0x5c   : > { %3247 = vmatpush3.bf16.msra.mxu1 %v3560_v63  ;;  %v771_v58 = vor.u32 %v770_v49, %v767_v48  ;;  %v2931_v62 = vcombine.low %v1483_v52, %v1497_v57  ;;  %v785_v63 = vor.u32 %v784_v54, %v781_v53  ;;  %v2965_v49 = vcombine.low %v3948_v34, %v2943_v37  ;;  %v757_v52 = vld [vmem:[%s3707_s20 + $0xc0] sm:$0xf]  ;;  %v758_v53 = vld [vmem:[%s3707_s20 + $0xd0] sm:$0x1]  ;;  %v1031_v34 = vld [vmem:[%s3707_s20 + $0x28] sm:$0xf] }
  0x5d   : > { %3343 = vmatpush3.bf16.msra.mxu0 %v3561_v11  ;;  %3248 = vmatprep.subr.bf16.mxu1 %v3562_v17  ;;  %v807_v11 = vshrl.u32 %v751_v5, 16  ;;  %v823_v54 = vrot.slane %v821_v43, 4  ;;  %v837_v57 = vrot.slane %v835_v46, 4  ;;  %v858_v2 = vshll.u32 %v758_v53, 16  ;;  %v3581_v40 = vld [vmem:[%s4181_s1 + $0x1d8] sm:$0xff]   ;;  %v3582_v43 = vld [vmem:[%s4181_s1 + $0xe0] sm:$0xff]  }
  0x5e   : > { %3344 = vmatprep.subr.bf16.mxu0 %v3563_v26  ;;  %v772_v3 = vrot.slane %v771_v58, 4  ;;  %v786_v9 = vrot.slane %v785_v63, 4  ;;  %v759_v58 = vld [vmem:[%s3707_s20 + $0xe0] sm:$0xf]  ;;  %v852_v63 = vshll.u32 %v757_v52, 16  ;;  %v3585_v46 = vld [vmem:[%s4181_s1 + $0x1e8] sm:$0xff]  }
  0x5f   : > { %3241 = vmatmul.mubr.bf16.gmra.mrb[4].mxu1 %v2819_v32  ;;  %v809_v19 = vrot.slane %v807_v11, 4  ;;  %v3572_v32 = vld [vmem:[%s4181_s1 + $0xb8] sm:$0xff]   ;;  %v827_v1 = vor.u32 %v826_v55, %v823_v54  ;;  %v866_v5 = vshll.u32 %v759_v58, 16  ;;  %v3583_v44 = vld [vmem:[%s4181_s1 + $0x1e0] sm:$0xff]  }
  0x60   : > { %3249 = vmatpush3.bf16.msra.mxu1 %v3562_v17  ;;  %3337 = vmatmul.mubr.bf16.gmra.mrb[4].mxu0 %v2931_v62  ;;  %v777_v12 = vsel %vm3823_vm2, %v772_v3, %v776_v59  ;;  %v791_v17 = vsel %vm3823_vm2, %v786_v9, %v790_v60  ;;  %v840_v59 = vrot.slane %v838_v50, 5  ;;  %v849_v62 = vshrl.u32 %v757_v52, 16  ;;  %v3589_v50 = vld [vmem:[%s4181_s1 + $0x1f8] sm:$0xff]   ;;  %v1033_v52 = vld [vmem:[%s3707_s20 + $0x68] sm:$0xf]  ;;  %v3591_v53 = vld [vmem:[%s4182_s2] sm:$0xff]  }
  0x61   : > { %3345 = vmatpush3.bf16.msra.mxu0 %v3563_v26  ;;  %3250 = vmatprep.subr.bf16.mxu1 %v3564_v36  ;;  %v2844_v22 = vcombine.low %v777_v12, %v791_v17  ;;  %v813_v26 = vor.u32 %v812_v23, %v809_v19  ;;  %v863_v3 = vshrl.u32 %v759_v58, 16  ;;  %v854_v9 = vrot.slane %v852_v63, 5  ;;  %v2945_v19 = vld [vmem:[%s3707_s20 + $0xc0] sm:$0xf]  ;;  %v2978_v54 = vld [vmem:[%s3707_s20 + $0x64] sm:$0xf] }
  0x62   : > { %3346 = vmatprep.subr.bf16.mxu0 %v3565_v51  ;;  %3356 = vmatprep.mubr.bf16.mxu0 %v2964_v0  ;;  %v3576_v0 = vld [vmem:[%s4181_s1 + $0xc8] sm:$0xff]   ;;  %v841_v7 = vor.u32 %v840_v59, %v837_v57  ;;  %v828_v11 = vrot.slane %v827_v1, 4  ;;  %v860_v12 = vrot.slane %v858_v2, 5  ;;  %v868_v14 = vrot.slane %v866_v5, 5  ;;  %v2946_v23 = vld [vmem:[%s3707_s20 + $0xe0] sm:$0xf] }
  0x63   : > { %3260 = vmatprep.mubr.bf16.mxu1 %v2844_v22  ;;  %v814_v30 = vrot.slane %v813_v26, 4  ;;  %v865_v13 = vrot.slane %v863_v3, 4  ;;  %v2966_v22 = vcombine.low %v2944_v15, %v2945_v19  ;;  %v2967_v37 = vcombine.low %v2946_v23, %v2947_v24  ;;  %v3012_v55 = vld [vmem:[%s3707_s20 + $0x20] sm:$0xf]  ;;  %v3015_v59 = vld [vmem:[%s3707_s20 + $0x50] sm:$0x1] }
  0x64   : > { %3251 = vmatpush3.bf16.msra.mxu1 %v3564_v36  ;;  %v3590_v57 = vld [vmem:[%s4181_s1 + $0x200] sm:$0xff]   ;;  %v2013_v61 = vshll.u32 %v3012_v55, 16  ;;  %v1034_v63 = vld [vmem:[%s3707_s20 + $0x88] sm:$0xf] }
  0x65   : > { %3347 = vmatpush3.bf16.msra.mxu0 %v3565_v51  ;;  %3252 = vmatprep.subr.bf16.mxu1 %v3566_v56  ;;  %v819_v36 = vsel %vm3823_vm2, %v814_v30, %v818_v28  ;;  %v844_v51 = vshll.u32 %v756_v42, 16  ;;  %v3579_v30 = vld [vmem:[%s4181_s1 + $0x1d0] sm:$0xff]   ;;  %v3014_v58 = vld [vmem:[%s3707_s20 + $0x40] sm:$0xf]  ;;  %v1035_v3 = vld [vmem:[%s3707_s20 + $0xa8] sm:$0xf] }
  0x66   : > { %3348 = vmatprep.subr.bf16.mxu0 %v3567_v8  ;;  %v2845_v48 = vcombine.low %v805_v35, %v819_v36  ;;  %v2976_v35 = vld [vmem:[%s3707_s20 + $0x24] sm:$0xf]  ;;  %v2027_v1 = vshll.u32 %v3014_v58, 16  ;;  %v3593_v15 = vld [vmem:[%s4182_s2 + $0x8] sm:$0xff]  }
  0x67   : > { %v846_v60 = vrot.slane %v844_v51, 5  ;;  %v3000_v42 = vcombine.low %v2976_v35, %v2977_v38  ;;  %v1032_v51 = vld [vmem:[%s3707_s20 + $0x48] sm:$0xf]  ;;  %v2980_v5 = vld [vmem:[%s3707_s20 + $0xa4] sm:$0xf] }
  0x68   : > { %3253 = vmatpush3.bf16.msra.mxu1 %v3566_v56  ;;  %v832_v56 = vrot.slane %v830_v45, 5  ;;  %v3584_v45 = vld [vmem:[%s4181_s1 + $0xe8] sm:$0xff]   ;;  %v2873_v2 = vcombine.low %v1032_v51, %v1033_v52  ;;  %v3018_v38 = vld [vmem:[%s3707_s20 + $0x80] sm:$0xf] }
  0x69   : > { %3349 = vmatpush3.bf16.msra.mxu0 %v3567_v8  ;;  %3254 = vmatprep.subr.bf16.mxu1 %v3568_v16  ;;  %v851_v8 = vrot.slane %v849_v62, 4  ;;  %v2979_v62 = vld [vmem:[%s3707_s20 + $0x84] sm:$0xf]  ;;  %v1036_v24 = vld [vmem:[%s3707_s20 + $0xc8] sm:$0xf] }
  0x6a   : > { %3350 = vmatprep.subr.bf16.mxu0 %v3569_v21  ;;  %v833_v20 = vsel %vm3823_vm2, %v828_v11, %v832_v56  ;;  %v3013_v56 = vld [vmem:[%s3707_s20 + $0x30] sm:$0x1]  ;;  %v2029_v11 = vrot.slane %v2027_v1, 5  ;;  %v2324_v35 = vld [vmem:[%s3707_s20 + $0x2c] sm:$0xf]  ;;  %v3598_v51 = vld [vmem:[%s4181_s1 + $0x220] sm:$0xff]  }
  0x6b   : > { %v855_v17 = vor.u32 %v854_v9, %v851_v8  ;;  %v2981_v8 = vld [vmem:[%s3707_s20 + $0xc4] sm:$0xf]  ;;  %v2019_v9 = vshll.u32 %v3013_v56, 16 }
  0x6c   : > { %3255 = vmatpush3.bf16.msra.mxu1 %v3568_v16  ;;  %v842_v16 = vrot.slane %v841_v7, 4  ;;  %v2015_v7 = vrot.slane %v2013_v61, 5  ;;  %v3002_v19 = vcombine.low %v2980_v5, %v2981_v8  ;;  %v3019_v61 = vld [vmem:[%s3707_s20 + $0x90] sm:$0x1] }
  0x6d   : > { %3351 = vmatpush3.bf16.msra.mxu0 %v3569_v21  ;;  %3256 = vmatprep.subr.bf16.mxu1 %v3570_v25  ;;  %v869_v21 = vor.u32 %v868_v14, %v865_v13  ;;  %v856_v26 = vrot.slane %v855_v17, 4  ;;  %v3001_v13 = vcombine.low %v2978_v54, %v2979_v62  ;;  %v3592_v17 = vld [vmem:[%s4181_s1 + $0x208] sm:$0xff]   ;;  %v3021_v5 = vld [vmem:[%s3707_s20 + $0xb0] sm:$0x1] }
  0x6e   : > { %3352 = vmatprep.subr.bf16.mxu0 %v3571_v31  ;;  %v3600_v54 = vld [vmem:[%s4181_s1 + $0x228] sm:$0xff]  }
  0x6f   : > { %v870_v29 = vrot.slane %v869_v21, 4  ;;  %v2021_v21 = vrot.slane %v2019_v9, 5 }
  0x70   : > { %3257 = vmatpush3.bf16.msra.mxu1 %v3570_v25  ;;  %v847_v25 = vsel %vm3823_vm2, %v842_v16, %v846_v60  ;;  %v2010_v60 = vshrl.u32 %v3012_v55, 16  ;;  %v3601_v55 = vld [vmem:[%s4182_s2 + $0x28] sm:$0xff]  }
  0x71   : > { %3353 = vmatpush3.bf16.msra.mxu0 %v3571_v31  ;;  %3258 = vmatprep.subr.bf16.mxu1 %v3572_v32  ;;  %v2846_v28 = vcombine.low %v833_v20, %v847_v25  ;;  %v861_v31 = vsel %vm3823_vm2, %v856_v26, %v860_v12  ;;  %v2033_v12 = vshll.u32 %v3015_v59, 16  ;;  %v1037_v25 = vld [vmem:[%s3707_s20 + $0xe8] sm:$0xf]  ;;  %v3595_v26 = vld [vmem:[%s4182_s2 + $0x10] sm:$0xff]  }
  0x72   : > { %3354 = vmatprep.subr.bf16.mxu0 %v3573_v33 }
  0x73   : > { %v2035_v23 = vrot.slane %v2033_v12, 5 }
  0x74   : > { %3259 = vmatpush3.bf16.msra.mxu1 %v3572_v32  ;;  %v875_v32 = vsel %vm3823_vm2, %v870_v29, %v874_v18  ;;  %v2874_v18 = vcombine.low %v1034_v63, %v1035_v3  ;;  %v3594_v29 = vld [vmem:[%s4181_s1 + $0x210] sm:$0xff]   ;;  %v3026_v3 = vld [vmem:[%s3707_s20 + $0x100] sm:$0xf] }
  0x75   : > { %3355 = vmatpush3.bf16.msra.mxu0 %v3573_v33  ;;  %3268 = vmatprep.subr.bf16.mxu1 %v3574_v41  ;;  %v1030_v33 = vld [vmem:[%s3707_s20 + $0x8] sm:$0xf]  ;;  %v2847_v36 = vcombine.low %v861_v31, %v875_v32 }
  0x76   : > { %3364 = vmatprep.subr.bf16.mxu0 %v3575_v47 }
  0x77   : > { %3261 = vmatmul.mubr.bf16.vlgmr.msra.gmra.mrb[0].mxu1 %v2845_v48  ;;  %v3587_v48 = vld [vmem:[%s4181_s1 + $0x1f0] sm:$0xff]  }
  0x78   : > { %3269 = vmatpush3.bf16.msra.mxu1 %v3574_v41  ;;  %3357 = vmatmul.mubr.bf16.vlgmr.msra.gmra.mrb[0].mxu0 %v2965_v49  ;;  %v2872_v41 = vcombine.low %v1030_v33, %v1031_v34  ;;  %v3588_v49 = vld [vmem:[%s4181_s1 + $0xf8] sm:$0xff]   ;;  %v2323_v34 = vld [vmem:[%s3707_s20 + $0xc] sm:$0xf] }
  0x79   : > { %3365 = vmatpush3.bf16.msra.mxu0 %v3575_v47  ;;  %3270 = vmatprep.subr.bf16.mxu1 %v3576_v0  ;;  %v3586_v47 = vld [vmem:[%s4181_s1 + $0xf0] sm:$0xff]  }
  0x7a   : > { %3366 = vmatprep.subr.bf16.mxu0 %v3577_v6  ;;  %3360 = vmatprep.mubr.bf16.mxu0 %v2966_v22 }
  0x7b   : > { %3264 = vmatprep.mubr.bf16.mxu1 %v2846_v28  ;;  %v2983_v28 = vld [vmem:[%s3707_s20 + $0x104] sm:$0xf] }
  0x7c   : > { %3271 = vmatpush3.bf16.msra.mxu1 %v3576_v0  ;;  %v2024_v0 = vshrl.u32 %v3014_v58, 16 }
  0x7d   : > { %3367 = vmatpush3.bf16.msra.mxu0 %v3577_v6  ;;  %3272 = vmatprep.subr.bf16.mxu1 %v3578_v27  ;;  %v2012_v6 = vrot.slane %v2010_v60, 4  ;;  %v3017_v60 = vld [vmem:[%s3707_s20 + $0x70] sm:$0x1] }
  0x7e   : > { %3368 = vmatprep.subr.bf16.mxu0 %v3579_v30  ;;  %v2026_v10 = vrot.slane %v2024_v0, 4  ;;  %v2047_v8 = vshll.u32 %v3017_v60, 16 }
  0x7f   : > { %3265 = vmatmul.mubr.bf16.gmra.mrb[4].mxu1 %v2847_v36  ;;  %v2016_v14 = vor.u32 %v2015_v7, %v2012_v6  ;;  %v3597_v36 = vld [vmem:[%s4182_s2 + $0x18] sm:$0xff]   ;;  %v3023_v6 = vld [vmem:[%s3707_s20 + $0xd0] sm:$0x1] }
  0x80   : > { %3273 = vmatpush3.bf16.msra.mxu1 %v3578_v27  ;;  %3361 = vmatmul.mubr.bf16.gmra.mrb[4].mxu0 %v2967_v37  ;;  %v2030_v16 = vor.u32 %v2029_v11, %v2026_v10  ;;  %v2982_v27 = vld [vmem:[%s3707_s20 + $0xe4] sm:$0xf]  ;;  %v3016_v37 = vld [vmem:[%s3707_s20 + $0x60] sm:$0xf]  ;;  %v2061_v10 = vshll.u32 %v3019_v61, 16  ;;  %v3603_v11 = vld [vmem:[%s4182_s2 + $0x30] sm:$0xff]  }
  0x81   : > { %3369 = vmatpush3.bf16.msra.mxu0 %v3579_v30  ;;  %3274 = vmatprep.subr.bf16.mxu1 %v3580_v39  ;;  %v2017_v20 = vrot.slane %v2016_v14, 4  ;;  %v2875_v30 = vcombine.low %v1036_v24, %v1037_v25  ;;  %v3003_v33 = vcombine.low %v2982_v27, %v2983_v28  ;;  %v2108_v14 = vshrl.u32 %v3026_v3, 16  ;;  %v3025_v27 = vld [vmem:[%s3707_s20 + $0xf0] sm:$0x1] }
  0x82   : > { %3370 = vmatprep.subr.bf16.mxu0 %v3581_v40  ;;  %3284 = vmatprep.mubr.bf16.mxu1 %v2872_v41  ;;  %v2031_v22 = vrot.slane %v2030_v16, 4  ;;  %v3020_v41 = vld [vmem:[%s3707_s20 + $0xa0] sm:$0xf]  ;;  %v3602_v16 = vld [vmem:[%s4181_s1 + $0x230] sm:$0xff]   ;;  %v2049_v24 = vrot.slane %v2047_v8, 5 }
  0x83   : > { %3380 = vmatprep.mubr.bf16.mxu0 %v3000_v42  ;;  %v2022_v31 = vsel %vm3823_vm2, %v2017_v20, %v2021_v21  ;;  %v3056_v42 = vcombine.low %v2323_v34, %v2324_v35  ;;  %v2089_v20 = vshll.u32 %v3023_v6, 16  ;;  %v3604_v21 = vld [vmem:[%s4181_s1 + $0x238] sm:$0xff]  }
  0x84   : > { %3275 = vmatpush3.bf16.msra.mxu1 %v3580_v39  ;;  %v2036_v32 = vsel %vm3823_vm2, %v2031_v22, %v2035_v23  ;;  %v3596_v39 = vld [vmem:[%s4181_s1 + $0x218] sm:$0xff]  }
  0x85   : > { %3371 = vmatpush3.bf16.msra.mxu0 %v3581_v40  ;;  %3276 = vmatprep.subr.bf16.mxu1 %v3582_v43  ;;  %v3044_v40 = vcombine.low %v2022_v31, %v2036_v32  ;;  %v3605_v22 = vld [vmem:[%s4182_s2 + $0x38] sm:$0xff]   ;;  %v2091_v35 = vrot.slane %v2089_v20, 5 }
  0x86   : > { %3372 = vmatprep.subr.bf16.mxu0 %v3583_v44 }
  0x88   : > { %3277 = vmatpush3.bf16.msra.mxu1 %v3582_v43  ;;  %v3022_v43 = vld [vmem:[%s3707_s20 + $0xc0] sm:$0xf] }
  0x89   : > { %3373 = vmatpush3.bf16.msra.mxu0 %v3583_v44  ;;  %3278 = vmatprep.subr.bf16.mxu1 %v3584_v45  ;;  %v2038_v44 = vshrl.u32 %v3016_v37, 16  ;;  %v2080_v52 = vshrl.u32 %v3022_v43, 16 }
  0x8a   : > { %3374 = vmatprep.subr.bf16.mxu0 %v3585_v46 }
  0x8b   : > { %v2040_v56 = vrot.slane %v2038_v44, 4  ;;  %v2082_v0 = vrot.slane %v2080_v52, 4 }
  0x8c   : > { %3279 = vmatpush3.bf16.msra.mxu1 %v3584_v45  ;;  %v2041_v45 = vshll.u32 %v3016_v37, 16 }
  0x8d   : > { %3375 = vmatpush3.bf16.msra.mxu0 %v3585_v46  ;;  %3280 = vmatprep.subr.bf16.mxu1 %v3586_v47  ;;  %v2052_v46 = vshrl.u32 %v3018_v38, 16 }
  0x8e   : > { %3376 = vmatprep.subr.bf16.mxu0 %v3587_v48 }
  0x8f   : > { %v2054_v58 = vrot.slane %v2052_v46, 4 }
  0x90   : > { %3281 = vmatpush3.bf16.msra.mxu1 %v3586_v47  ;;  %v2055_v47 = vshll.u32 %v3018_v38, 16  ;;  %v2325_v38 = vld [vmem:[%s3707_s20 + $0x4c] sm:$0xf] }
  0x91   : > { %3377 = vmatpush3.bf16.msra.mxu0 %v3587_v48  ;;  %3282 = vmatprep.subr.bf16.mxu1 %v3588_v49  ;;  %v3599_v48 = vld [vmem:[%s4182_s2 + $0x20] sm:$0xff]  }
  0x92   : > { %3378 = vmatprep.subr.bf16.mxu0 %v3589_v50  ;;  %v2057_v59 = vrot.slane %v2055_v47, 5 }
  0x94   : > { %3283 = vmatpush3.bf16.msra.mxu1 %v3588_v49  ;;  %v2066_v49 = vshrl.u32 %v3020_v41, 16  ;;  %v2058_v9 = vor.u32 %v2057_v59, %v2054_v58  ;;  %v2330_v58 = vld [vmem:[%s3707_s20 + $0xec] sm:$0xf] }
  0x95   : > { %3379 = vmatpush3.bf16.msra.mxu0 %v3589_v50  ;;  %3412 = vmatprep.subr.bf16.mxu1 %v3591_v53  ;;  %v2069_v50 = vshll.u32 %v3020_v41, 16 }
  0x96   : > { %3388 = vmatprep.subr.bf16.mxu0 %v3590_v57  ;;  %v2068_v62 = vrot.slane %v2066_v49, 4  ;;  %v2059_v25 = vrot.slane %v2058_v9, 4 }
  0x97   : > { %3285 = vmatmul.mubr.bf16.vlgmr.msra.gmra.mrb[0].mxu1 %v2873_v2  ;;  %v2071_v63 = vrot.slane %v2069_v50, 5  ;;  %v3024_v2 = vld [vmem:[%s3707_s20 + $0xe0] sm:$0xf] }
  0x98   : > { %3381 = vmatmul.mubr.bf16.vlgmr.msra.gmra.mrb[0].mxu0 %v3001_v13  ;;  %3413 = vmatpush3.bf16.msra.mxu1 %v3591_v53  ;;  %v2083_v53 = vshll.u32 %v3022_v43, 16  ;;  %v2094_v12 = vshrl.u32 %v3024_v2, 16  ;;  %v2097_v13 = vshll.u32 %v3024_v2, 16  ;;  %v2328_v43 = vld [vmem:[%s3707_s20 + $0xac] sm:$0xf] }
  0x99   : > { %3389 = vmatpush3.bf16.msra.mxu0 %v3590_v57  ;;  %3414 = vmatprep.subr.bf16.mxu1 %v3593_v15  ;;  %v2043_v57 = vrot.slane %v2041_v45, 5 }
  0x9a   : > { %3390 = vmatprep.subr.bf16.mxu0 %v3592_v17  ;;  %3288 = vmatprep.mubr.bf16.mxu1 %v2874_v18  ;;  %v2085_v1 = vrot.slane %v2083_v53, 5  ;;  %v2075_v18 = vshll.u32 %v3021_v5, 16  ;;  %v2096_v28 = vrot.slane %v2094_v12, 4 }
  0x9b   : > { %3384 = vmatprep.mubr.bf16.mxu0 %v3002_v19  ;;  %v2044_v7 = vor.u32 %v2043_v57, %v2040_v56  ;;  %v2329_v57 = vld [vmem:[%s3707_s20 + $0xcc] sm:$0xf] }
  0x9c   : > { %3415 = vmatpush3.bf16.msra.mxu1 %v3593_v15  ;;  %v2111_v15 = vshll.u32 %v3026_v3, 16  ;;  %v2086_v19 = vor.u32 %v2085_v1, %v2082_v0  ;;  %v3059_v61 = vcombine.low %v2329_v57, %v2330_v58 }
  0x9d   : > { %3391 = vmatpush3.bf16.msra.mxu0 %v3592_v17  ;;  %3416 = vmatprep.subr.bf16.mxu1 %v3595_v26  ;;  %v2072_v17 = vor.u32 %v2071_v63, %v2068_v62  ;;  %v2045_v23 = vrot.slane %v2044_v7, 4 }
  0x9e   : > { %3392 = vmatprep.subr.bf16.mxu0 %v3594_v29  ;;  %v2113_v31 = vrot.slane %v2111_v15, 5  ;;  %v2087_v34 = vrot.slane %v2086_v19, 4 }
  0x9f   : > { %3289 = vmatmul.mubr.bf16.gmra.mrb[4].mxu1 %v2875_v30  ;;  %v2110_v30 = vrot.slane %v2108_v14, 4  ;;  %v2073_v32 = vrot.slane %v2072_v17, 4  ;;  %v2050_v37 = vsel %vm3823_vm2, %v2045_v23, %v2049_v24 }
  0xa0   : > { %3417 = vmatpush3.bf16.msra.mxu1 %v3595_v26  ;;  %3385 = vmatmul.mubr.bf16.gmra.mrb[4].mxu0 %v3003_v33  ;;  %v2063_v26 = vrot.slane %v2061_v10, 5  ;;  %v2077_v33 = vrot.slane %v2075_v18, 5 }
  0xa1   : > { %3393 = vmatpush3.bf16.msra.mxu0 %v3594_v29  ;;  %3418 = vmatprep.subr.bf16.mxu1 %v3597_v36  ;;  %v2099_v29 = vrot.slane %v2097_v13, 5  ;;  %v2114_v45 = vor.u32 %v2113_v31, %v2110_v30 }
  0xa2   : > { %3394 = vmatprep.subr.bf16.mxu0 %v3596_v39  ;;  %3404 = vmatprep.mubr.bf16.mxu0 %v3044_v40  ;;  %v2103_v40 = vshll.u32 %v3025_v27, 16  ;;  %v2064_v41 = vsel %vm3823_vm2, %v2059_v25, %v2063_v26  ;;  %v2078_v47 = vsel %vm3823_vm2, %v2073_v32, %v2077_v33 }
  0xa3   : > { %3428 = vmatprep.mubr.bf16.mxu1 %v3056_v42  ;;  %v2327_v42 = vld [vmem:[%s3707_s20 + $0x8c] sm:$0xf]  ;;  %v2100_v44 = vor.u32 %v2099_v29, %v2096_v28  ;;  %v3045_v50 = vcombine.low %v2050_v37, %v2064_v41 }
  0xa4   : > { %3419 = vmatpush3.bf16.msra.mxu1 %v3597_v36  ;;  %v3027_v36 = vld [vmem:[%s3707_s20 + $0x110] sm:$0x1]  ;;  %v2105_v52 = vrot.slane %v2103_v40, 5 }
  0xa5   : > { %3395 = vmatpush3.bf16.msra.mxu0 %v3596_v39  ;;  %3420 = vmatprep.subr.bf16.mxu1 %v3599_v48  ;;  %v2326_v39 = vld [vmem:[%s3707_s20 + $0x6c] sm:$0xf]  ;;  %v2117_v46 = vshll.u32 %v3027_v36, 16 }
  0xa6   : > { %3396 = vmatprep.subr.bf16.mxu0 %v3598_v51  ;;  %v3057_v49 = vcombine.low %v2325_v38, %v2326_v39 }
  0xa7   : > { %v2119_v56 = vrot.slane %v2117_v46, 5 }
  0xa8   : > { %3421 = vmatpush3.bf16.msra.mxu1 %v3599_v48  ;;  %v2092_v48 = vsel %vm3823_vm2, %v2087_v34, %v2091_v35 }
  0xa9   : > { %3397 = vmatpush3.bf16.msra.mxu0 %v3598_v51  ;;  %3422 = vmatprep.subr.bf16.mxu1 %v3601_v55  ;;  %v3058_v51 = vcombine.low %v2327_v42, %v2328_v43  ;;  %v3046_v53 = vcombine.low %v2078_v47, %v2092_v48 }
  0xaa   : > { %3398 = vmatprep.subr.bf16.mxu0 %v3600_v54 }
  0xac   : > { %3423 = vmatpush3.bf16.msra.mxu1 %v3601_v55  ;;  %v2115_v55 = vrot.slane %v2114_v45, 4 }
  0xad   : > { %3399 = vmatpush3.bf16.msra.mxu0 %v3600_v54  ;;  %3424 = vmatprep.subr.bf16.mxu1 %v3603_v11  ;;  %v2101_v54 = vrot.slane %v2100_v44, 4 }
  0xae   : > { %3400 = vmatprep.subr.bf16.mxu0 %v3602_v16  ;;  %v2120_v60 = vsel %vm3823_vm2, %v2115_v55, %v2119_v56 }
  0xaf   : > { %v2106_v59 = vsel %vm3823_vm2, %v2101_v54, %v2105_v52 }
  0xb0   : > { %3425 = vmatpush3.bf16.msra.mxu1 %v3603_v11  ;;  %v3047_v62 = vcombine.low %v2106_v59, %v2120_v60 }
  0xb1   : > { %3401 = vmatpush3.bf16.msra.mxu0 %v3602_v16  ;;  %3426 = vmatprep.subr.bf16.mxu1 %v3605_v22 }
  0xb2   : > { %3402 = vmatprep.subr.bf16.mxu0 %v3604_v21 }
  0xb4   : > { %3427 = vmatpush3.bf16.msra.mxu1 %v3605_v22 }
  0xb5   : > { %3403 = vmatpush3.bf16.msra.mxu0 %v3604_v21 }
  0xb7   : > { %3429 = vmatmul.mubr.bf16.vlgmr.msra.gmra.mrb[8].mxu1 %v3057_v49 }
  0xb8   : > { %3405 = vmatmul.mubr.bf16.vlgmr.msra.gmra.mrb[0].mxu0 %v3045_v50  ;;  %3432 = vmatprep.mubr.bf16.mxu1 %v3058_v51 }
  0xb9   : > { %3408 = vmatprep.mubr.bf16.mxu0 %v3046_v53 }
  0xbf   : > { %3433 = vmatmul.mubr.bf16.gmra.mrb[12].mxu1 %v3059_v61 }
  0xc0   : > { %3409 = vmatmul.mubr.bf16.gmra.mrb[4].mxu0 %v3047_v62 }
 0x16a   : > { %v3286_v63 = vpop.f32.mrb[0].mxu1 }
 0x16b   : > { %v1161_v0 = vpop.f32.mrb[1].mxu1 }
 0x16c   : > { %v3287_v1 = vpop.f32.mrb[2].mxu1 }
 0x16d   : > { %v1164_v2 = vpop.f32.mrb[3].mxu1 }
 0x172   : > { %v3290_v3 = vpop.f32.mrb[4].mxu1 }
 0x173   : > { %v1177_v5 = vpop.f32.mrb[5].mxu1 }
 0x174   : > { %v3291_v6 = vpop.f32.mrb[6].mxu1 }
 0x175   : > { %v4128_v7 = vpop.f32.mrb[7].mxu1 }
 0x18a   : > { %v3430_v8 = vpop.f32.mrb[8].mxu1 }
 0x18b   : > { %v3406_v4 = vpop.f32.mrb[0].mxu0  ;;  %2486 = vst [vmem:[%s3702_s17 + $0x10] sm:$0xff] %v3430_v8  ;;  %v2453_v9 = vpop.f32.mrb[9].mxu1  ;;  %v2511_v22 = vmul.f32 %v3430_v8, %v3430_v8 }
 0x18c   : > { %v3436_v10 = vadd.f32 %v3406_v4, %v3286_v63  ;;  %v2236_v11 = vpop.f32.mrb[1].mxu0  ;;  %2484 = vst [vmem:[%s3702_s17] sm:$0xff] %v2453_v9  ;;  %v2509_v12 = vmul.f32 %v2453_v9, %v2453_v9  ;;  %v3431_v13 = vpop.f32.mrb[10].mxu1 }
 0x18d   : > { %v3437_v14 = vadd.f32 %v2236_v11, %v1161_v0  ;;  %v3407_v15 = vpop.f32.mrb[2].mxu0  ;;  %2487 = vst [vmem:[%s3702_s17 + $0x18] sm:$0xff] %v3431_v13  ;;  %v2456_v16 = vpop.f32.mrb[11].mxu1  ;;  %v2512_v28 = vmul.f32 %v3431_v13, %v3431_v13 }
 0x18e   : > { %2277 = vst [vmem:[%s3697_s14 + $0x10] sm:$0xff] %v3436_v10  ;;  %v3438_v17 = vadd.f32 %v3407_v15, %v3287_v1  ;;  %v2239_v18 = vpop.f32.mrb[3].mxu0  ;;  %2485 = vst [vmem:[%s3702_s17 + $0x8] sm:$0xff] %v2456_v16  ;;  %v2493_v19 = vadd.f32 %v2456_v16, %v2453_v9  ;;  %v2510_v20 = vmul.f32 %v2456_v16, %v2456_v16 }
 0x18f   : > { %2275 = vst [vmem:[%s3697_s14] sm:$0xff] %v3437_v14  ;;  %v3439_v21 = vadd.f32 %v2239_v18, %v1164_v2  ;;  %v2300_v25 = vmul.f32 %v3437_v14, %v3437_v14  ;;  %v2302_v32 = vmul.f32 %v3436_v10, %v3436_v10 }
 0x190   : > { %2278 = vst [vmem:[%s3697_s14 + $0x18] sm:$0xff] %v3438_v17  ;;  %v2494_v23 = vadd.f32 %v3430_v8, %v2493_v19  ;;  %v2517_v24 = vadd.f32 %v2510_v20, %v2509_v12  ;;  %v2303_v43 = vmul.f32 %v3438_v17, %v3438_v17 }
 0x191   : > { %2276 = vst [vmem:[%s3697_s14 + $0x8] sm:$0xff] %v3439_v21  ;;  %v2284_v26 = vadd.f32 %v3439_v21, %v3437_v14  ;;  %v2301_v27 = vmul.f32 %v3439_v21, %v3439_v21 }
 0x192   : > { %v2518_v29 = vadd.f32 %v2517_v24, %v2511_v22  ;;  %v3434_v30 = vpop.f32.mrb[12].mxu1  ;;  %v2495_v31 = vadd.f32 %v3431_v13, %v2494_v23 }
 0x193   : > { %v2285_v33 = vadd.f32 %v3436_v10, %v2284_v26  ;;  %v2308_v34 = vadd.f32 %v2301_v27, %v2300_v25  ;;  %v3410_v35 = vpop.f32.mrb[4].mxu0  ;;  %2490 = vst [vmem:[%s3702_s17 + $0x30] sm:$0xff] %v3434_v30  ;;  %v2469_v36 = vpop.f32.mrb[13].mxu1  ;;  %v2515_v62 = vmul.f32 %v3434_v30, %v3434_v30  ;;  %v2492_v26 = vld [vmem:[%s4187_s7] sm:$0x1] }
 0x194   : > { %v3440_v37 = vadd.f32 %v3410_v35, %v3290_v3  ;;  %v2252_v38 = vpop.f32.mrb[5].mxu0  ;;  %2488 = vst [vmem:[%s3702_s17 + $0x20] sm:$0xff] %v2469_v36  ;;  %v2496_v39 = vadd.f32 %v2495_v31, %v2469_v36  ;;  %v2513_v40 = vmul.f32 %v2469_v36, %v2469_v36  ;;  %v2519_v41 = vadd.f32 %v2518_v29, %v2512_v28  ;;  %v3435_v42 = vpop.f32.mrb[14].mxu1  ;;  %v2283_v31 = vld [vmem:[%s4184_s4] sm:$0x1] }
 0x195   : > { %v2309_v44 = vadd.f32 %v2308_v34, %v2302_v32  ;;  %v3441_v45 = vadd.f32 %v2252_v38, %v1177_v5  ;;  %v2286_v46 = vadd.f32 %v3438_v17, %v2285_v33  ;;  %v3411_v47 = vpop.f32.mrb[6].mxu0  ;;  %2491 = vst [vmem:[%s3702_s17 + $0x38] sm:$0xff] %v3435_v42  ;;  %v2472_v48 = vpop.f32.mrb[15].mxu1  ;;  %v2516_v5 = vmul.f32 %v3435_v42, %v3435_v42  ;;  %v2508_v36 = vld [vmem:[%s4188_s8] sm:$0x1] }
 0x196   : > { %2281 = vst [vmem:[%s3697_s14 + $0x30] sm:$0xff] %v3440_v37  ;;  %v2520_v49 = vadd.f32 %v2519_v41, %v2513_v40  ;;  %v3442_v50 = vadd.f32 %v3411_v47, %v3291_v6  ;;  %v2255_v51 = vpop.f32.mrb[7].mxu0  ;;  %2489 = vst [vmem:[%s3702_s17 + $0x28] sm:$0xff] %v2472_v48  ;;  %v2497_v52 = vadd.f32 %v2496_v39, %v2472_v48 }
 0x197   : > { %2279 = vst [vmem:[%s3697_s14 + $0x20] sm:$0xff] %v3441_v45  ;;  %v2287_v53 = vadd.f32 %v3441_v45, %v2286_v46  ;;  %v2304_v54 = vmul.f32 %v3441_v45, %v3441_v45  ;;  %v2310_v55 = vadd.f32 %v2309_v44, %v2303_v43  ;;  %v3443_v56 = vadd.f32 %v2255_v51, %v4128_v7 }
 0x198   : > { %2282 = vst [vmem:[%s3697_s14 + $0x38] sm:$0xff] %v3442_v50  ;;  %v2498_v57 = vadd.f32 %v3434_v30, %v2497_v52  ;;  %v2514_v58 = vmul.f32 %v2472_v48, %v2472_v48  ;;  %v2306_v1 = vmul.f32 %v3440_v37, %v3440_v37  ;;  %v2307_v4 = vmul.f32 %v3442_v50, %v3442_v50 }
 0x199   : > { %v2311_v59 = vadd.f32 %v2310_v55, %v2304_v54  ;;  %2280 = vst [vmem:[%s3697_s14 + $0x28] sm:$0xff] %v3443_v56  ;;  %v2288_v60 = vadd.f32 %v3443_v56, %v2287_v53  ;;  %v2305_v61 = vmul.f32 %v3443_v56, %v3443_v56 }
 0x19a   : > { %v2499_v63 = vadd.f32 %v3435_v42, %v2498_v57  ;;  %v2521_v0 = vadd.f32 %v2520_v49, %v2514_v58 }
 0x19b   : > { %v2289_v2 = vadd.f32 %v3440_v37, %v2288_v60  ;;  %v2312_v3 = vadd.f32 %v2311_v59, %v2305_v61  ;;  %v2299_v37 = vld [vmem:[%s4185_s5] sm:$0x1] }
 0x19c   : > { %v2500_v6 = vrot.slane %v2499_v63, 4  ;;  %v2522_v8 = vadd.f32 %v2521_v0, %v2515_v62 }
 0x19d   : > { %v2290_v9 = vadd.f32 %v3442_v50, %v2289_v2  ;;  %v2313_v10 = vadd.f32 %v2312_v3, %v2306_v1 }
 0x19e   : > { %v2501_v7 = vadd.f32 %v2500_v6, %v2499_v63  ;;  %v2523_v11 = vadd.f32 %v2522_v8, %v2516_v5 }
 0x19f   : > { %v2291_v12 = vrot.slane %v2290_v9, 4  ;;  %v2314_v13 = vadd.f32 %v2313_v10, %v2307_v4 }
 0x1a0   : > { %v2502_v14 = vrot.slane %v2501_v7, 2  ;;  %v2524_v15 = vrot.slane %v2523_v11, 4 }
 0x1a1   : > { %v2292_v16 = vadd.f32 %v2291_v12, %v2290_v9  ;;  %v2315_v17 = vrot.slane %v2314_v13, 4 }
 0x1a2   : > { %v2503_v18 = vadd.f32 %v2502_v14, %v2501_v7  ;;  %v2525_v19 = vadd.f32 %v2524_v15, %v2523_v11 }
 0x1a3   : > { %v2293_v20 = vrot.slane %v2292_v16, 2  ;;  %v2316_v21 = vadd.f32 %v2315_v17, %v2314_v13 }
 0x1a4   : > { %v2504_v22 = vrot.slane %v2503_v18, 1  ;;  %v2526_v23 = vrot.slane %v2525_v19, 2 }
 0x1a5   : > { %v2294_v24 = vadd.f32 %v2293_v20, %v2292_v16  ;;  %v2317_v25 = vrot.slane %v2316_v21, 2 }
 0x1a6   : > { %v2505_v27 = vadd.f32 %v2504_v22, %v2503_v18  ;;  %v2527_v28 = vadd.f32 %v2526_v23, %v2525_v19 }
 0x1a7   : > { %v2295_v29 = vrot.slane %v2294_v24, 1  ;;  %v2318_v30 = vadd.f32 %v2317_v25, %v2316_v21 }
 0x1a8   : > { %v2506_v32 = vadd.f32 %v2505_v27, %v2492_v26  ;;  %v2528_v33 = vrot.slane %v2527_v28, 1 }
 0x1a9   : > { %v2296_v34 = vadd.f32 %v2295_v29, %v2294_v24  ;;  %v2319_v35 = vrot.slane %v2318_v30, 1 }
 0x1aa   : > { %2507 = vst [vmem:[%s4187_s7] sm:$0x1] %v2506_v32  ;;  %v2529_v38 = vadd.f32 %v2528_v33, %v2527_v28 }
 0x1ab   : > { %v2297_v39 = vadd.f32 %v2296_v34, %v2283_v31  ;;  %v2320_v40 = vadd.f32 %v2319_v35, %v2318_v30 }
 0x1ac   : > { %v2530_v41 = vadd.f32 %v2529_v38, %v2508_v36 }
 0x1ad   : > { %2298 = vst [vmem:[%s4184_s4] sm:$0x1] %v2297_v39  ;;  %v2321_v42 = vadd.f32 %v2320_v40, %v2299_v37 }
 0x1ae   : > { %2531 = vst [vmem:[%s4188_s8] sm:$0x1] %v2530_v41 }
 0x1af   : > { %2322 = vst [vmem:[%s4185_s5] sm:$0x1] %v2321_v42 }
 0x1b0 PF: > { %s19_s29 = sadd.s32 1, %s3628_s29   ;;  %s4191_s27 = smov %s3624_s28 }
 0x1b1   : > { %p16_p6 = scmp.ge.s32.totalorder %s19_s29, 4   ;;  %s4192_s28 = smov %s4194_s30 }
 0x1b3   :  { %18 = sbr.rel (!%p16_p6) target bundleno = 2 (0x2), region = 141 }

</bundles_post_ra>
